<compile_context>
chip_gen: v7x
topology: tpu7x:2x2x1
jax: 0.10.0
libtpu: 0.0.40
codegen_flags: <defaults>
</compile_context>

<pallas_src>
import jax
import jax.numpy as jnp
from jax.experimental import pallas as pl
from jax.experimental.pallas import tpu as pltpu


# ----------------------------------------------------------------------------
# Pallas kernel: one grid step = Bt batch elements, flattened to 2-D rows.
# ----------------------------------------------------------------------------
def hetgat_kernel(x_ref, y_ref, z_ref, opma_ref, adj_ref, same_ref,
                  noh_op_ref, noh_ma_ref, wnode_ref, w3blk_ref, rband_ref,
                  sw_ref, tile_op_ref, tile_ma_ref, wmlp_ref, bias_ref,
                  out_ref):
    f32, bf16 = jnp.float32, jnp.bfloat16

    R, Fop = x_ref.shape               # Bt*N op rows in this block
    N = adj_ref.shape[1]
    M = opma_ref.shape[1]
    O = sw_ref.shape[1]
    H = (wmlp_ref.shape[0] - 2 * O) // 2

    def mm(a, b):                      # MXU matmul: bf16 inputs, f32 accumulate
        return jnp.dot(a.astype(bf16), b.astype(bf16),
                       preferred_element_type=f32)

    def leaky(v):                      # max(v, 0.01v): 2 VALU ops, no select
        return jnp.maximum(v, 0.01 * v)

    def elu(v):
        return jnp.where(v > 0, v, jnp.exp(v) - 1.0)

    def band_softmax(e, valid):
        # NOTE: like the reference, a row with no valid entry would give NaN;
        # unreachable for sane adjacency (self-loops / row_zero fixup).
        logits = jnp.where(valid, e, -jnp.inf)
        mx = jnp.max(logits, axis=-1, keepdims=True)
        p = jnp.exp(logits - mx)
        return p / jnp.sum(p, axis=-1, keepdims=True)

    x = x_ref[...]                     # (R, F_op)   bf16
    yv = y_ref[...]                    # (Rm, F_ma)  bf16
    zf = z_ref[...]                    # (R, M*F_e)  bf16
    opma = opma_ref[...].astype(f32)   # (R, M)
    adj = adj_ref[...].astype(f32)     # (R, N)
    same_op = same_ref[:, :R]          # (R, R)   bf16 block-diagonal 0/1 mask
    same_ma = same_ref[:, R:]          # (R, Rm)

    # rows whose op_ma_adj row is all zero (masked rows of the reference)
    row_zero = jnp.max(jnp.abs(opma), axis=-1, keepdims=True) == 0.0   # (R, 1)

    # ---- node embeddings + fused rank-1 attention projections (2 matmuls) ----
    # wnode x-block columns: [W_op | W_op@a1 | W_op@a2 | W_op@am1]
    # wnode y-block columns: [W_ma | W_ma@am2 | 0 | 0]
    hx = mm(x, wnode_ref[:Fop, :])     # (R, O+3)
    hy = mm(yv, wnode_ref[Fop:, :])    # (Rm, O+3)
    h = hx[:, :O]                      # (R, O)
    h_ma = hy[:, :O]                   # (Rm, O)
    s1 = hx[:, O:O + 1]                # h    . a1   (per op row)
    s2 = hx[:, O + 1:O + 2]            # h    . a2
    t1 = hx[:, O + 2:O + 3]            # h    . am1
    t2 = hy[:, O:O + 1]                # h_ma . am2  (per ma row)

    # band column terms: s1_band[r, c] = s1 of node c in row r's batch
    # (single tiny replication matmul against the same-batch mask)
    s1_band = mm(same_op, noh_op_ref[...] * s1)          # (R, N)
    t2_band = mm(same_ma, noh_ma_ref[...] * t2)          # (R, M)

    # ---------------- op-op attention (band form, width N) ----------------
    e_op = leaky(s2 + s1_band)                           # (R, N)
    adj_eff = jnp.where(row_zero, 1.0, adj)
    att_op_band = band_softmax(e_op, adj_eff > 0.0)      # (R, N)
    # expand to block-diagonal only for the aggregation matmul
    att_op_full = mm(att_op_band, tile_op_ref[...]) * same_op   # (R, R)
    h_prime_op = mm(att_op_full, h)                      # (R, O)

    # ---------------- op-ma attention (band form, width M) ----------------
    e_edge = mm(zf, w3blk_ref[...])                      # (R, M): z . (W_edge@am3)
    e_ma = leaky(t1 + t2_band + e_edge)                  # (R, M)
    opma_eff = jnp.where(row_zero, 1.0, opma)
    att_ma_band = band_softmax(e_ma, opma_eff > 0.0)     # (R, M)
    att_ma_full = mm(att_ma_band, tile_ma_ref[...]) * same_ma   # (R, Rm)
    att_rep = mm(att_ma_band, rband_ref[...])            # (R, M*F_e): att repeated F_e times
    h_edge_w = mm(att_rep * zf, sw_ref[...])             # (R, O)
    h_prime_ma = mm(att_ma_full, h_ma) + h_edge_w + h    # (R, O)

    # ---------------- MLP head (R rows at once) ----------------
    b1 = bias_ref[0:1, :H]
    b2 = bias_ref[1:2, :H]
    bo = bias_ref[2:3, :O]
    emb = elu(mm(h_prime_op, wmlp_ref[0:O, :H])
              + mm(h_prime_ma, wmlp_ref[O:2 * O, :H]) + b1)
    emb = elu(mm(emb, wmlp_ref[2 * O:2 * O + H, :H]) + b2)
    emb = mm(emb, wmlp_ref[2 * O + H:2 * O + 2 * H, :O]) + bo

    out_ref[...] = jnp.where(row_zero, 0.0, emb)


# ----------------------------------------------------------------------------
# Wrapper: batch-tiling choice, parameter packing/glue and pallas_call.
# ----------------------------------------------------------------------------
def _default_target_rows():
    # v6e (2x256x256 MXU, 1 TC): 256 rows per step.  v5e (128-wide MXU) and
    # v7x (2 TCs -> want >=2 grid steps per core): 128 rows per step.
    try:
        kind = jax.devices()[0].device_kind.lower()
    except Exception:
        return 128
    return 256 if "v6" in kind else 128


def _pick_bt(B, N, M, target_rows):
    """Largest Bt dividing B with Bt*N <= target_rows and sublane-aligned blocks."""
    def ok(bt):
        return B % bt == 0 and (bt == B or ((bt * N) % 8 == 0 and (bt * M) % 8 == 0))
    cands = [bt for bt in range(1, B + 1) if ok(bt)]
    under = [bt for bt in cands if bt * N <= target_rows]
    return max(under) if under else min(cands)


def hetgat_forward(params, x, y, z, op_adj_in, ma_adj_in, op_ma_adj,
                   *, target_rows=None):
    f32, bf16 = jnp.float32, jnp.bfloat16
    B, N, Fop = x.shape
    M, Fma = y.shape[1], y.shape[2]
    Fe = z.shape[3]
    O = params["W_op"].shape[1]
    H = params["W1"].shape[0]

    if target_rows is None:
        target_rows = _default_target_rows()
    Bt = _pick_bt(B, N, M, target_rows)
    G = B // Bt
    R, Rm = Bt * N, Bt * M

    # ---- bf16 input staging (kernel feeds the MXU in bf16 anyway) ----
    x2 = x.reshape(B * N, Fop).astype(bf16)
    y2 = y.reshape(B * M, Fma).astype(bf16)
    z2 = z.reshape(B * N, M * Fe).astype(bf16)
    # adjacency values are small non-negative integers -> exact in bf16
    opma2 = op_ma_adj.reshape(B * N, M).astype(bf16)
    adj2 = (jnp.swapaxes(op_adj_in, 1, 2) + op_adj_in
            + jnp.swapaxes(ma_adj_in, 1, 2) + ma_adj_in).reshape(B * N, N).astype(bf16)

    # ---- packed / pre-combined parameters (bf16 constants) ----
    a1 = params["att_op"][0, :O]
    a2 = params["att_op"][0, O:]
    am1 = params["att_ma"][0, :O]
    am2 = params["att_ma"][0, O:2 * O]
    am3 = params["att_ma"][0, 2 * O:]

    wnode = jnp.zeros((Fop + Fma, O + 3), f32)
    wnode = wnode.at[:Fop, :O].set(params["W_op"])
    wnode = wnode.at[:Fop, O].set(params["W_op"] @ a1)
    wnode = wnode.at[:Fop, O + 1].set(params["W_op"] @ a2)
    wnode = wnode.at[:Fop, O + 2].set(params["W_op"] @ am1)
    wnode = wnode.at[Fop:, :O].set(params["W_ma"])
    wnode = wnode.at[Fop:, O].set(params["W_ma"] @ am2)
    wnode = wnode.astype(bf16)

    w3 = params["W_edge"] @ am3                                       # (Fe,)
    w3blk = jnp.kron(jnp.eye(M, dtype=f32), w3[:, None]).astype(bf16)      # (M*Fe, M)
    rband = jnp.kron(jnp.eye(M, dtype=f32),
                     jnp.ones((1, Fe), f32)).astype(bf16)             # (M, M*Fe)
    sw = jnp.tile(params["W_edge"], (M, 1)).astype(bf16)              # (M*Fe, O)

    tile_op = jnp.tile(jnp.eye(N, dtype=f32), (1, Bt)).astype(bf16)   # (N, R)
    tile_ma = jnp.tile(jnp.eye(M, dtype=f32), (1, Bt)).astype(bf16)   # (M, Rm)
    node_oh_op = jnp.tile(jnp.eye(N, dtype=f32), (Bt, 1)).astype(bf16)  # (R, N)
    node_oh_ma = jnp.tile(jnp.eye(M, dtype=f32), (Bt, 1)).astype(bf16)  # (Rm, M)

    bid_op = jnp.arange(R, dtype=jnp.int32) // N
    bid_ma = jnp.arange(Rm, dtype=jnp.int32) // M
    same = jnp.concatenate(
        [(bid_op[:, None] == bid_op[None, :]),
         (bid_op[:, None] == bid_ma[None, :])], axis=1).astype(bf16)  # (R, R+Rm)

    Hc = max(H, O)
    wmlp = jnp.zeros((2 * O + 2 * H, Hc), f32)
    wmlp = wmlp.at[:O, :H].set(params["W1"][:, :O].T)
    wmlp = wmlp.at[O:2 * O, :H].set(params["W1"][:, O:].T)
    wmlp = wmlp.at[2 * O:2 * O + H, :H].set(params["W2"].T)
    wmlp = wmlp.at[2 * O + H:, :O].set(params["Wo"].T)
    wmlp = wmlp.astype(bf16)

    bias = jnp.zeros((3, Hc), f32)
    bias = bias.at[0, :H].set(params["b1"])
    bias = bias.at[1, :H].set(params["b2"])
    bias = bias.at[2, :O].set(params["bo"])

    dmap = lambda g: (g, 0)
    pmap = lambda g: (0, 0)

    in_specs = [
        pl.BlockSpec((R, Fop), dmap),             # x
        pl.BlockSpec((Rm, Fma), dmap),            # y
        pl.BlockSpec((R, M * Fe), dmap),          # z (flattened)
        pl.BlockSpec((R, M), dmap),               # op_ma_adj
        pl.BlockSpec((R, N), dmap),               # combined op adjacency
        pl.BlockSpec((R, R + Rm), pmap),          # same-batch masks [op | ma]
        pl.BlockSpec((R, N), pmap),               # node one-hot (op rows)
        pl.BlockSpec((Rm, M), pmap),              # node one-hot (ma rows)
        pl.BlockSpec((Fop + Fma, O + 3), pmap),   # [W_op;W_ma] + fused att cols
        pl.BlockSpec((M * Fe, M), pmap),          # block-diag W_edge @ am3
        pl.BlockSpec((M, M * Fe), pmap),          # att -> per-edge-feature replication
        pl.BlockSpec((M * Fe, O), pmap),          # stacked W_edge
        pl.BlockSpec((N, R), pmap),               # op tile expansion matrix
        pl.BlockSpec((M, Rm), pmap),              # ma tile expansion matrix
        pl.BlockSpec((2 * O + 2 * H, Hc), pmap),  # packed MLP weights
        pl.BlockSpec((3, Hc), pmap),              # packed biases (f32)
    ]
    out_specs = pl.BlockSpec((R, O), dmap)

    out2 = pl.pallas_call(
        hetgat_kernel,
        out_shape=jax.ShapeDtypeStruct((B * N, O), f32),
        grid=(G,),
        in_specs=in_specs,
        out_specs=out_specs,
        compiler_params=pltpu.CompilerParams(
            dimension_semantics=("parallel",)),   # batch axis -> both TCs on v7x
    )(x2, y2, z2, opma2, adj2, same, node_oh_op, node_oh_ma,
      wnode, w3blk, rband, sw, tile_op, tile_ma, wmlp, bias)

    return out2.reshape(B, N, O)


# ----------------------------------------------------------------------------
# Pure-JAX reference (faithful translation of the PyTorch forward, f32).
# ----------------------------------------------------------------------------
def hetgat_reference(params, x, y, z, op_adj_in, ma_adj_in, op_ma_adj):
    B, N, _ = x.shape
    M = y.shape[1]
    O = params["W_op"].shape[1]
    h = jnp.einsum("bni,io->bno", x, params["W_op"])
    h_rep2 = jnp.repeat(h, N, axis=1)               # repeat_interleave(dim=1)
    h_rep1 = jnp.tile(h, (1, N, 1))                 # repeat(1, N, 1)
    allc = jnp.concatenate([h_rep1, h_rep2], axis=2).reshape(B, N, N, -1)
    e_op = jnp.matmul(allc, params["att_op"].T).reshape(B, N, N)
    e_op = jnp.where(e_op > 0, e_op, 0.01 * e_op)
    adj = (jnp.swapaxes(op_adj_in, 1, 2) + op_adj_in
           + jnp.swapaxes(ma_adj_in, 1, 2) + ma_adj_in)
    mask = jnp.all(op_ma_adj == 0, axis=-1)[..., None]              # (B, N, 1)
    adj = jnp.where(mask, 1.0, adj)
    att = jnp.where(adj > 0, e_op, -jnp.inf)
    att_op = jax.nn.softmax(att, axis=2)
    h_prime_op = jnp.matmul(att_op, h)

    h_op = jnp.broadcast_to(h[:, :, None, :], (B, N, M, O))
    h_ma_full = jnp.einsum("bni,io->bno", y, params["W_ma"])
    h_ma = jnp.broadcast_to(h_ma_full[:, None, :, :], (B, N, M, O))
    h_edge = jnp.einsum("bnmi,io->bnmo", z, params["W_edge"])
    allc2 = jnp.concatenate([h_op, h_ma, h_edge], axis=-1)
    e_ma = jnp.matmul(allc2, params["att_ma"].T).reshape(B, N, M)
    e_ma = jnp.where(e_ma > 0, e_ma, 0.01 * e_ma)
    adj2 = jnp.where(mask, 1.0, op_ma_adj)
    att2 = jnp.where(adj2 > 0, e_ma, -jnp.inf)
    att_ma = jax.nn.softmax(att2, axis=2)
    h_ma_edge = h_ma + h_edge
    h_prime_ma = jnp.matmul(att_ma[:, :, None, :], h_ma_edge)[:, :, 0, :] + h
    h_prime = jnp.concatenate([h_prime_op, h_prime_ma], axis=-1)

    def elu(v):
        return jnp.where(v > 0, v, jnp.exp(v) - 1.0)

    emb = elu(h_prime @ params["W1"].T + params["b1"])
    emb = elu(emb @ params["W2"].T + params["b2"])
    emb = emb @ params["Wo"].T + params["bo"]
    emb = jnp.where(mask, 0.0, emb)
    return emb


# ----------------------------------------------------------------------------
# main
# ----------------------------------------------------------------------------
if __name__ == "__main__":
    B, N, M = 64, 8, 8                 # batch, op nodes, ma nodes
    Fop, Fma, Fe = 16, 16, 8           # in_features_op / _ma / _edge
    O, H = 16, 32                      # out_features, hidden_size

    key = jax.random.PRNGKey(0)
    ks = jax.random.split(key, 16)

    params = {
        "W_op":   0.2 * jax.random.normal(ks[0], (Fop, O), jnp.float32),
        "W_ma":   0.2 * jax.random.normal(ks[1], (Fma, O), jnp.float32),
        "W_edge": 0.2 * jax.random.normal(ks[2], (Fe, O), jnp.float32),
        "att_op": 0.2 * jax.random.normal(ks[3], (1, 2 * O), jnp.float32),
        "att_ma": 0.2 * jax.random.normal(ks[4], (1, 3 * O), jnp.float32),
        "W1":     0.2 * jax.random.normal(ks[5], (H, 2 * O), jnp.float32),
        "b1":     jnp.zeros((H,), jnp.float32),
        "W2":     0.2 * jax.random.normal(ks[6], (H, H), jnp.float32),
        "b2":     jnp.zeros((H,), jnp.float32),
        "Wo":     0.2 * jax.random.normal(ks[7], (O, H), jnp.float32),
        "bo":     jnp.zeros((O,), jnp.float32),
    }

    x = jax.random.normal(ks[8], (B, N, Fop), jnp.float32)
    y = jax.random.normal(ks[9], (B, M, Fma), jnp.float32)
    z = jax.random.normal(ks[10], (B, N, M, Fe), jnp.float32)

    eye = jnp.broadcast_to(jnp.eye(N, dtype=jnp.float32), (B, N, N))
    op_adj_in = jax.random.bernoulli(ks[11], 0.4, (B, N, N)).astype(jnp.float32) + eye
    ma_adj_in = jax.random.bernoulli(ks[12], 0.3, (B, N, N)).astype(jnp.float32)
    op_ma_adj = jax.random.bernoulli(ks[13], 0.5, (B, N, M)).astype(jnp.float32)
    # exercise the "row of op_ma_adj is all zero" masking path
    op_ma_adj = op_ma_adj.at[0, 0, :].set(0.0)
    op_ma_adj = op_ma_adj.at[B - 1, 3, :].set(0.0)

    out = jax.block_until_ready(
        hetgat_forward(params, x, y, z, op_adj_in, ma_adj_in, op_ma_adj))
    ref = jax.block_until_ready(
        hetgat_reference(params, x, y, z, op_adj_in, ma_adj_in, op_ma_adj))

    assert out.shape == (B, N, O)
    assert bool(jnp.all(jnp.isfinite(out)))
    max_ref = float(jnp.max(jnp.abs(ref)))
    max_diff = float(jnp.max(jnp.abs(out - ref)))
    # bf16 MXU inputs with f32 accumulation vs an f32 XLA reference:
    # allow a few percent of the output dynamic range (structural check).
    tol = 5e-2 * max(1.0, max_ref)
    assert max_diff < tol, f"kernel vs reference mismatch: {max_diff} (tol {tol})"

    print("KERNEL_OK")
</pallas_src>

<mosaic_0001>
module attributes {stable_mosaic.version = 11 : i64} {
  func.func @hetgat_kernel(%arg0: i32, %arg1: memref<128x16xbf16, #tpu.memory_space<vmem>>, %arg2: memref<128x16xbf16, #tpu.memory_space<vmem>>, %arg3: memref<128x64xbf16, #tpu.memory_space<vmem>>, %arg4: memref<128x8xbf16, #tpu.memory_space<vmem>>, %arg5: memref<128x8xbf16, #tpu.memory_space<vmem>>, %arg6: memref<128x256xbf16, #tpu.memory_space<vmem>>, %arg7: memref<128x8xbf16, #tpu.memory_space<vmem>>, %arg8: memref<128x8xbf16, #tpu.memory_space<vmem>>, %arg9: memref<32x19xbf16, #tpu.memory_space<vmem>>, %arg10: memref<64x8xbf16, #tpu.memory_space<vmem>>, %arg11: memref<8x64xbf16, #tpu.memory_space<vmem>>, %arg12: memref<64x16xbf16, #tpu.memory_space<vmem>>, %arg13: memref<8x128xbf16, #tpu.memory_space<vmem>>, %arg14: memref<8x128xbf16, #tpu.memory_space<vmem>>, %arg15: memref<96x32xbf16, #tpu.memory_space<vmem>>, %arg16: memref<3x32xf32, #tpu.memory_space<vmem>>, %arg17: memref<128x16xf32, #tpu.memory_space<vmem>>) attributes {dimension_semantics = [#tpu.dimension_semantics<parallel>], iteration_bounds = array<i64: 4>, scalar_prefetch = 0 : i64, scratch_operands = 0 : i64, tpu.core_type = #tpu.core_type<tc>, window_params = [{transform_indices = @transform_0, window_bounds = array<i64: 128, 16>}, {transform_indices = @transform_1, window_bounds = array<i64: 128, 16>}, {transform_indices = @transform_2, window_bounds = array<i64: 128, 64>}, {transform_indices = @transform_3, window_bounds = array<i64: 128, 8>}, {transform_indices = @transform_4, window_bounds = array<i64: 128, 8>}, {pipeline_mode = #tpu.pipeline_mode<synchronous>, transform_indices = @transform_5, window_bounds = array<i64: 128, 256>}, {pipeline_mode = #tpu.pipeline_mode<synchronous>, transform_indices = @transform_6, window_bounds = array<i64: 128, 8>}, {pipeline_mode = #tpu.pipeline_mode<synchronous>, transform_indices = @transform_7, window_bounds = array<i64: 128, 8>}, {pipeline_mode = #tpu.pipeline_mode<synchronous>, transform_indices = @transform_8, window_bounds = array<i64: 32, 19>}, {pipeline_mode = #tpu.pipeline_mode<synchronous>, transform_indices = @transform_9, window_bounds = array<i64: 64, 8>}, {pipeline_mode = #tpu.pipeline_mode<synchronous>, transform_indices = @transform_10, window_bounds = array<i64: 8, 64>}, {pipeline_mode = #tpu.pipeline_mode<synchronous>, transform_indices = @transform_11, window_bounds = array<i64: 64, 16>}, {pipeline_mode = #tpu.pipeline_mode<synchronous>, transform_indices = @transform_12, window_bounds = array<i64: 8, 128>}, {pipeline_mode = #tpu.pipeline_mode<synchronous>, transform_indices = @transform_13, window_bounds = array<i64: 8, 128>}, {pipeline_mode = #tpu.pipeline_mode<synchronous>, transform_indices = @transform_14, window_bounds = array<i64: 96, 32>}, {pipeline_mode = #tpu.pipeline_mode<synchronous>, transform_indices = @transform_15, window_bounds = array<i64: 3, 32>}, {transform_indices = @transform_16, window_bounds = array<i64: 128, 16>}]} {
    %c0 = arith.constant 0 : index
    %c0_0 = arith.constant 0 : index
    %0 = vector.load %arg1[%c0, %c0_0] : memref<128x16xbf16, #tpu.memory_space<vmem>>, vector<128x16xbf16>
    %c0_1 = arith.constant 0 : index
    %c0_2 = arith.constant 0 : index
    %1 = vector.load %arg2[%c0_1, %c0_2] : memref<128x16xbf16, #tpu.memory_space<vmem>>, vector<128x16xbf16>
    %c0_3 = arith.constant 0 : index
    %c0_4 = arith.constant 0 : index
    %2 = vector.load %arg3[%c0_3, %c0_4] : memref<128x64xbf16, #tpu.memory_space<vmem>>, vector<128x64xbf16>
    %c0_5 = arith.constant 0 : index
    %c0_6 = arith.constant 0 : index
    %3 = vector.load %arg4[%c0_5, %c0_6] : memref<128x8xbf16, #tpu.memory_space<vmem>>, vector<128x8xbf16>
    %4 = arith.extf %3 : vector<128x8xbf16> to vector<128x8xf32>
    %c0_7 = arith.constant 0 : index
    %c0_8 = arith.constant 0 : index
    %5 = vector.load %arg5[%c0_7, %c0_8] : memref<128x8xbf16, #tpu.memory_space<vmem>>, vector<128x8xbf16>
    %6 = arith.extf %5 : vector<128x8xbf16> to vector<128x8xf32>
    %c0_9 = arith.constant 0 : index
    %c0_10 = arith.constant 0 : index
    %7 = vector.load %arg6[%c0_9, %c0_10] : memref<128x256xbf16, #tpu.memory_space<vmem>>, vector<128x128xbf16>
    %c0_11 = arith.constant 0 : index
    %c128 = arith.constant 128 : index
    %8 = vector.load %arg6[%c0_11, %c128] : memref<128x256xbf16, #tpu.memory_space<vmem>>, vector<128x128xbf16>
    %9 = math.absf %4 : vector<128x8xf32>
    %cst = arith.constant dense<0xFF800000> : vector<128xf32>
    %10 = vector.multi_reduction <maximumf>, %9, %cst [1] : vector<128x8xf32> to vector<128xf32>
    %11 = vector.shape_cast %10 : vector<128xf32> to vector<128x1xf32>
    %cst_12 = arith.constant 0.000000e+00 : f32
    %12 = vector.broadcast %cst_12 : f32 to vector<128x1xf32>
    %13 = arith.cmpf oeq, %11, %12 : vector<128x1xf32>
    %c0_13 = arith.constant 0 : index
    %c0_14 = arith.constant 0 : index
    %14 = vector.load %arg9[%c0_13, %c0_14] : memref<32x19xbf16, #tpu.memory_space<vmem>>, vector<16x19xbf16>
    %cst_15 = arith.constant dense<0.000000e+00> : vector<128x19xf32>
    %15 = tpu.matmul %0, %14, %cst_15 {dimension_numbers = #tpu.dot_dimension_numbers<[1], [0], [0], [1], [0, 0, 1, 1], [], []>} : vector<128x16xbf16>, vector<16x19xbf16>, vector<128x19xf32> -> vector<128x19xf32>
    %c16 = arith.constant 16 : index
    %c0_16 = arith.constant 0 : index
    %16 = vector.load %arg9[%c16, %c0_16] : memref<32x19xbf16, #tpu.memory_space<vmem>>, vector<16x19xbf16>
    %cst_17 = arith.constant dense<0.000000e+00> : vector<128x19xf32>
    %17 = tpu.matmul %1, %16, %cst_17 {dimension_numbers = #tpu.dot_dimension_numbers<[1], [0], [0], [1], [0, 0, 1, 1], [], []>} : vector<128x16xbf16>, vector<16x19xbf16>, vector<128x19xf32> -> vector<128x19xf32>
    %18 = vector.extract_strided_slice %15 {offsets = [0, 0], sizes = [128, 16], strides = [1, 1]} : vector<128x19xf32> to vector<128x16xf32>
    %19 = vector.extract_strided_slice %17 {offsets = [0, 0], sizes = [128, 16], strides = [1, 1]} : vector<128x19xf32> to vector<128x16xf32>
    %20 = vector.extract_strided_slice %15 {offsets = [0, 16], sizes = [128, 1], strides = [1, 1]} : vector<128x19xf32> to vector<128x1xf32>
    %21 = vector.extract_strided_slice %15 {offsets = [0, 17], sizes = [128, 1], strides = [1, 1]} : vector<128x19xf32> to vector<128x1xf32>
    %22 = vector.extract_strided_slice %15 {offsets = [0, 18], sizes = [128, 1], strides = [1, 1]} : vector<128x19xf32> to vector<128x1xf32>
    %23 = vector.extract_strided_slice %17 {offsets = [0, 16], sizes = [128, 1], strides = [1, 1]} : vector<128x19xf32> to vector<128x1xf32>
    %c0_18 = arith.constant 0 : index
    %c0_19 = arith.constant 0 : index
    %24 = vector.load %arg7[%c0_18, %c0_19] : memref<128x8xbf16, #tpu.memory_space<vmem>>, vector<128x8xbf16>
    %25 = arith.extf %24 : vector<128x8xbf16> to vector<128x8xf32>
    %26 = vector.broadcast %20 : vector<128x1xf32> to vector<128x8xf32>
    %27 = arith.mulf %25, %26 : vector<128x8xf32>
    %28 = arith.truncf %27 : vector<128x8xf32> to vector<128x8xbf16>
    %cst_20 = arith.constant dense<0.000000e+00> : vector<128x8xf32>
    %29 = tpu.matmul %7, %28, %cst_20 {dimension_numbers = #tpu.dot_dimension_numbers<[1], [0], [0], [1], [0, 0, 1, 1], [], []>} : vector<128x128xbf16>, vector<128x8xbf16>, vector<128x8xf32> -> vector<128x8xf32>
    %c0_21 = arith.constant 0 : index
    %c0_22 = arith.constant 0 : index
    %30 = vector.load %arg8[%c0_21, %c0_22] : memref<128x8xbf16, #tpu.memory_space<vmem>>, vector<128x8xbf16>
    %31 = arith.extf %30 : vector<128x8xbf16> to vector<128x8xf32>
    %32 = vector.broadcast %23 : vector<128x1xf32> to vector<128x8xf32>
    %33 = arith.mulf %31, %32 : vector<128x8xf32>
    %34 = arith.truncf %33 : vector<128x8xf32> to vector<128x8xbf16>
    %cst_23 = arith.constant dense<0.000000e+00> : vector<128x8xf32>
    %35 = tpu.matmul %8, %34, %cst_23 {dimension_numbers = #tpu.dot_dimension_numbers<[1], [0], [0], [1], [0, 0, 1, 1], [], []>} : vector<128x128xbf16>, vector<128x8xbf16>, vector<128x8xf32> -> vector<128x8xf32>
    %36 = vector.broadcast %21 : vector<128x1xf32> to vector<128x8xf32>
    %37 = arith.addf %36, %29 : vector<128x8xf32>
    %cst_24 = arith.constant 0.00999999977 : f32
    %38 = vector.broadcast %cst_24 : f32 to vector<128x8xf32>
    %39 = arith.mulf %38, %37 : vector<128x8xf32>
    %40 = arith.maximumf %37, %39 : vector<128x8xf32>
    %cst_25 = arith.constant 1.000000e+00 : f32
    %41 = vector.shape_cast %13 : vector<128x1xi1> to vector<128x1xi1>
    %42 = vector.broadcast %41 : vector<128x1xi1> to vector<128x8xi1>
    %43 = vector.broadcast %cst_25 : f32 to vector<128x8xf32>
    %44 = arith.select %42, %43, %6 : vector<128x8xi1>, vector<128x8xf32>
    %cst_26 = arith.constant 0.000000e+00 : f32
    %45 = vector.broadcast %cst_26 : f32 to vector<128x8xf32>
    %46 = arith.cmpf ogt, %44, %45 : vector<128x8xf32>
    %cst_27 = arith.constant 0xFF800000 : f32
    %47 = vector.broadcast %cst_27 : f32 to vector<128x8xf32>
    %48 = arith.select %46, %40, %47 : vector<128x8xi1>, vector<128x8xf32>
    %cst_28 = arith.constant dense<0xFF800000> : vector<128xf32>
    %49 = vector.multi_reduction <maximumf>, %48, %cst_28 [1] : vector<128x8xf32> to vector<128xf32>
    %50 = vector.shape_cast %49 : vector<128xf32> to vector<128x1xf32>
    %51 = vector.broadcast %50 : vector<128x1xf32> to vector<128x8xf32>
    %52 = arith.subf %48, %51 : vector<128x8xf32>
    %53 = math.exp %52 : vector<128x8xf32>
    %cst_29 = arith.constant dense<0.000000e+00> : vector<128xf32>
    %54 = vector.multi_reduction <add>, %53, %cst_29 [1] : vector<128x8xf32> to vector<128xf32>
    %55 = vector.shape_cast %54 : vector<128xf32> to vector<128x1xf32>
    %56 = vector.broadcast %55 : vector<128x1xf32> to vector<128x8xf32>
    %57 = arith.divf %53, %56 : vector<128x8xf32>
    %c0_30 = arith.constant 0 : index
    %c0_31 = arith.constant 0 : index
    %58 = vector.load %arg13[%c0_30, %c0_31] : memref<8x128xbf16, #tpu.memory_space<vmem>>, vector<8x128xbf16>
    %59 = arith.truncf %57 : vector<128x8xf32> to vector<128x8xbf16>
    %cst_32 = arith.constant dense<0.000000e+00> : vector<128x128xf32>
    %60 = tpu.matmul %59, %58, %cst_32 {dimension_numbers = #tpu.dot_dimension_numbers<[1], [0], [0], [1], [0, 0, 1, 1], [], []>} : vector<128x8xbf16>, vector<8x128xbf16>, vector<128x128xf32> -> vector<128x128xf32>
    %61 = arith.extf %7 : vector<128x128xbf16> to vector<128x128xf32>
    %62 = arith.mulf %60, %61 : vector<128x128xf32>
    %63 = arith.truncf %62 : vector<128x128xf32> to vector<128x128xbf16>
    %64 = arith.truncf %18 : vector<128x16xf32> to vector<128x16xbf16>
    %cst_33 = arith.constant dense<0.000000e+00> : vector<128x16xf32>
    %65 = tpu.matmul %63, %64, %cst_33 {dimension_numbers = #tpu.dot_dimension_numbers<[1], [0], [0], [1], [0, 0, 1, 1], [], []>} : vector<128x128xbf16>, vector<128x16xbf16>, vector<128x16xf32> -> vector<128x16xf32>
    %c0_34 = arith.constant 0 : index
    %c0_35 = arith.constant 0 : index
    %66 = vector.load %arg10[%c0_34, %c0_35] : memref<64x8xbf16, #tpu.memory_space<vmem>>, vector<64x8xbf16>
    %cst_36 = arith.constant dense<0.000000e+00> : vector<128x8xf32>
    %67 = tpu.matmul %2, %66, %cst_36 {dimension_numbers = #tpu.dot_dimension_numbers<[1], [0], [0], [1], [0, 0, 1, 1], [], []>} : vector<128x64xbf16>, vector<64x8xbf16>, vector<128x8xf32> -> vector<128x8xf32>
    %68 = vector.broadcast %22 : vector<128x1xf32> to vector<128x8xf32>
    %69 = arith.addf %68, %35 : vector<128x8xf32>
    %70 = arith.addf %69, %67 : vector<128x8xf32>
    %cst_37 = arith.constant 0.00999999977 : f32
    %71 = vector.broadcast %cst_37 : f32 to vector<128x8xf32>
    %72 = arith.mulf %71, %70 : vector<128x8xf32>
    %73 = arith.maximumf %70, %72 : vector<128x8xf32>
    %cst_38 = arith.constant 1.000000e+00 : f32
    %74 = vector.shape_cast %13 : vector<128x1xi1> to vector<128x1xi1>
    %75 = vector.broadcast %74 : vector<128x1xi1> to vector<128x8xi1>
    %76 = vector.broadcast %cst_38 : f32 to vector<128x8xf32>
    %77 = arith.select %75, %76, %4 : vector<128x8xi1>, vector<128x8xf32>
    %cst_39 = arith.constant 0.000000e+00 : f32
    %78 = vector.broadcast %cst_39 : f32 to vector<128x8xf32>
    %79 = arith.cmpf ogt, %77, %78 : vector<128x8xf32>
    %cst_40 = arith.constant 0xFF800000 : f32
    %80 = vector.broadcast %cst_40 : f32 to vector<128x8xf32>
    %81 = arith.select %79, %73, %80 : vector<128x8xi1>, vector<128x8xf32>
    %cst_41 = arith.constant dense<0xFF800000> : vector<128xf32>
    %82 = vector.multi_reduction <maximumf>, %81, %cst_41 [1] : vector<128x8xf32> to vector<128xf32>
    %83 = vector.shape_cast %82 : vector<128xf32> to vector<128x1xf32>
    %84 = vector.broadcast %83 : vector<128x1xf32> to vector<128x8xf32>
    %85 = arith.subf %81, %84 : vector<128x8xf32>
    %86 = math.exp %85 : vector<128x8xf32>
    %cst_42 = arith.constant dense<0.000000e+00> : vector<128xf32>
    %87 = vector.multi_reduction <add>, %86, %cst_42 [1] : vector<128x8xf32> to vector<128xf32>
    %88 = vector.shape_cast %87 : vector<128xf32> to vector<128x1xf32>
    %89 = vector.broadcast %88 : vector<128x1xf32> to vector<128x8xf32>
    %90 = arith.divf %86, %89 : vector<128x8xf32>
    %c0_43 = arith.constant 0 : index
    %c0_44 = arith.constant 0 : index
    %91 = vector.load %arg14[%c0_43, %c0_44] : memref<8x128xbf16, #tpu.memory_space<vmem>>, vector<8x128xbf16>
    %92 = arith.truncf %90 : vector<128x8xf32> to vector<128x8xbf16>
    %cst_45 = arith.constant dense<0.000000e+00> : vector<128x128xf32>
    %93 = tpu.matmul %92, %91, %cst_45 {dimension_numbers = #tpu.dot_dimension_numbers<[1], [0], [0], [1], [0, 0, 1, 1], [], []>} : vector<128x8xbf16>, vector<8x128xbf16>, vector<128x128xf32> -> vector<128x128xf32>
    %94 = arith.extf %8 : vector<128x128xbf16> to vector<128x128xf32>
    %95 = arith.mulf %93, %94 : vector<128x128xf32>
    %c0_46 = arith.constant 0 : index
    %c0_47 = arith.constant 0 : index
    %96 = vector.load %arg11[%c0_46, %c0_47] : memref<8x64xbf16, #tpu.memory_space<vmem>>, vector<8x64xbf16>
    %97 = arith.truncf %90 : vector<128x8xf32> to vector<128x8xbf16>
    %cst_48 = arith.constant dense<0.000000e+00> : vector<128x64xf32>
    %98 = tpu.matmul %97, %96, %cst_48 {dimension_numbers = #tpu.dot_dimension_numbers<[1], [0], [0], [1], [0, 0, 1, 1], [], []>} : vector<128x8xbf16>, vector<8x64xbf16>, vector<128x64xf32> -> vector<128x64xf32>
    %99 = arith.extf %2 : vector<128x64xbf16> to vector<128x64xf32>
    %100 = arith.mulf %98, %99 : vector<128x64xf32>
    %c0_49 = arith.constant 0 : index
    %c0_50 = arith.constant 0 : index
    %101 = vector.load %arg12[%c0_49, %c0_50] : memref<64x16xbf16, #tpu.memory_space<vmem>>, vector<64x16xbf16>
    %102 = arith.truncf %100 : vector<128x64xf32> to vector<128x64xbf16>
    %cst_51 = arith.constant dense<0.000000e+00> : vector<128x16xf32>
    %103 = tpu.matmul %102, %101, %cst_51 {dimension_numbers = #tpu.dot_dimension_numbers<[1], [0], [0], [1], [0, 0, 1, 1], [], []>} : vector<128x64xbf16>, vector<64x16xbf16>, vector<128x16xf32> -> vector<128x16xf32>
    %104 = arith.truncf %95 : vector<128x128xf32> to vector<128x128xbf16>
    %105 = arith.truncf %19 : vector<128x16xf32> to vector<128x16xbf16>
    %cst_52 = arith.constant dense<0.000000e+00> : vector<128x16xf32>
    %106 = tpu.matmul %104, %105, %cst_52 {dimension_numbers = #tpu.dot_dimension_numbers<[1], [0], [0], [1], [0, 0, 1, 1], [], []>} : vector<128x128xbf16>, vector<128x16xbf16>, vector<128x16xf32> -> vector<128x16xf32>
    %107 = arith.addf %106, %103 : vector<128x16xf32>
    %108 = arith.addf %107, %18 : vector<128x16xf32>
    %c0_53 = arith.constant 0 : index
    %c0_54 = arith.constant 0 : index
    %109 = vector.load %arg16[%c0_53, %c0_54] : memref<3x32xf32, #tpu.memory_space<vmem>>, vector<1x32xf32>
    %c1 = arith.constant 1 : index
    %c0_55 = arith.constant 0 : index
    %110 = vector.load %arg16[%c1, %c0_55] : memref<3x32xf32, #tpu.memory_space<vmem>>, vector<1x32xf32>
    %c2 = arith.constant 2 : index
    %c0_56 = arith.constant 0 : index
    %111 = vector.load %arg16[%c2, %c0_56] : memref<3x32xf32, #tpu.memory_space<vmem>>, vector<1x16xf32>
    %c0_57 = arith.constant 0 : index
    %c0_58 = arith.constant 0 : index
    %112 = vector.load %arg15[%c0_57, %c0_58] : memref<96x32xbf16, #tpu.memory_space<vmem>>, vector<16x32xbf16>
    %113 = arith.truncf %65 : vector<128x16xf32> to vector<128x16xbf16>
    %cst_59 = arith.constant dense<0.000000e+00> : vector<128x32xf32>
    %114 = tpu.matmul %113, %112, %cst_59 {dimension_numbers = #tpu.dot_dimension_numbers<[1], [0], [0], [1], [0, 0, 1, 1], [], []>} : vector<128x16xbf16>, vector<16x32xbf16>, vector<128x32xf32> -> vector<128x32xf32>
    %c16_60 = arith.constant 16 : index
    %c0_61 = arith.constant 0 : index
    %115 = vector.load %arg15[%c16_60, %c0_61] : memref<96x32xbf16, #tpu.memory_space<vmem>>, vector<16x32xbf16>
    %116 = arith.truncf %108 : vector<128x16xf32> to vector<128x16xbf16>
    %cst_62 = arith.constant dense<0.000000e+00> : vector<128x32xf32>
    %117 = tpu.matmul %116, %115, %cst_62 {dimension_numbers = #tpu.dot_dimension_numbers<[1], [0], [0], [1], [0, 0, 1, 1], [], []>} : vector<128x16xbf16>, vector<16x32xbf16>, vector<128x32xf32> -> vector<128x32xf32>
    %118 = arith.addf %114, %117 : vector<128x32xf32>
    %119 = vector.broadcast %109 : vector<1x32xf32> to vector<128x32xf32>
    %120 = arith.addf %118, %119 : vector<128x32xf32>
    %cst_63 = arith.constant 0.000000e+00 : f32
    %121 = vector.broadcast %cst_63 : f32 to vector<128x32xf32>
    %122 = arith.cmpf ogt, %120, %121 : vector<128x32xf32>
    %123 = math.exp %120 : vector<128x32xf32>
    %cst_64 = arith.constant 1.000000e+00 : f32
    %124 = vector.broadcast %cst_64 : f32 to vector<128x32xf32>
    %125 = arith.subf %123, %124 : vector<128x32xf32>
    %126 = arith.select %122, %120, %125 : vector<128x32xi1>, vector<128x32xf32>
    %c32 = arith.constant 32 : index
    %c0_65 = arith.constant 0 : index
    %127 = vector.load %arg15[%c32, %c0_65] : memref<96x32xbf16, #tpu.memory_space<vmem>>, vector<32x32xbf16>
    %128 = arith.truncf %126 : vector<128x32xf32> to vector<128x32xbf16>
    %cst_66 = arith.constant dense<0.000000e+00> : vector<128x32xf32>
    %129 = tpu.matmul %128, %127, %cst_66 {dimension_numbers = #tpu.dot_dimension_numbers<[1], [0], [0], [1], [0, 0, 1, 1], [], []>} : vector<128x32xbf16>, vector<32x32xbf16>, vector<128x32xf32> -> vector<128x32xf32>
    %130 = vector.broadcast %110 : vector<1x32xf32> to vector<128x32xf32>
    %131 = arith.addf %129, %130 : vector<128x32xf32>
    %cst_67 = arith.constant 0.000000e+00 : f32
    %132 = vector.broadcast %cst_67 : f32 to vector<128x32xf32>
    %133 = arith.cmpf ogt, %131, %132 : vector<128x32xf32>
    %134 = math.exp %131 : vector<128x32xf32>
    %cst_68 = arith.constant 1.000000e+00 : f32
    %135 = vector.broadcast %cst_68 : f32 to vector<128x32xf32>
    %136 = arith.subf %134, %135 : vector<128x32xf32>
    %137 = arith.select %133, %131, %136 : vector<128x32xi1>, vector<128x32xf32>
    %c64 = arith.constant 64 : index
    %c0_69 = arith.constant 0 : index
    %138 = vector.load %arg15[%c64, %c0_69] : memref<96x32xbf16, #tpu.memory_space<vmem>>, vector<32x16xbf16>
    %139 = arith.truncf %137 : vector<128x32xf32> to vector<128x32xbf16>
    %cst_70 = arith.constant dense<0.000000e+00> : vector<128x16xf32>
    %140 = tpu.matmul %139, %138, %cst_70 {dimension_numbers = #tpu.dot_dimension_numbers<[1], [0], [0], [1], [0, 0, 1, 1], [], []>} : vector<128x32xbf16>, vector<32x16xbf16>, vector<128x16xf32> -> vector<128x16xf32>
    %141 = vector.broadcast %111 : vector<1x16xf32> to vector<128x16xf32>
    %142 = arith.addf %140, %141 : vector<128x16xf32>
    %cst_71 = arith.constant 0.000000e+00 : f32
    %143 = vector.shape_cast %13 : vector<128x1xi1> to vector<128x1xi1>
    %144 = vector.broadcast %143 : vector<128x1xi1> to vector<128x16xi1>
    %145 = vector.broadcast %cst_71 : f32 to vector<128x16xf32>
    %146 = arith.select %144, %145, %142 : vector<128x16xi1>, vector<128x16xf32>
    %c0_72 = arith.constant 0 : index
    %c0_73 = arith.constant 0 : index
    %147 = vector.load %arg17[%c0_72, %c0_73] : memref<128x16xf32, #tpu.memory_space<vmem>>, vector<128x16xf32>
    tpu.vector_store %arg17[%c0_72, %c0_73], %146 {strides = array<i32>} : memref<128x16xf32, #tpu.memory_space<vmem>>, vector<128x16xf32>,
    return
  }
  func.func @transform_0(%arg0: i32) -> (i32, i32) {
    %c0_i32 = arith.constant 0 : i32
    %c0_i32_0 = arith.constant 0 : i32
    return %arg0, %c0_i32 : i32, i32
  }
  func.func @transform_1(%arg0: i32) -> (i32, i32) {
    %c0_i32 = arith.constant 0 : i32
    %c0_i32_0 = arith.constant 0 : i32
    return %arg0, %c0_i32 : i32, i32
  }
  func.func @transform_2(%arg0: i32) -> (i32, i32) {
    %c0_i32 = arith.constant 0 : i32
    %c0_i32_0 = arith.constant 0 : i32
    return %arg0, %c0_i32 : i32, i32
  }
  func.func @transform_3(%arg0: i32) -> (i32, i32) {
    %c0_i32 = arith.constant 0 : i32
    %c0_i32_0 = arith.constant 0 : i32
    return %arg0, %c0_i32 : i32, i32
  }
  func.func @transform_4(%arg0: i32) -> (i32, i32) {
    %c0_i32 = arith.constant 0 : i32
    %c0_i32_0 = arith.constant 0 : i32
    return %arg0, %c0_i32 : i32, i32
  }
  func.func @transform_5(%arg0: i32) -> (i32, i32) {
    %c0_i32 = arith.constant 0 : i32
    %c0_i32_0 = arith.constant 0 : i32
    %c0_i32_1 = arith.constant 0 : i32
    return %c0_i32, %c0_i32_0 : i32, i32
  }
  func.func @transform_6(%arg0: i32) -> (i32, i32) {
    %c0_i32 = arith.constant 0 : i32
    %c0_i32_0 = arith.constant 0 : i32
    %c0_i32_1 = arith.constant 0 : i32
    return %c0_i32, %c0_i32_0 : i32, i32
  }
  func.func @transform_7(%arg0: i32) -> (i32, i32) {
    %c0_i32 = arith.constant 0 : i32
    %c0_i32_0 = arith.constant 0 : i32
    %c0_i32_1 = arith.constant 0 : i32
    return %c0_i32, %c0_i32_0 : i32, i32
  }
  func.func @transform_8(%arg0: i32) -> (i32, i32) {
    %c0_i32 = arith.constant 0 : i32
    %c0_i32_0 = arith.constant 0 : i32
    %c0_i32_1 = arith.constant 0 : i32
    return %c0_i32, %c0_i32_0 : i32, i32
  }
  func.func @transform_9(%arg0: i32) -> (i32, i32) {
    %c0_i32 = arith.constant 0 : i32
    %c0_i32_0 = arith.constant 0 : i32
    %c0_i32_1 = arith.constant 0 : i32
    return %c0_i32, %c0_i32_0 : i32, i32
  }
  func.func @transform_10(%arg0: i32) -> (i32, i32) {
    %c0_i32 = arith.constant 0 : i32
    %c0_i32_0 = arith.constant 0 : i32
    %c0_i32_1 = arith.constant 0 : i32
    return %c0_i32, %c0_i32_0 : i32, i32
  }
  func.func @transform_11(%arg0: i32) -> (i32, i32) {
    %c0_i32 = arith.constant 0 : i32
    %c0_i32_0 = arith.constant 0 : i32
    %c0_i32_1 = arith.constant 0 : i32
    return %c0_i32, %c0_i32_0 : i32, i32
  }
  func.func @transform_12(%arg0: i32) -> (i32, i32) {
    %c0_i32 = arith.constant 0 : i32
    %c0_i32_0 = arith.constant 0 : i32
    %c0_i32_1 = arith.constant 0 : i32
    return %c0_i32, %c0_i32_0 : i32, i32
  }
  func.func @transform_13(%arg0: i32) -> (i32, i32) {
    %c0_i32 = arith.constant 0 : i32
    %c0_i32_0 = arith.constant 0 : i32
    %c0_i32_1 = arith.constant 0 : i32
    return %c0_i32, %c0_i32_0 : i32, i32
  }
  func.func @transform_14(%arg0: i32) -> (i32, i32) {
    %c0_i32 = arith.constant 0 : i32
    %c0_i32_0 = arith.constant 0 : i32
    %c0_i32_1 = arith.constant 0 : i32
    return %c0_i32, %c0_i32_0 : i32, i32
  }
  func.func @transform_15(%arg0: i32) -> (i32, i32) {
    %c0_i32 = arith.constant 0 : i32
    %c0_i32_0 = arith.constant 0 : i32
    %c0_i32_1 = arith.constant 0 : i32
    return %c0_i32, %c0_i32_0 : i32, i32
  }
  func.func @transform_16(%arg0: i32) -> (i32, i32) {
    %c0_i32 = arith.constant 0 : i32
    %c0_i32_0 = arith.constant 0 : i32
    return %arg0, %c0_i32 : i32, i32
  }
}

</mosaic_0001>

<bundles_post_ra>
// kernel: tpu_custom_call.1
= control target key start
LH: loop header
LB: loop body
LE: loop exit
PB: predicated region body
PF: predicated region fallthrough
CT: control target
= control target key end

     0   :  { %s5756_s21 = smov 0   ;;  %s7417_s0 = inlined_call_operand.vmem [shape: bf16[512,16], index: 0, kind: input, shape index: {}]   ;;  %s7418_s1 = inlined_call_operand.vmem [shape: bf16[512,16], index: 1, kind: input, shape index: {}]   ;;  %s7419_s2 = inlined_call_operand.vmem [shape: bf16[512,64], index: 2, kind: input, shape index: {}]   ;;  %s7420_s3 = inlined_call_operand.vmem [shape: bf16[512,8], index: 3, kind: input, shape index: {}]   ;;  %s7421_s4 = inlined_call_operand.vmem [shape: bf16[512,8], index: 4, kind: input, shape index: {}]   ;;  %s7422_s5 = inlined_call_operand.vmem [shape: bf16[128,256], index: 5, kind: input, shape index: {}]   ;;  %s7423_s6 = inlined_call_operand.vmem [shape: bf16[128,8], index: 6, kind: input, shape index: {}]   ;;  %s7424_s7 = inlined_call_operand.vmem [shape: bf16[128,8], index: 7, kind: input, shape index: {}]   ;;  %s7425_s8 = inlined_call_operand.vmem [shape: bf16[32,19], index: 8, kind: input, shape index: {}]   ;;  %s7426_s9 = inlined_call_operand.vmem [shape: bf16[64,8], index: 9, kind: input, shape index: {}]   ;;  %s7427_s10 = inlined_call_operand.vmem [shape: bf16[8,64], index: 10, kind: input, shape index: {}]   ;;  %s7428_s11 = inlined_call_operand.vmem [shape: bf16[64,16], index: 11, kind: input, shape index: {}]   ;;  %s7429_s12 = inlined_call_operand.vmem [shape: bf16[8,128], index: 12, kind: input, shape index: {}]   ;;  %s7430_s13 = inlined_call_operand.vmem [shape: bf16[8,128], index: 13, kind: input, shape index: {}]   ;;  %s7431_s14 = inlined_call_operand.vmem [shape: bf16[96,32], index: 14, kind: input, shape index: {}]   ;;  %s7432_s15 = inlined_call_operand.vmem [shape: f32[3,32], index: 15, kind: input, shape index: {}]   ;;  %s7433_s16 = inlined_call_operand.vmem [shape: f32[512,16], index: 16, kind: output, shape index: {}]  }
   0x1   :  { %7530 = sst [smem:[#allocation42_spill]] %s7417_s0 }
   0x2 LB: > { %s4413_s22 = sadd.s32 4294967295, %s5666_s21   ;;  %p4417_p0 = scmp.ge.s32.totalorder %s5666_s21, 1  ;;  %s5666_s21 = sphi %s5756_s21, %s26_s21  }
   0x3   : > { %p507_p1 = scmp.lt.s32.totalorder %s5666_s21, 5 }
   0x5   : > { %p508_p2 = pnand %p4417_p0, %p507_p1 }
   0x7   : > { %511 = sbr.rel (%p508_p2) target bundleno = 2981 (0xba5), region = 84 }
   0xe   : > { %v5369_v0 = vld [vmem:[%s7425_s8] sm:$0xff]   ;;  %s4418_s25 = sshll.u32 %s4413_s22, 4  ;;  %v5668_v1 = vmov 16   ;;  %vm7476_vm0 = vcmask 130048   ;;  %s7531_s29 = sld [smem:[#allocation42_spill]]  ;;  %v5669_v34 = vmov 17  }
   0xf   : > { %p578_p3 = scmp.lt.s32.totalorder %s4418_s25, 63  ;;  %4938 = vmatprep.subr.bf16.mxu0 %v5369_v0  ;;  %5362 = vset.pattern.permute.xlu1 %v5668_v1  ;;  %v726_v35 = vld [vmem:[%s7422_s5] sm:$0xf]  ;;  %v727_v36 = vld [vmem:[%s7422_s5 + $0x8] sm:$0xf]  ;;  %vm774_vm1 = vcmask 64512  }
  0x10   : > { %4939 = vmatpush3.bf16.msra.mxu0 %v5369_v0  ;;  %5361 = vset.pattern.permute.xlu0 %v5668_v1  ;;  %v4464_v37 = vcombine.low %v726_v35, %v727_v36 }
  0x11   : > { %s7715_s25 = smov (!%p578_p3, %s4418_s25), 63 }
  0x12   : > { %s5772_s26 = sshll.u32 %s7715_s25, 2  ;;  %s4429_s22 = sshll.u32 %s7715_s25, 3 }
  0x13   : > { %s5876_s23 = scalar_lea.vmem %s7420_s3, %s5772_s26  ;;  %s6037_s24 = scalar_lea.vmem %s7418_s1, %s5772_s26 }
  0x14   : > { %s581_s30 = scalar_lea.vmem %s7531_s29, %s5772_s26  ;;  %v5879_v38 = vld [vmem:[%s5876_s23] sm:$0xff]   ;;  %v5883_v40 = vld [vmem:[%s5876_s23 + $0x8] sm:$0xff]   ;;  %v5894_v47 = vld [vmem:[%s5876_s23 + $0x10] sm:$0xff]   ;;  %s6107_s29 = scalar_lea.vmem %s7421_s4, %s5772_s26 }
  0x15   : > { %v5370_v2 = vld [vmem:[%s581_s30] sm:$0xff]   ;;  %v5371_v3 = vld [vmem:[%s581_s30 + $0x8] sm:$0xff]   ;;  %v5372_v4 = vld [vmem:[%s581_s30 + $0x10] sm:$0xff]   ;;  %7538 = vst [vmem:[#allocation8_spill] sm:$0xff] %v5879_v38  ;;  %v7449_v39 = vunpack.c.l.bf16 %v5879_v38  ;;  %v7448_v42 = vunpack.c.l.bf16 %v5883_v40  ;;  %v7447_v43 = vunpack.c.h.bf16 %v5879_v38  ;;  %v7446_v46 = vunpack.c.h.bf16 %v5883_v40  ;;  %s6645_s27 = scalar_lea.vmem %s7419_s2, %s5772_s26 }
  0x16   : > { %4940 = vmatprep.mubr.msk.bf16.mxu0 %vm7476_vm0, %v5370_v2  ;;  %v5373_v5 = vld [vmem:[%s581_s30 + $0x18] sm:$0xff]   ;;  %v5374_v6 = vld [vmem:[%s581_s30 + $0x20] sm:$0xff]   ;;  %v5375_v7 = vld [vmem:[%s581_s30 + $0x28] sm:$0xff]   ;;  %7539 = vst [vmem:[#allocation9_spill] sm:$0xff] %v5883_v40  ;;  %v7445_v49 = vunpack.c.l.bf16 %v5894_v47  ;;  %v7443_v52 = vunpack.c.h.bf16 %v5894_v47 }
  0x17   : > { %4941 = vmatmul.mubr.msk.bf16.vlgmr.msra.gmra.mrb[0].mxu0 %vm7476_vm0, %v5371_v3  ;;  %v5376_v8 = vld [vmem:[%s581_s30 + $0x30] sm:$0xff]   ;;  %v5377_v9 = vld [vmem:[%s581_s30 + $0x38] sm:$0xff]   ;;  %v758_v41 = vand.u32 2147483647, %v7449_v39  ;;  %v760_v45 = vand.u32 2147483647, %v7448_v42 }
  0x18   : > { %4944 = vmatprep.mubr.msk.bf16.mxu0 %vm7476_vm0, %v5372_v4  ;;  %7540 = vst [vmem:[#allocation10_spill] sm:$0xff] %v5894_v47  ;;  %v759_v48 = vand.u32 2147483647, %v7447_v43  ;;  %v761_v51 = vand.u32 2147483647, %v7446_v46  ;;  %v5904_v53 = vld [vmem:[%s5876_s23 + $0x18] sm:$0xff]  }
  0x19   : > { %v775_v44 = vsel %vm774_vm1, %v758_v41, -inf  ;;  %v781_v50 = vsel %vm774_vm1, %v760_v45, -inf  ;;  %7541 = vst [vmem:[#allocation11_spill] sm:$0xff] %v5904_v53  ;;  %v5907_v54 = vld [vmem:[%s5876_s23 + $0x20] sm:$0xff]   ;;  %v762_v56 = vand.u32 2147483647, %v7445_v49  ;;  %v7444_v57 = vunpack.c.l.bf16 %v5904_v53 }
  0x1a   : > { %7542 = vst [vmem:[#allocation12_spill] sm:$0xff] %v5907_v54  ;;  %v778_v55 = vsel %vm774_vm1, %v759_v48, -inf  ;;  %v784_v58 = vsel %vm774_vm1, %v761_v51, -inf  ;;  %v763_v59 = vand.u32 2147483647, %v7443_v52  ;;  %v7441_v60 = vunpack.c.h.bf16 %v5907_v54  ;;  %v5918_v61 = vld [vmem:[%s5876_s23 + $0x28] sm:$0xff]  }
  0x1b   : > { %7543 = vst [vmem:[#allocation13_spill] sm:$0xff] %v5918_v61  ;;  %v787_v62 = vsel %vm774_vm1, %v762_v56, -inf  ;;  %v764_v63 = vand.u32 2147483647, %v7444_v57  ;;  %v7442_v0 = vunpack.c.h.bf16 %v5904_v53  ;;  %v7435_v4 = vunpack.c.h.bf16 %v5918_v61  ;;  %v5941_v41 = vld [vmem:[%s5876_s23 + $0x30] sm:$0xff]   ;;  %v4676_v56 = vld [vmem:[%s7423_s6] sm:$0xff]  }
  0x1c   : > { %v790_v2 = vsel %vm774_vm1, %v763_v59, -inf  ;;  %v767_v3 = vand.u32 2147483647, %v7441_v60  ;;  %v7436_v36 = vunpack.c.l.bf16 %v5918_v61  ;;  %7544 = vst [vmem:[#allocation14_spill] sm:$0xff] %v5941_v41  ;;  %v7434_v48 = vunpack.c.h.bf16 %v5941_v41  ;;  %v4753_v59 = vld [vmem:[%s7423_s6 + $0x8] sm:$0xff]   ;;  %v4747_v49 = vld [vmem:[%s6107_s29 + $0x10] sm:$0xff]  }
  0x1d   : > { %v4746_v60 = vld [vmem:[%s6107_s29 + $0x8] sm:$0xff]   ;;  %v6122_v46 = vld [vmem:[%s6107_s29 + $0x20] sm:$0xff]   ;;  %v4654_v53 = vunpack.c.h.bf16 %v4747_v49 }
  0x1e   : > { %v768_v45 = vand.u32 2147483647, %v7436_v36  ;;  %v771_v51 = vand.u32 2147483647, %v7434_v48  ;;  %v4755_v36 = vld [vmem:[%s7423_s6 + $0x18] sm:$0xff]   ;;  %v4649_v57 = vunpack.c.l.bf16 %v4746_v60  ;;  %v4650_v39 = vunpack.c.h.bf16 %v4746_v60  ;;  %v6131_v40 = vld [vmem:[%s6107_s29 + $0x28] sm:$0xff]  }
  0x1f   : > { %4945 = vmatmul.mubr.msk.bf16.gmra.mrb[4].mxu0 %vm7476_vm0, %v5373_v5  ;;  %v793_v5 = vsel %vm774_vm1, %v764_v63, -inf  ;;  %v4677_v63 = vunpack.c.l.bf16 %v4676_v56  ;;  %v4662_v47 = vunpack.c.h.bf16 %v6122_v46 }
  0x20   : > { %4948 = vmatprep.mubr.msk.bf16.mxu0 %vm7476_vm0, %v5374_v6  ;;  %v765_v6 = vand.u32 2147483647, %v7442_v0 }
  0x27   : > { %4949 = vmatmul.mubr.msk.bf16.gmra.mrb[8].mxu0 %vm7476_vm0, %v5375_v7  ;;  %v7437_v7 = vunpack.c.l.bf16 %v5907_v54 }
  0x28   : > { %4952 = vmatprep.mubr.msk.bf16.mxu0 %vm7476_vm0, %v5376_v8  ;;  %v802_v8 = vsel %vm774_vm1, %v767_v3, -inf  ;;  %v4678_v3 = vunpack.c.h.bf16 %v4676_v56 }
  0x29   : > { %v766_v35 = vand.u32 2147483647, %v7437_v7 }
  0x2f   : > { %4953 = vmatmul.mubr.msk.bf16.gmra.mrb[12].mxu0 %vm7476_vm0, %v5377_v9  ;;  %v769_v9 = vand.u32 2147483647, %v7435_v4 }
  0x30   : > { %4990 = vmatprep.mubr.bf16.mxu0 %v4464_v37 }
  0x31   : > { %v808_v37 = vsel %vm774_vm1, %v769_v9, -inf  ;;  %v5968_v9 = vld [vmem:[%s5876_s23 + $0x38] sm:$0xff]  }
  0x32   : > { %7545 = vst [vmem:[#allocation15_spill] sm:$0xff] %v5968_v9 }
  0xea   : > { %v5786_v10 = vpop.f32.mrb[0].mxu0 }
  0xeb   : > { %1222 = vperm.xlu1 %5362, %v5786_v10   ;;  %v5789_v11 = vpop.f32.mrb[1].mxu0 }
  0xec   : > { %1212 = vperm.xlu0 %5361, %v5789_v11   ;;  %v5792_v12 = vpop.f32.mrb[2].mxu0 }
  0xed   : > { %v5794_v13 = vpop.f32.mrb[3].mxu0  ;;  %v5798_v14 = vpack.c.bf16 %v5792_v12, %v5786_v10 }
  0xee   : > { %v5802_v15 = vpack.c.bf16 %v5794_v13, %v5789_v11 }
  0xef   : > { %1227 = vperm.xlu1 %5362, %v5792_v12  }
  0xf0   : > { %1217 = vperm.xlu0 %5361, %v5794_v13  }
  0xf2   : > { %v5806_v16 = vpop.f32.mrb[4].mxu0 }
  0xf3   : > { %v5808_v17 = vpop.f32.mrb[5].mxu0 }
  0xf4   : > { %1232 = vperm.xlu0 %5361, %v5808_v17   ;;  %v5811_v18 = vpop.f32.mrb[6].mxu0 }
  0xf5   : > { %v5813_v19 = vpop.f32.mrb[7].mxu0  ;;  %v5817_v20 = vpack.c.bf16 %v5811_v18, %v5806_v16 }
  0xf6   : > { %1237 = vperm.xlu1 %5362, %v5813_v19   ;;  %v5822_v21 = vpack.c.bf16 %v5813_v19, %v5808_v17 }
  0xf7   : > { %7532 = vst [vmem:[#allocation2_spill] sm:$0xff] %v5817_v20 }
  0xf8   : > { %7533 = vst [vmem:[#allocation3_spill] sm:$0xff] %v5822_v21  ;;  %1242 = vperm.xlu0 %5361, %v5806_v16  }
  0xfa   : > { %1247 = vperm.xlu1 %5362, %v5811_v18   ;;  %v5826_v22 = vpop.f32.mrb[8].mxu0 }
  0xfb   : > { %v5828_v23 = vpop.f32.mrb[9].mxu0 }
  0xfc   : > { %1252 = vperm.xlu0 %5361, %v5828_v23   ;;  %v5831_v24 = vpop.f32.mrb[10].mxu0 }
  0xfd   : > { %v5833_v25 = vpop.f32.mrb[11].mxu0  ;;  %v5837_v26 = vpack.c.bf16 %v5831_v24, %v5826_v22 }
  0xfe   : > { %1257 = vperm.xlu1 %5362, %v5833_v25   ;;  %v5842_v27 = vpack.c.bf16 %v5833_v25, %v5828_v23 }
  0xff   : > { %7534 = vst [vmem:[#allocation4_spill] sm:$0xff] %v5837_v26  ;;  %v4653_v26 = vunpack.c.l.bf16 %v4747_v49 }
 0x100   : > { %7535 = vst [vmem:[#allocation5_spill] sm:$0xff] %v5842_v27  ;;  %1262 = vperm.xlu0 %5361, %v5826_v22   ;;  %v4748_v27 = vld [vmem:[%s6107_s29 + $0x18] sm:$0xff]  }
 0x102   : > { %1267 = vperm.xlu1 %5362, %v5831_v24   ;;  %v5846_v28 = vpop.f32.mrb[12].mxu0 }
 0x103   : > { %v5848_v29 = vpop.f32.mrb[13].mxu0 }
 0x104   : > { %1272 = vperm.xlu0 %5361, %v5848_v29   ;;  %v5851_v30 = vpop.f32.mrb[14].mxu0 }
 0x105   : > { %v5853_v31 = vpop.f32.mrb[15].mxu0  ;;  %v5857_v32 = vpack.c.bf16 %v5851_v30, %v5846_v28 }
 0x106   : > { %1277 = vperm.xlu1 %5362, %v5853_v31   ;;  %v5862_v33 = vpack.c.bf16 %v5853_v31, %v5848_v29 }
 0x107   : > { %7536 = vst [vmem:[#allocation6_spill] sm:$0xff] %v5857_v32 }
 0x108   : > { %7537 = vst [vmem:[#allocation7_spill] sm:$0xff] %v5862_v33  ;;  %1282 = vperm.xlu0 %5361, %v5846_v28  }
 0x10a   : > { %1287 = vperm.xlu1 %5362, %v5851_v30  }
 0x10c   : > { %5363 = vset.pattern.permute.xlu0 %v5669_v34 }
 0x10e   : > { %5364 = vset.pattern.permute.xlu1 %v5669_v34  ;;  %v796_v34 = vsel %vm774_vm1, %v765_v6, -inf  ;;  %v4681_v6 = vunpack.c.l.bf16 %v4753_v59 }
 0x127   : > { %776 = vmax.xlane.f32.xlu0 %v775_v44  ;;  %v799_v44 = vsel %vm774_vm1, %v766_v35, -inf  ;;  %v4754_v35 = vld [vmem:[%s7423_s6 + $0x10] sm:$0xff]  }
 0x128   : > { %v4686_v48 = vunpack.c.h.bf16 %v4754_v35 }
 0x12b   : > { %782 = vmax.xlane.f32.xlu0 %v781_v50  ;;  %v805_v50 = vsel %vm774_vm1, %v768_v45, -inf }
 0x12e   : > { %779 = vmax.xlane.f32.xlu1 %v778_v55  ;;  %v814_v55 = vsel %vm774_vm1, %v771_v51, -inf  ;;  %v7439_v51 = vunpack.c.l.bf16 %v5968_v9 }
 0x12f   : > { %785 = vmax.xlane.f32.xlu0 %v784_v58 }
 0x132   : > { %788 = vmax.xlane.f32.xlu1 %v787_v62 }
 0x133   : > { %791 = vmax.xlane.f32.xlu0 %v790_v2  ;;  %v4682_v2 = vunpack.c.h.bf16 %v4753_v59  ;;  %v4685_v59 = vunpack.c.l.bf16 %v4754_v35 }
 0x136   : > { %794 = vmax.xlane.f32.xlu1 %v793_v5  ;;  %v7440_v5 = vunpack.c.l.bf16 %v5941_v41 }
 0x137   : > { %803 = vmax.xlane.f32.xlu0 %v802_v8 }
 0x13a   : > { %797 = vmax.xlane.f32.xlu1 %v796_v34 }
 0x13b   : > { %809 = vmax.xlane.f32.xlu0 %v808_v37 }
 0x13e   : > { %800 = vmax.xlane.f32.xlu1 %v799_v44 }
 0x142   : > { %806 = vmax.xlane.f32.xlu1 %v805_v50  ;;  %v770_v50 = vand.u32 2147483647, %v7440_v5 }
 0x146   : > { %815 = vmax.xlane.f32.xlu1 %v814_v55 }
 0x151   : > { %1745 = vperm.xlu0 %5363, %v5794_v13  }
 0x155   : > { %1761 = vperm.xlu0 %5363, %v5813_v19  }
 0x157   : > { %1741 = vperm.xlu1 %5364, %v5789_v11  }
 0x159   : > { %1777 = vperm.xlu0 %5363, %v5833_v25  }
 0x15b   : > { %1749 = vperm.xlu1 %5364, %v5786_v10  }
 0x15f   : > { %1753 = vperm.xlu1 %5364, %v5792_v12  }
 0x163   : > { %1757 = vperm.xlu1 %5364, %v5808_v17  }
 0x167   : > { %1765 = vperm.xlu1 %5364, %v5806_v16  }
 0x16a   : > { %v1223_v58 = vpop.permute.xlu1 %1222 }
 0x16b   : > { %v1213_v62 = vpop.permute.xlu0 %1212  ;;  %1769 = vperm.xlu1 %5364, %v5811_v18   ;;  %v1292_v55 = vmul.f32 %v4681_v6, %v1223_v58  ;;  %v7438_v58 = vunpack.c.h.bf16 %v5968_v9 }
 0x16c   : > { %v1290_v37 = vmul.f32 %v4677_v63, %v1213_v62  ;;  %v811_v63 = vsel %vm774_vm1, %v770_v50, -inf }
 0x16e   : > { %v1228_v8 = vpop.permute.xlu1 %1227 }
 0x16f   : > { %v1218_v34 = vpop.permute.xlu0 %1217  ;;  %1773 = vperm.xlu1 %5364, %v5828_v23   ;;  %v1293_v44 = vmul.f32 %v4682_v2, %v1228_v8  ;;  %v772_v2 = vand.u32 2147483647, %v7439_v51  ;;  %v4689_v8 = vunpack.c.l.bf16 %v4755_v36 }
 0x170   : > { %v1291_v45 = vmul.f32 %v4678_v3, %v1218_v34  ;;  %v4690_v34 = vunpack.c.h.bf16 %v4755_v36 }
 0x171   : > { %v1307_v7 = vpack.c.bf16 %v1293_v44, %v1292_v55  ;;  %v817_v50 = vsel %vm774_vm1, %v772_v2, -inf }
 0x172   : > { %v1306_v56 = vpack.c.bf16 %v1291_v45, %v1290_v37  ;;  %v4756_v37 = vld [vmem:[%s7423_s6 + $0x20] sm:$0xff]  }
 0x173   : > { %v1233_v4 = vpop.permute.xlu0 %1232  ;;  %1781 = vperm.xlu1 %5364, %v5826_v22   ;;  %v4693_v36 = vunpack.c.l.bf16 %v4756_v37 }
 0x174   : > { %4974 = vmatprep.subr.bf16.mxu0 %v1306_v56  ;;  %v1294_v3 = vmul.f32 %v4685_v59, %v1233_v4  ;;  %v773_v4 = vand.u32 2147483647, %v7438_v58 }
 0x175   : > { %4975 = vmatpush3.bf16.msra.mxu0 %v1306_v56  ;;  %v1238_v62 = vpop.permute.xlu1 %1237  ;;  %v4694_v56 = vunpack.c.h.bf16 %v4756_v37  ;;  %v4758_v37 = vld [vmem:[%s7423_s6 + $0x30] sm:$0xff]  }
 0x176   : > { %v1295_v6 = vmul.f32 %v4686_v48, %v1238_v62  ;;  %4976 = vmatprep.subr.bf16.mxu0 %v1307_v7  ;;  %v4757_v62 = vld [vmem:[%s7423_s6 + $0x28] sm:$0xff]   ;;  %v820_v2 = vsel %vm774_vm1, %v773_v4, -inf  ;;  %v4701_v4 = vunpack.c.l.bf16 %v4758_v37 }
 0x177   : > { %v1243_v35 = vpop.permute.xlu0 %1242  ;;  %1785 = vperm.xlu1 %5364, %v5831_v24  }
 0x178   : > { %v1308_v44 = vpack.c.bf16 %v1295_v6, %v1294_v3  ;;  %812 = vmax.xlane.f32.xlu0 %v811_v63  ;;  %v1296_v48 = vmul.f32 %v4689_v8, %v1243_v35  ;;  %v4697_v8 = vunpack.c.l.bf16 %v4757_v62 }
 0x179   : > { %4977 = vmatpush3.bf16.msra.mxu0 %v1307_v7  ;;  %v1248_v45 = vpop.permute.xlu1 %1247 }
 0x17a   : > { %v1297_v55 = vmul.f32 %v4690_v34, %v1248_v45  ;;  %4978 = vmatprep.subr.bf16.mxu0 %v1308_v44  ;;  %v4698_v34 = vunpack.c.h.bf16 %v4757_v62 }
 0x17b   : > { %v1253_v59 = vpop.permute.xlu0 %1252  ;;  %1789 = vperm.xlu1 %5364, %v5848_v29  }
 0x17c   : > { %v1309_v63 = vpack.c.bf16 %v1297_v55, %v1296_v48  ;;  %818 = vmax.xlane.f32.xlu0 %v817_v50  ;;  %v1298_v3 = vmul.f32 %v4693_v36, %v1253_v59  ;;  %v4702_v55 = vunpack.c.h.bf16 %v4758_v37 }
 0x17d   : > { %4979 = vmatpush3.bf16.msra.mxu0 %v1308_v44  ;;  %v1258_v7 = vpop.permute.xlu1 %1257 }
 0x17e   : > { %v1299_v6 = vmul.f32 %v4694_v56, %v1258_v7  ;;  %4980 = vmatprep.subr.bf16.mxu0 %v1309_v63  ;;  %v4759_v56 = vld [vmem:[%s7423_s6 + $0x38] sm:$0xff]  }
 0x17f   : > { %v1263_v35 = vpop.permute.xlu0 %1262  ;;  %1797 = vperm.xlu1 %5364, %v5846_v28  }
 0x180   : > { %v1310_v45 = vpack.c.bf16 %v1299_v6, %v1298_v3  ;;  %821 = vmax.xlane.f32.xlu0 %v820_v2  ;;  %v1300_v44 = vmul.f32 %v4697_v8, %v1263_v35  ;;  %v4706_v2 = vunpack.c.h.bf16 %v4759_v56 }
 0x181   : > { %4981 = vmatpush3.bf16.msra.mxu0 %v1309_v63  ;;  %v1268_v50 = vpop.permute.xlu1 %1267  ;;  %v4705_v63 = vunpack.c.l.bf16 %v4759_v56  ;;  %v732_v56 = vld [vmem:[%s7422_s5 + $0x30] sm:$0xf] }
 0x182   : > { %v1301_v48 = vmul.f32 %v4698_v34, %v1268_v50  ;;  %4982 = vmatprep.subr.bf16.mxu0 %v1310_v45 }
 0x183   : > { %v1273_v36 = vpop.permute.xlu0 %1272  ;;  %1801 = vperm.xlu1 %5364, %v5851_v30  }
 0x184   : > { %v1311_v59 = vpack.c.bf16 %v1301_v48, %v1300_v44  ;;  %v1302_v7 = vmul.f32 %v4701_v4, %v1273_v36  ;;  %v729_v44 = vld [vmem:[%s7422_s5 + $0x18] sm:$0xf]  ;;  %v730_v48 = vld [vmem:[%s7422_s5 + $0x20] sm:$0xf]  ;;  %v731_v4 = vld [vmem:[%s7422_s5 + $0x28] sm:$0xf] }
 0x185   : > { %4983 = vmatpush3.bf16.msra.mxu0 %v1310_v45  ;;  %v1278_v62 = vpop.permute.xlu1 %1277  ;;  %v728_v45 = vld [vmem:[%s7422_s5 + $0x10] sm:$0xf]  ;;  %v4466_v36 = vcombine.low %v730_v48, %v731_v4  ;;  %v741_v48 = vld [vmem:[%s7422_s5 + $0x78] sm:$0xf] }
 0x186   : > { %v1303_v3 = vmul.f32 %v4702_v55, %v1278_v62  ;;  %4984 = vmatprep.subr.bf16.mxu0 %v1311_v59  ;;  %v4465_v55 = vcombine.low %v728_v45, %v729_v44  ;;  %v734_v62 = vld [vmem:[%s7422_s5 + $0x40] sm:$0xf]  ;;  %v740_v44 = vld [vmem:[%s7422_s5 + $0x70] sm:$0xf] }
 0x187   : > { %v1283_v6 = vpop.permute.xlu0 %1282  ;;  %5365 = vset.pattern.permute.xlu1 %v5668_v1  ;;  %v4471_v4 = vcombine.low %v740_v44, %v741_v48 }
 0x188   : > { %v1312_v8 = vpack.c.bf16 %v1303_v3, %v1302_v7  ;;  %v1304_v35 = vmul.f32 %v4705_v63, %v1283_v6  ;;  %v735_v7 = vld [vmem:[%s7422_s5 + $0x48] sm:$0xf]  ;;  %v5387_v63 = vld [vmem:[%s6037_s24] sm:$0xff]  }
 0x189   : > { %4985 = vmatpush3.bf16.msra.mxu0 %v1311_v59  ;;  %v1288_v34 = vpop.permute.xlu1 %1287  ;;  %v733_v59 = vld [vmem:[%s7422_s5 + $0x38] sm:$0xf]  ;;  %v5386_v3 = vld [vmem:[%s7425_s8 + $0x8] sm:$0xff]   ;;  %4958 = vmatprep.mubr.msk.bf16.mxu1 %vm7476_vm0, %v5387_v63 }
 0x18a   : > { %v1305_v37 = vmul.f32 %v4706_v2, %v1288_v34  ;;  %4986 = vmatprep.subr.bf16.mxu0 %v1312_v8  ;;  %4956 = vmatprep.subr.bf16.mxu1 %v5386_v3  ;;  %v5388_v2 = vld [vmem:[%s6037_s24 + $0x8] sm:$0xff]   ;;  %v4467_v6 = vcombine.low %v732_v56, %v733_v59  ;;  %v736_v34 = vld [vmem:[%s7422_s5 + $0x50] sm:$0xf]  ;;  %v5391_v56 = vld [vmem:[%s6037_s24 + $0x20] sm:$0xff]  }
 0x18b   : > { %4957 = vmatpush3.bf16.msra.mxu1 %v5386_v3  ;;  %v5392_v59 = vld [vmem:[%s6037_s24 + $0x28] sm:$0xff]  }
 0x18c   : > { %v1313_v50 = vpack.c.bf16 %v1305_v37, %v1304_v35  ;;  %v737_v35 = vld [vmem:[%s7422_s5 + $0x58] sm:$0xf]  ;;  %v739_v37 = vld [vmem:[%s7422_s5 + $0x68] sm:$0xf] }
 0x18d   : > { %4987 = vmatpush3.bf16.msra.mxu0 %v1312_v8  ;;  %v4468_v8 = vcombine.low %v734_v62, %v735_v7  ;;  %v5393_v62 = vld [vmem:[%s6037_s24 + $0x30] sm:$0xff]   ;;  %v5394_v7 = vld [vmem:[%s6037_s24 + $0x38] sm:$0xff]  }
 0x18e   : > { %4988 = vmatprep.subr.bf16.mxu0 %v1313_v50  ;;  %4959 = vmatmul.mubr.msk.bf16.vlgmr.msra.gmra.mrb[0].mxu1 %vm7476_vm0, %v5388_v2 }
 0x191   : > { %4989 = vmatpush3.bf16.msra.mxu0 %v1313_v50  ;;  %v4469_v50 = vcombine.low %v736_v34, %v737_v35 }
 0x194   : > { %4991 = vmatmul.mubr.bf16.vlgmr.msra.gmra.mrb[16].mxu0 %v4465_v55  ;;  %v5389_v55 = vld [vmem:[%s6037_s24 + $0x10] sm:$0xff]  }
 0x195   : > { %4994 = vmatprep.mubr.bf16.mxu0 %v4466_v36  ;;  %v5390_v36 = vld [vmem:[%s6037_s24 + $0x18] sm:$0xff]   ;;  %4962 = vmatprep.mubr.msk.bf16.mxu1 %vm7476_vm0, %v5389_v55 }
 0x196   : > { %1793 = vperm.xlu0 %5363, %v5853_v31   ;;  %4963 = vmatmul.mubr.msk.bf16.gmra.mrb[4].mxu1 %vm7476_vm0, %v5390_v36 }
 0x197   : > { %4966 = vmatprep.mubr.msk.bf16.mxu1 %vm7476_vm0, %v5391_v56 }
 0x19a   : > { %5366 = vset.pattern.permute.xlu0 %v5668_v1  ;;  %v738_v1 = vld [vmem:[%s7422_s5 + $0x60] sm:$0xf] }
 0x19b   : > { %v4470_v45 = vcombine.low %v738_v1, %v739_v37 }
 0x19c   : > { %4995 = vmatmul.mubr.bf16.gmra.mrb[20].mxu0 %v4467_v6 }
 0x19d   : > { %4998 = vmatprep.mubr.bf16.mxu0 %v4468_v8 }
 0x19e   : > { %4967 = vmatmul.mubr.msk.bf16.gmra.mrb[8].mxu1 %vm7476_vm0, %v5392_v59 }
 0x19f   : > { %4970 = vmatprep.mubr.msk.bf16.mxu1 %vm7476_vm0, %v5393_v62 }
 0x1a4   : > { %4999 = vmatmul.mubr.bf16.gmra.mrb[24].mxu0 %v4469_v50 }
 0x1a5   : > { %5002 = vmatprep.mubr.bf16.mxu0 %v4470_v45 }
 0x1a6   : > { %4971 = vmatmul.mubr.msk.bf16.gmra.mrb[12].mxu1 %vm7476_vm0, %v5394_v7  ;;  %v4644_v7 = vld [vmem:[%s6107_s29] sm:$0xff]  }
 0x1a7   : > { %v4645_v51 = vunpack.c.l.bf16 %v4644_v7  ;;  %v4646_v42 = vunpack.c.h.bf16 %v4644_v7 }
 0x1ac   : > { %5003 = vmatmul.mubr.bf16.gmra.mrb[28].mxu0 %v4471_v4 }
 0x1b4   : > { %v6089_v1 = vpop.xlane.xlu0 %776 }
 0x1b5   : > { %7553 = vst [vmem:[#allocation23_spill] sm:$0xff] %v6089_v1  ;;  %vm7518_vm2 = vcmp.eq.f32.partialorder %v6089_v1, 0.0 }
 0x1b6   : > { %v1884_v52 = vsel %vm7518_vm2, 1.0, %v4645_v51 }
 0x1b7   : > { %vm1900_vm6 = vcmp.gt.f32.partialorder %v1884_v52, 0.0 }
 0x1b8   : > { %v6091_v50 = vpop.xlane.xlu0 %782 }
 0x1b9   : > { %7554 = vst [vmem:[#allocation24_spill] sm:$0xff] %v6091_v50  ;;  %vm7520_vm3 = vcmp.eq.f32.partialorder %v6091_v50, 0.0 }
 0x1bb   : > { %v6075_v3 = vpop.xlane.xlu1 %779 }
 0x1bc   : > { %7546 = vst [vmem:[#allocation16_spill] sm:$0xff] %v6075_v3  ;;  %v6093_v44 = vpop.xlane.xlu0 %785  ;;  %vm824_vm4 = vcmp.eq.f32.partialorder %v6075_v3, 0.0 }
 0x1bd   : > { %7555 = vst [vmem:[#allocation25_spill] sm:$0xff] %v6093_v44  ;;  %vm826_vm5 = vcmp.eq.f32.partialorder %v6093_v44, 0.0 }
 0x1bf   : > { %v6077_v63 = vpop.xlane.xlu1 %788 }
 0x1c0   : > { %7547 = vst [vmem:[#allocation17_spill] sm:$0xff] %v6077_v63  ;;  %v6095_v4 = vpop.xlane.xlu0 %791  ;;  %vm827_vm8 = vcmp.eq.f32.partialorder %v6077_v63, 0.0 }
 0x1c1   : > { %7556 = vst [vmem:[#allocation26_spill] sm:$0xff] %v6095_v4  ;;  %vm7525_vm7 = vcmp.eq.f32.partialorder %v6095_v4, 0.0  ;;  %v1888_v4 = vsel %vm827_vm8, 1.0, %v4653_v26 }
 0x1c3   : > { %v6079_v2 = vpop.xlane.xlu1 %794 }
 0x1c4   : > { %7548 = vst [vmem:[#allocation18_spill] sm:$0xff] %v6079_v2  ;;  %v6099_v36 = vpop.xlane.xlu0 %803  ;;  %vm829_vm13 = vcmp.eq.f32.partialorder %v6079_v2, 0.0 }
 0x1c5   : > { %7557 = vst [vmem:[#allocation27_spill] sm:$0xff] %v6099_v36  ;;  %vm7526_vm9 = vcmp.eq.f32.partialorder %v6099_v36, 0.0 }
 0x1c7   : > { %v6081_v6 = vpop.xlane.xlu1 %797 }
 0x1c8   : > { %7549 = vst [vmem:[#allocation19_spill] sm:$0xff] %v6081_v6  ;;  %v6101_v59 = vpop.xlane.xlu0 %809  ;;  %vm7529_vm15 = vcmp.eq.f32.partialorder %v6081_v6, 0.0 }
 0x1c9   : > { %7558 = vst [vmem:[#allocation28_spill] sm:$0xff] %v6101_v59 }
 0x1cb   : > { %v6083_v8 = vpop.xlane.xlu1 %800 }
 0x1cc   : > { %7550 = vst [vmem:[#allocation20_spill] sm:$0xff] %v6083_v8 }
 0x1cf   : > { %v6085_v34 = vpop.xlane.xlu1 %806 }
 0x1d0   : > { %7551 = vst [vmem:[#allocation21_spill] sm:$0xff] %v6085_v34  ;;  %v1746_v58 = vpop.permute.xlu0 %1745 }
 0x1d3   : > { %v6087_v35 = vpop.xlane.xlu1 %815 }
 0x1d4   : > { %7552 = vst [vmem:[#allocation22_spill] sm:$0xff] %v6087_v35  ;;  %v6116_v0 = vpop.permute.xlu0 %1761 }
 0x1d7   : > { %v1742_v37 = vpop.permute.xlu1 %1741 }
 0x1d8   : > { %v6141_v32 = vpop.permute.xlu0 %1777 }
 0x1db   : > { %v1750_v45 = vpop.permute.xlu1 %1749 }
 0x1df   : > { %v1754_v48 = vpop.permute.xlu1 %1753 }
 0x1e3   : > { %v6097_v55 = vpop.permute.xlu1 %1757 }
 0x1e7   : > { %v1766_v56 = vpop.permute.xlu1 %1765 }
 0x1eb   : > { %v6109_v62 = vpop.permute.xlu1 %1769 }
 0x1ef   : > { %v6113_v5 = vpop.permute.xlu1 %1773 }
 0x1f3   : > { %v6127_v61 = vpop.permute.xlu1 %1781 }
 0x267   : > { %v4992_v43 = vpop.f32.mrb[16].mxu0 }
 0x268   : > { %v1806_v9 = vadd.f32 %v4992_v43, %v1750_v45  ;;  %v1396_v41 = vpop.f32.mrb[17].mxu0  ;;  %v1886_v43 = vsel %vm7520_vm3, 1.0, %v4649_v57 }
 0x269   : > { %v1804_v54 = vadd.f32 %v1742_v37, %v1396_v41  ;;  %v4993_v51 = vpop.f32.mrb[18].mxu0  ;;  %v1885_v41 = vsel %vm824_vm4, 1.0, %v4646_v42  ;;  %v1887_v37 = vsel %vm826_vm5, 1.0, %v4650_v39  ;;  %vm1902_vm11 = vcmp.gt.f32.partialorder %v1886_v43, 0.0  ;;  %v1786_v39 = vpop.permute.xlu1 %1785 }
 0x26a   : > { %v1822_v60 = vmul.f32 0.01, %v1806_v9  ;;  %v1807_v7 = vadd.f32 %v4993_v51, %v1754_v48  ;;  %v1399_v1 = vpop.f32.mrb[19].mxu0  ;;  %vm1901_vm10 = vcmp.gt.f32.partialorder %v1885_v41, 0.0  ;;  %vm1903_vm12 = vcmp.gt.f32.partialorder %v1887_v37, 0.0 }
 0x26b   : > { %v1820_v45 = vmul.f32 0.01, %v1804_v54  ;;  %v1805_v38 = vadd.f32 %v1746_v58, %v1399_v1  ;;  %v6147_v58 = vsel %vm7525_vm7, 1.0, %v4654_v53 }
 0x26c   : > { %v1823_v33 = vmul.f32 0.01, %v1807_v7  ;;  %v1838_v51 = vmax.f32 %v1806_v9, %v1822_v60  ;;  %v4657_v9 = vunpack.c.l.bf16 %v4748_v27  ;;  %vm1905_vm14 = vcmp.gt.f32.partialorder %v6147_v58, 0.0 }
 0x26d   : > { %v1836_v50 = vmax.f32 %v1804_v54, %v1820_v45  ;;  %v1821_v57 = vmul.f32 0.01, %v1805_v38  ;;  %v6154_v54 = vpop.xlane.xlu0 %812 }
 0x26e   : > { %7559 = vst [vmem:[#allocation29_spill] sm:$0xff] %v6154_v54  ;;  %v1839_v60 = vmax.f32 %v1807_v7, %v1823_v33  ;;  %v6170_v33 = vsel %vm7526_vm9, 1.0, %v4662_v47 }
 0x26f   : > { %v1837_v42 = vmax.f32 %v1805_v38, %v1821_v57  ;;  %v4996_v49 = vpop.f32.mrb[20].mxu0  ;;  %v6152_v1 = vsel %vm1900_vm6, %v1836_v50, -inf  ;;  %v6166_v50 = vsel %vm1902_vm11, %v1838_v51, -inf  ;;  %vm7481_vm6 = vcmp.eq.f32.partialorder %v6083_v8, 0.0 }
 0x270   : > { %v1810_v45 = vadd.f32 %v4996_v49, %v1766_v56  ;;  %v1412_v53 = vpop.f32.mrb[21].mxu0  ;;  %v1932_v48 = vsel %vm774_vm1, %v6152_v1, -inf  ;;  %v4658_v49 = vunpack.c.h.bf16 %v4748_v27  ;;  %v1938_v47 = vsel %vm774_vm1, %v6166_v50, -inf  ;;  %v6188_v27 = vpop.permute.xlu1 %1789 }
 0x271   : > { %v1808_v38 = vadd.f32 %v6097_v55, %v1412_v53  ;;  %v4997_v57 = vpop.f32.mrb[22].mxu0  ;;  %1933 = vmax.xlane.f32.xlu0 %v1932_v48  ;;  %v6163_v52 = vsel %vm1901_vm10, %v1837_v42, -inf  ;;  %v1890_v48 = vsel %vm829_vm13, 1.0, %v4657_v9  ;;  %v4661_v51 = vunpack.c.l.bf16 %v6122_v46  ;;  %v6192_v9 = vpop.xlane.xlu0 %818 }
 0x272   : > { %v1826_v56 = vmul.f32 0.01, %v1810_v45  ;;  %v6173_v7 = vadd.f32 %v4997_v57, %v6109_v62  ;;  %v1415_v26 = vpop.f32.mrb[23].mxu0  ;;  %v1935_v55 = vsel %vm774_vm1, %v6163_v52, -inf  ;;  %v6185_v62 = vsel %vm1903_vm12, %v1839_v60, -inf  ;;  %7560 = vst [vmem:[#allocation30_spill] sm:$0xff] %v6192_v9 }
 0x273   : > { %v1824_v41 = vmul.f32 0.01, %v1808_v38  ;;  %v1809_v43 = vadd.f32 %v6116_v0, %v1415_v26  ;;  %1936 = vmax.xlane.f32.xlu1 %v1935_v55  ;;  %vm7479_vm10 = vcmp.eq.f32.partialorder %v6101_v59, 0.0  ;;  %vm1904_vm11 = vcmp.gt.f32.partialorder %v1888_v4, 0.0 }
 0x274   : > { %v1842_v42 = vmax.f32 %v1810_v45, %v1826_v56  ;;  %v1827_v0 = vmul.f32 0.01, %v6173_v7  ;;  %vm1906_vm0 = vcmp.gt.f32.partialorder %v1890_v48, 0.0  ;;  %v1891_v37 = vsel %vm7529_vm15, 1.0, %v4658_v49 }
 0x275   : > { %v1840_v53 = vmax.f32 %v1808_v38, %v1824_v41  ;;  %v1825_v57 = vmul.f32 0.01, %v1809_v43  ;;  %1939 = vmax.xlane.f32.xlu0 %v1938_v47  ;;  %vm7480_vm12 = vcmp.eq.f32.partialorder %v6085_v34, 0.0  ;;  %v4665_v45 = vunpack.c.l.bf16 %v6131_v40 }
 0x276   : > { %v1941_v55 = vsel %vm774_vm1, %v6185_v62, -inf  ;;  %v1892_v49 = vsel %vm7481_vm6, 1.0, %v4661_v51  ;;  %v1843_v41 = vmax.f32 %v6173_v7, %v1827_v0  ;;  %v7561_v7 = vunpack.c.h.bf16 %v6131_v40  ;;  %v1798_v51 = vpop.permute.xlu1 %1797 }
 0x277   : > { %v1841_v46 = vmax.f32 %v1809_v43, %v1825_v57  ;;  %v5000_v60 = vpop.f32.mrb[24].mxu0  ;;  %v6197_v26 = vsel %vm1904_vm11, %v1840_v53, -inf  ;;  %v6214_v53 = vsel %vm1906_vm0, %v1842_v42, -inf  ;;  %vm1909_vm11 = vcmp.gt.f32.partialorder %v6170_v33, 0.0  ;;  %v4751_v42 = vld [vmem:[%s6107_s29 + $0x30] sm:$0xff]  }
 0x278   : > { %v1814_v38 = vadd.f32 %v5000_v60, %v6127_v61  ;;  %v1428_v56 = vpop.f32.mrb[25].mxu0  ;;  %v1944_v4 = vsel %vm774_vm1, %v6197_v26, -inf  ;;  %v1894_v48 = vsel %vm7480_vm12, 1.0, %v4665_v45  ;;  %v1950_v40 = vsel %vm774_vm1, %v6214_v53, -inf }
 0x279   : > { %v1812_v43 = vadd.f32 %v6113_v5, %v1428_v56  ;;  %v5001_v47 = vpop.f32.mrb[26].mxu0  ;;  %1942 = vmax.xlane.f32.xlu0 %v1941_v55  ;;  %1945 = vmax.xlane.f32.xlu1 %v1944_v4  ;;  %v6211_v61 = vsel %vm1905_vm14, %v1841_v46, -inf  ;;  %v1895_v5 = vsel %vm7479_vm10, 1.0, %v7561_v7  ;;  %vm1907_vm14 = vcmp.gt.f32.partialorder %v1891_v37, 0.0  ;;  %v6225_v46 = vpop.xlane.xlu0 %821  ;;  %v6232_v55 = vld [vmem:[%s6107_s29 + $0x38] sm:$0xff]   ;;  %s7348_s29 = scalar_lea.vmem %s7433_s16, %s4429_s22 }
 0x27a   : > { %v1830_v57 = vmul.f32 0.01, %v1814_v38  ;;  %v1815_v60 = vadd.f32 %v5001_v47, %v1786_v39  ;;  %v1431_v8 = vpop.f32.mrb[27].mxu0  ;;  %7562 = vst [vmem:[#allocation31_spill] sm:$0xff] %v6225_v46  ;;  %v1947_v56 = vsel %vm774_vm1, %v6211_v61, -inf  ;;  %vm1908_vm0 = vcmp.gt.f32.partialorder %v1892_v49, 0.0 }
 0x27b   : > { %v1828_v0 = vmul.f32 0.01, %v1812_v43  ;;  %v1813_v58 = vadd.f32 %v6141_v32, %v1431_v8  ;;  %v6234_v8 = vsel %vm1907_vm14, %v1843_v41, -inf  ;;  %vm836_vm10 = vcmp.eq.f32.partialorder %v6087_v35, 0.0 }
 0x27c   : > { %v1831_v39 = vmul.f32 0.01, %v1815_v60  ;;  %v1846_v4 = vmax.f32 %v1814_v38, %v1830_v57  ;;  %vm1910_vm12 = vcmp.gt.f32.partialorder %v1894_v48, 0.0  ;;  %v4669_v37 = vunpack.c.l.bf16 %v4751_v42 }
 0x27d   : > { %v1844_v47 = vmax.f32 %v1812_v43, %v1828_v0  ;;  %v1829_v32 = vmul.f32 0.01, %v1813_v58  ;;  %1948 = vmax.xlane.f32.xlu0 %v1947_v56  ;;  %1951 = vmax.xlane.f32.xlu1 %v1950_v40  ;;  %v4670_v45 = vunpack.c.h.bf16 %v4751_v42  ;;  %vm835_vm6 = vcmp.eq.f32.partialorder %v6154_v54, 0.0  ;;  %v1802_v56 = vpop.permute.xlu1 %1801 }
 0x27e   : > { %v4673_v49 = vunpack.c.l.bf16 %v6232_v55  ;;  %v1847_v38 = vmax.f32 %v1815_v60, %v1831_v39  ;;  %v1953_v41 = vsel %vm774_vm1, %v6234_v8, -inf  ;;  %vm7488_vm14 = vcmp.eq.f32.partialorder %v6192_v9, 0.0  ;;  %v1794_v60 = vpop.permute.xlu0 %1793 }
 0x27f   : > { %v1845_v7 = vmax.f32 %v1813_v58, %v1829_v32  ;;  %v5004_v59 = vpop.f32.mrb[28].mxu0  ;;  %v6238_v34 = vsel %vm1908_vm0, %v1844_v47, -inf  ;;  %vm1911_vm0 = vcmp.gt.f32.partialorder %v1895_v5, 0.0  ;;  %v1897_v32 = vsel %vm836_vm10, 1.0, %v4670_v45 }
 0x280   : > { %v1818_v43 = vadd.f32 %v5004_v59, %v1798_v51  ;;  %v1444_v57 = vpop.f32.mrb[29].mxu0  ;;  %v1956_v0 = vsel %vm774_vm1, %v6238_v34, -inf  ;;  %v6252_v59 = vsel %vm1910_vm12, %v1846_v4, -inf  ;;  %v4674_v33 = vunpack.c.h.bf16 %v6232_v55 }
 0x281   : > { %v1816_v42 = vadd.f32 %v6188_v27, %v1444_v57  ;;  %v5005_v58 = vpop.f32.mrb[30].mxu0  ;;  %1954 = vmax.xlane.f32.xlu0 %v1953_v41  ;;  %1957 = vmax.xlane.f32.xlu1 %v1956_v0  ;;  %v6249_v40 = vsel %vm1909_vm11, %v1845_v7, -inf  ;;  %v1896_v57 = vsel %vm835_vm6, 1.0, %v4669_v37  ;;  %v1962_v4 = vsel %vm774_vm1, %v6252_v59, -inf }
 0x282   : > { %v1834_v51 = vmul.f32 0.01, %v1818_v43  ;;  %v1819_v39 = vadd.f32 %v5005_v58, %v1802_v56  ;;  %v1447_v47 = vpop.f32.mrb[31].mxu0  ;;  %v1959_v48 = vsel %vm774_vm1, %v6249_v40, -inf  ;;  %v6263_v7 = vsel %vm1911_vm0, %v1847_v38, -inf }
 0x283   : > { %v1832_v36 = vmul.f32 0.01, %v1816_v42  ;;  %v1817_v27 = vadd.f32 %v1794_v60, %v1447_v47  ;;  %v1898_v5 = vsel %vm7488_vm14, 1.0, %v4673_v49  ;;  %vm838_vm12 = vcmp.eq.f32.partialorder %v6225_v46, 0.0 }
 0x284   : > { %v1850_v41 = vmax.f32 %v1818_v43, %v1834_v51  ;;  %v1835_v0 = vmul.f32 0.01, %v1819_v39  ;;  %vm1912_vm11 = vcmp.gt.f32.partialorder %v1896_v57, 0.0  ;;  %v1965_v58 = vsel %vm774_vm1, %v6263_v7, -inf }
 0x285   : > { %v1848_v45 = vmax.f32 %v1816_v42, %v1832_v36  ;;  %v1833_v56 = vmul.f32 0.01, %v1817_v27  ;;  %1960 = vmax.xlane.f32.xlu0 %v1959_v48  ;;  %1963 = vmax.xlane.f32.xlu1 %v1962_v4  ;;  %vm1913_vm0 = vcmp.gt.f32.partialorder %v1897_v32, 0.0  ;;  %vm1914_vm14 = vcmp.gt.f32.partialorder %v1898_v5, 0.0  ;;  %v6288_v32 = vpop.f32.mrb[0].mxu1 }
 0x286   : > { %v1851_v49 = vmax.f32 %v1819_v39, %v1835_v0  ;;  %v6276_v43 = vsel %vm1914_vm14, %v1850_v41, -inf  ;;  %v1899_v42 = vsel %vm838_vm12, 1.0, %v4674_v33  ;;  %vm2141_vm14 = vcmask 1043456  }
 0x287   : > { %v1849_v55 = vmax.f32 %v1817_v27, %v1833_v56  ;;  %v6268_v37 = vsel %vm1912_vm11, %v1848_v45, -inf  ;;  %v1974_v51 = vsel %vm774_vm1, %v6276_v43, -inf  ;;  %vm1915_vm11 = vcmp.gt.f32.partialorder %v1899_v42, 0.0  ;;  %v6290_v27 = vpop.f32.mrb[1].mxu1 }
 0x288   : > { %v1968_v38 = vsel %vm774_vm1, %v6268_v37, -inf  ;;  %v6284_v47 = vsel %vm1915_vm11, %v1851_v49, -inf  ;;  %v6292_v57 = vpop.f32.mrb[2].mxu1 }
 0x289   : > { %1966 = vmax.xlane.f32.xlu0 %v1965_v58  ;;  %1969 = vmax.xlane.f32.xlu1 %v1968_v38  ;;  %v6274_v36 = vsel %vm1913_vm0, %v1849_v55, -inf  ;;  %v1977_v39 = vsel %vm774_vm1, %v6284_v47, -inf  ;;  %v6296_v33 = vpack.c.bf16 %v6292_v57, %v6288_v32  ;;  %v6298_v48 = vpop.f32.mrb[3].mxu1  ;;  %vm2459_vm0 = vcmask 523264  }
 0x28a   : > { %v1971_v60 = vsel %vm774_vm1, %v6274_v36, -inf  ;;  %v6302_v4 = vpack.c.bf16 %v6298_v48, %v6290_v27  ;;  %v6304_v5 = vpop.f32.mrb[4].mxu1 }
 0x28b   : > { %7563 = vst [vmem:[#allocation32_spill] sm:$0xff] %v6296_v33  ;;  %v6306_v41 = vpop.f32.mrb[5].mxu1 }
 0x28c   : > { %7564 = vst [vmem:[#allocation33_spill] sm:$0xff] %v6302_v4  ;;  %v6308_v45 = vpop.f32.mrb[6].mxu1 }
 0x28d   : > { %1972 = vmax.xlane.f32.xlu0 %v1971_v60  ;;  %1975 = vmax.xlane.f32.xlu1 %v1974_v51  ;;  %v6312_v0 = vpack.c.bf16 %v6308_v45, %v6304_v5  ;;  %v6314_v56 = vpop.f32.mrb[7].mxu1 }
 0x28e   : > { %v6318_v55 = vpack.c.bf16 %v6314_v56, %v6306_v41  ;;  %v6320_v58 = vpop.f32.mrb[8].mxu1 }
 0x28f   : > { %7565 = vst [vmem:[#allocation34_spill] sm:$0xff] %v6312_v0  ;;  %v6322_v38 = vpop.f32.mrb[9].mxu1 }
 0x290   : > { %7566 = vst [vmem:[#allocation35_spill] sm:$0xff] %v6318_v55  ;;  %v6324_v49 = vpop.f32.mrb[10].mxu1 }
 0x291   : > { %1978 = vmax.xlane.f32.xlu0 %v1977_v39  ;;  %v6328_v42 = vpack.c.bf16 %v6324_v49, %v6320_v58  ;;  %v6330_v60 = vpop.f32.mrb[11].mxu1 }
 0x292   : > { %v6334_v51 = vpack.c.bf16 %v6330_v60, %v6322_v38  ;;  %v6336_v39 = vpop.f32.mrb[12].mxu1 }
 0x293   : > { %7567 = vst [vmem:[#allocation36_spill] sm:$0xff] %v6328_v42  ;;  %v6338_v0 = vpop.f32.mrb[13].mxu1 }
 0x294   : > { %7568 = vst [vmem:[#allocation37_spill] sm:$0xff] %v6334_v51  ;;  %v6340_v55 = vpop.f32.mrb[14].mxu1 }
 0x295   : > { %v6344_v33 = vpack.c.bf16 %v6340_v55, %v6336_v39  ;;  %v6346_v4 = vpop.f32.mrb[15].mxu1 }
 0x296   : > { %v6350_v42 = vpack.c.bf16 %v6346_v4, %v6338_v0 }
 0x297   : > { %7569 = vst [vmem:[#allocation38_spill] sm:$0xff] %v6344_v33 }
 0x298   : > { %7570 = vst [vmem:[#allocation39_spill] sm:$0xff] %v6350_v42 }
 0x2fe   : > { %v1934_v46 = vpop.xlane.xlu0 %1933 }
 0x2ff   : > { %v1980_v9 = vsub.f32 %v6152_v1, %v1934_v46 }
 0x300   : > { %v1937_v51 = vpop.xlane.xlu1 %1936 }
 0x301   : > { %v1996_v35 = vmul.f32 1.442695, %v1980_v9  ;;  %v1981_v54 = vsub.f32 %v6163_v52, %v1937_v51 }
 0x302   : > { %v1940_v6 = vpop.xlane.xlu0 %1939 }
 0x303   : > { %5433 = vpow2.f32 %v1996_v35  ;;  %v1998_v2 = vmul.f32 1.442695, %v1981_v54  ;;  %v1982_v63 = vsub.f32 %v6166_v50, %v1940_v6  ;;  %v2108_v35 = vld [vmem:[%s7429_s12] sm:$0xf] }
 0x304   : > { %5346 = vmatprep.subr.msk.bf16.mxu0 %vm2141_vm14, %v2108_v35  ;;  %v2143_v6 = vsel %vm2141_vm14, %v2108_v35, 0 }
 0x305   : > { %5435 = vpow2.f32 %v1998_v2  ;;  %v2000_v33 = vmul.f32 1.442695, %v1982_v63  ;;  %5039 = vmatpush3.bf16.msra.mxu0 %v2143_v6 }
 0x306   : > { %v1943_v44 = vpop.xlane.xlu0 %1942  ;;  %v1946_v3 = vpop.xlane.xlu1 %1945 }
 0x307   : > { %5437 = vpow2.f32 %v2000_v33  ;;  %v1983_v20 = vsub.f32 %v6185_v62, %v1943_v44  ;;  %v1984_v42 = vsub.f32 %v6197_v26, %v1946_v3 }
 0x309   : > { %v2002_v21 = vmul.f32 1.442695, %v1983_v20  ;;  %v2004_v1 = vmul.f32 1.442695, %v1984_v42 }
 0x30a   : > { %v1949_v46 = vpop.xlane.xlu0 %1948  ;;  %v1952_v9 = vpop.xlane.xlu1 %1951 }
 0x30b   : > { %5439 = vpow2.f32 %v2002_v21  ;;  %v1985_v2 = vsub.f32 %v6211_v61, %v1949_v46  ;;  %v1986_v63 = vsub.f32 %v6214_v53, %v1952_v9 }
 0x30c   : > { %5441 = vpow2.f32 %v2004_v1 }
 0x30d   : > { %v6364_v20 = vpop.eup %5433  ;;  %v2006_v3 = vmul.f32 1.442695, %v1985_v2  ;;  %v2008_v44 = vmul.f32 1.442695, %v1986_v63 }
 0x30e   : > { %v1955_v54 = vpop.xlane.xlu0 %1954  ;;  %v1958_v52 = vpop.xlane.xlu1 %1957  ;;  %v2028_v50 = vsel %vm774_vm1, %v6364_v20, 0.0 }
 0x30f   : > { %v6368_v21 = vpop.eup %5435  ;;  %5443 = vpow2.f32 %v2006_v3  ;;  %v1987_v62 = vsub.f32 %v6234_v8, %v1955_v54  ;;  %v1988_v26 = vsub.f32 %v6238_v34, %v1958_v52  ;;  %2029 = vadd.xlane.f32.xlu1 %v2028_v50 }
 0x310   : > { %5445 = vpow2.f32 %v2008_v44  ;;  %v2031_v61 = vsel %vm774_vm1, %v6368_v21, 0.0 }
 0x311   : > { %v6374_v53 = vpop.eup %5437  ;;  %v2010_v33 = vmul.f32 1.442695, %v1987_v62  ;;  %v2012_v42 = vmul.f32 1.442695, %v1988_v26  ;;  %2032 = vadd.xlane.f32.xlu0 %v2031_v61 }
 0x312   : > { %v1961_v51 = vpop.xlane.xlu0 %1960  ;;  %v1964_v1 = vpop.xlane.xlu1 %1963  ;;  %v2034_v46 = vsel %vm774_vm1, %v6374_v53, 0.0 }
 0x313   : > { %5447 = vpow2.f32 %v2010_v33  ;;  %v1989_v8 = vsub.f32 %v6249_v40, %v1961_v51  ;;  %v1990_v34 = vsub.f32 %v6252_v59, %v1964_v1  ;;  %2035 = vadd.xlane.f32.xlu1 %v2034_v46 }
 0x314   : > { %5449 = vpow2.f32 %v2012_v42 }
 0x315   : > { %v6380_v9 = vpop.eup %5439  ;;  %v2014_v35 = vmul.f32 1.442695, %v1989_v8  ;;  %v2016_v2 = vmul.f32 1.442695, %v1990_v34 }
 0x316   : > { %v6382_v63 = vpop.eup %5441  ;;  %v1967_v6 = vpop.xlane.xlu0 %1966  ;;  %v2037_v44 = vsel %vm774_vm1, %v6380_v9, 0.0 }
 0x317   : > { %v1970_v3 = vpop.xlane.xlu1 %1969  ;;  %5451 = vpow2.f32 %v2014_v35  ;;  %v1991_v54 = vsub.f32 %v6263_v7, %v1967_v6  ;;  %2038 = vadd.xlane.f32.xlu0 %v2037_v44  ;;  %v2040_v59 = vsel %vm774_vm1, %v6382_v63, 0.0 }
 0x318   : > { %v1992_v40 = vsub.f32 %v6268_v37, %v1970_v3  ;;  %5453 = vpow2.f32 %v2016_v2  ;;  %2041 = vadd.xlane.f32.xlu1 %v2040_v59 }
 0x319   : > { %v6390_v52 = vpop.eup %5443  ;;  %v2018_v50 = vmul.f32 1.442695, %v1991_v54 }
 0x31a   : > { %v2020_v62 = vmul.f32 1.442695, %v1992_v40  ;;  %v6392_v26 = vpop.eup %5445  ;;  %v1973_v61 = vpop.xlane.xlu0 %1972  ;;  %v2043_v42 = vsel %vm774_vm1, %v6390_v52, 0.0 }
 0x31b   : > { %v1976_v33 = vpop.xlane.xlu1 %1975  ;;  %5455 = vpow2.f32 %v2018_v50  ;;  %v1993_v7 = vsub.f32 %v6274_v36, %v1973_v61  ;;  %2044 = vadd.xlane.f32.xlu0 %v2043_v42  ;;  %v2046_v51 = vsel %vm774_vm1, %v6392_v26, 0.0 }
 0x31c   : > { %v1994_v37 = vsub.f32 %v6276_v43, %v1976_v33  ;;  %5457 = vpow2.f32 %v2020_v62  ;;  %2047 = vadd.xlane.f32.xlu1 %v2046_v51 }
 0x31d   : > { %v6400_v1 = vpop.eup %5447  ;;  %v2022_v46 = vmul.f32 1.442695, %v1993_v7 }
 0x31e   : > { %v2024_v8 = vmul.f32 1.442695, %v1994_v37  ;;  %v6402_v34 = vpop.eup %5449  ;;  %v1979_v35 = vpop.xlane.xlu0 %1978  ;;  %v2049_v2 = vsel %vm774_vm1, %v6400_v1, 0.0 }
 0x31f   : > { %5459 = vpow2.f32 %v2022_v46  ;;  %v1995_v36 = vsub.f32 %v6284_v47, %v1979_v35  ;;  %2050 = vadd.xlane.f32.xlu0 %v2049_v2  ;;  %v2052_v43 = vsel %vm774_vm1, %v6402_v34, 0.0 }
 0x320   : > { %5461 = vpow2.f32 %v2024_v8  ;;  %2053 = vadd.xlane.f32.xlu1 %v2052_v43 }
 0x321   : > { %v6409_v6 = vpop.eup %5451  ;;  %v2026_v3 = vmul.f32 1.442695, %v1995_v36 }
 0x322   : > { %v6411_v44 = vpop.eup %5453  ;;  %v2055_v54 = vsel %vm774_vm1, %v6409_v6, 0.0 }
 0x323   : > { %5463 = vpow2.f32 %v2026_v3  ;;  %2056 = vadd.xlane.f32.xlu0 %v2055_v54  ;;  %v2058_v40 = vsel %vm774_vm1, %v6411_v44, 0.0 }
 0x324   : > { %2059 = vadd.xlane.f32.xlu1 %v2058_v40 }
 0x325   : > { %v6417_v47 = vpop.eup %5455 }
 0x326   : > { %v6419_v59 = vpop.eup %5457  ;;  %v2061_v50 = vsel %vm774_vm1, %v6417_v47, 0.0 }
 0x327   : > { %2062 = vadd.xlane.f32.xlu0 %v2061_v50  ;;  %v2064_v62 = vsel %vm774_vm1, %v6419_v59, 0.0 }
 0x328   : > { %2065 = vadd.xlane.f32.xlu1 %v2064_v62 }
 0x329   : > { %v6425_v61 = vpop.eup %5459 }
 0x32a   : > { %v6427_v33 = vpop.eup %5461  ;;  %v2067_v42 = vsel %vm774_vm1, %v6425_v61, 0.0 }
 0x32b   : > { %2068 = vadd.xlane.f32.xlu0 %v2067_v42  ;;  %v2070_v7 = vsel %vm774_vm1, %v6427_v33, 0.0 }
 0x32c   : > { %2071 = vadd.xlane.f32.xlu1 %v2070_v7 }
 0x32d   : > { %v6433_v37 = vpop.eup %5463 }
 0x32e   : > { %v2073_v51 = vsel %vm774_vm1, %v6433_v37, 0.0 }
 0x32f   : > { %2074 = vadd.xlane.f32.xlu0 %v2073_v51 }
 0x33d   : > { %1493 = vperm.xlu1 %5365, %v6290_v27   ;;  %v742_v27 = vld [vmem:[%s7422_s5 + $0x4] sm:$0xf] }
 0x341   : > { %1503 = vperm.xlu1 %5365, %v6288_v32   ;;  %v5670_v32 = vmov 18  }
 0x345   : > { %1508 = vperm.xlu1 %5365, %v6292_v57   ;;  %1498 = vperm.xlu0 %5366, %v6298_v48   ;;  %v743_v57 = vld [vmem:[%s7422_s5 + $0xc] sm:$0xf] }
 0x346   : > { %v4472_v48 = vcombine.low %v742_v27, %v743_v57 }
 0x348   : > { %5022 = vmatprep.mubr.bf16.mxu1 %v4472_v48 }
 0x349   : > { %1513 = vperm.xlu1 %5365, %v6306_v41   ;;  %1538 = vperm.xlu0 %5366, %v6330_v60  }
 0x34d   : > { %1518 = vperm.xlu1 %5365, %v6314_v56   ;;  %1548 = vperm.xlu0 %5366, %v6324_v49  }
 0x351   : > { %1523 = vperm.xlu1 %5365, %v6304_v5   ;;  %1558 = vperm.xlu0 %5366, %v6346_v4  }
 0x355   : > { %1528 = vperm.xlu1 %5365, %v6308_v45   ;;  %1568 = vperm.xlu0 %5366, %v6340_v55  }
 0x359   : > { %1533 = vperm.xlu1 %5365, %v6322_v38   ;;  %5368 = vset.pattern.permute.xlu0 %v5670_v32 }
 0x35a   : > { %2586 = vperm.xlu0 %5368, %v5794_v13  }
 0x35d   : > { %1543 = vperm.xlu1 %5365, %v6320_v58  }
 0x35e   : > { %2598 = vperm.xlu0 %5368, %v5808_v17  }
 0x361   : > { %1553 = vperm.xlu1 %5365, %v6338_v0  }
 0x362   : > { %2606 = vperm.xlu0 %5368, %v5806_v16  }
 0x365   : > { %1563 = vperm.xlu1 %5365, %v6336_v39  }
 0x366   : > { %2614 = vperm.xlu0 %5368, %v5828_v23  }
 0x369   : > { %5367 = vset.pattern.permute.xlu1 %v5670_v32 }
 0x36a   : > { %2582 = vperm.xlu1 %5367, %v5789_v11   ;;  %2622 = vperm.xlu0 %5368, %v5826_v22  }
 0x36e   : > { %2590 = vperm.xlu1 %5367, %v5786_v10   ;;  %2630 = vperm.xlu0 %5368, %v5848_v29  }
 0x372   : > { %2594 = vperm.xlu1 %5367, %v5792_v12   ;;  %2638 = vperm.xlu0 %5368, %v5846_v28  }
 0x376   : > { %2602 = vperm.xlu1 %5367, %v5813_v19  }
 0x37a   : > { %2610 = vperm.xlu1 %5367, %v5811_v18  }
 0x37e   : > { %2618 = vperm.xlu1 %5367, %v5833_v25  }
 0x382   : > { %2626 = vperm.xlu1 %5367, %v5831_v24  }
 0x386   : > { %2634 = vperm.xlu1 %5367, %v5853_v31  }
 0x38a   : > { %2642 = vperm.xlu1 %5367, %v5851_v30  }
 0x39c   : > { %v2030_v4 = vpop.xlane.xlu1 %2029 }
 0x39d   : > { %5465 = vrcp.f32 %v2030_v4 }
 0x39e   : > { %v2033_v5 = vpop.xlane.xlu0 %2032 }
 0x39f   : > { %5467 = vrcp.f32 %v2033_v5 }
 0x3a0   : > { %v2036_v41 = vpop.xlane.xlu1 %2035 }
 0x3a1   : > { %5469 = vrcp.f32 %v2036_v41  ;;  %v4708_v41 = vld [vmem:[%s7424_s7] sm:$0xff]  }
 0x3a4   : > { %v2039_v45 = vpop.xlane.xlu0 %2038 }
 0x3a5   : > { %5471 = vrcp.f32 %v2039_v45  ;;  %v2042_v0 = vpop.xlane.xlu1 %2041 }
 0x3a6   : > { %5473 = vrcp.f32 %v2042_v0 }
 0x3a7   : > { %v5466_v56 = vpop.eup %5465 }
 0x3a8   : > { %v2045_v55 = vpop.xlane.xlu0 %2044  ;;  %v2077_v49 = vmul.f32 %v5466_v56, %v6364_v20  ;;  %v4760_v56 = vld [vmem:[%s7424_s7 + $0x8] sm:$0xff]  }
 0x3a9   : > { %v5468_v58 = vpop.eup %5467  ;;  %5475 = vrcp.f32 %v2045_v55  ;;  %v2048_v38 = vpop.xlane.xlu1 %2047 }
 0x3aa   : > { %v2079_v60 = vmul.f32 %v5468_v58, %v6368_v21  ;;  %5477 = vrcp.f32 %v2048_v38  ;;  %v4709_v38 = vunpack.c.l.bf16 %v4708_v41 }
 0x3ab   : > { %v5470_v8 = vpop.eup %5469 }
 0x3ac   : > { %v2051_v39 = vpop.xlane.xlu0 %2050  ;;  %v2109_v46 = vpack.c.bf16 %v2079_v60, %v2077_v49  ;;  %v2081_v36 = vmul.f32 %v5470_v8, %v6374_v53  ;;  %v4713_v49 = vunpack.c.l.bf16 %v4760_v56 }
 0x3ad   : > { %5479 = vrcp.f32 %v2051_v39  ;;  %v2054_v35 = vpop.xlane.xlu1 %2053 }
 0x3ae   : > { %5040 = vmatprep.mubr.msk.bf16.mxu0 %vm774_vm1, %v2109_v46  ;;  %5481 = vrcp.f32 %v2054_v35  ;;  %v4714_v35 = vunpack.c.h.bf16 %v4760_v56 }
 0x3af   : > { %v5472_v2 = vpop.eup %5471 }
 0x3b0   : > { %v2083_v43 = vmul.f32 %v5472_v2, %v6380_v9  ;;  %v2057_v3 = vpop.xlane.xlu0 %2056  ;;  %v5474_v54 = vpop.eup %5473 }
 0x3b1   : > { %5483 = vrcp.f32 %v2057_v3  ;;  %v2060_v20 = vpop.xlane.xlu1 %2059  ;;  %v2085_v62 = vmul.f32 %v5474_v54, %v6382_v63 }
 0x3b2   : > { %v2110_v40 = vpack.c.bf16 %v2083_v43, %v2081_v36  ;;  %5485 = vrcp.f32 %v2060_v20 }
 0x3b3   : > { %v5476_v21 = vpop.eup %5475 }
 0x3b4   : > { %v2063_v50 = vpop.xlane.xlu0 %2062  ;;  %5041 = vmatmul.mubr.msk.bf16.vlgmr.msra.gmra.mrb[32].mxu0 %vm774_vm1, %v2110_v40  ;;  %v2087_v42 = vmul.f32 %v5476_v21, %v6390_v52  ;;  %v5478_v7 = vpop.eup %5477 }
 0x3b5   : > { %5487 = vrcp.f32 %v2063_v50  ;;  %v2066_v51 = vpop.xlane.xlu1 %2065  ;;  %v2089_v27 = vmul.f32 %v5478_v7, %v6392_v26 }
 0x3b6   : > { %v2111_v53 = vpack.c.bf16 %v2087_v42, %v2085_v62  ;;  %5489 = vrcp.f32 %v2066_v51 }
 0x3b7   : > { %v5480_v32 = vpop.eup %5479 }
 0x3b8   : > { %v2069_v9 = vpop.xlane.xlu0 %2068  ;;  %5044 = vmatprep.mubr.msk.bf16.mxu0 %vm774_vm1, %v2111_v53  ;;  %v2091_v57 = vmul.f32 %v5480_v32, %v6400_v1  ;;  %v5482_v48 = vpop.eup %5481 }
 0x3b9   : > { %5491 = vrcp.f32 %v2069_v9  ;;  %v2072_v4 = vpop.xlane.xlu1 %2071  ;;  %v2093_v45 = vmul.f32 %v5482_v48, %v6402_v34 }
 0x3ba   : > { %v2112_v5 = vpack.c.bf16 %v2091_v57, %v2089_v27  ;;  %5493 = vrcp.f32 %v2072_v4  ;;  %v4762_v4 = vld [vmem:[%s7424_s7 + $0x18] sm:$0xff]  }
 0x3bb   : > { %v5484_v63 = vpop.eup %5483 }
 0x3bc   : > { %v2075_v52 = vpop.xlane.xlu0 %2074  ;;  %5045 = vmatmul.mubr.msk.bf16.gmra.mrb[36].mxu0 %vm774_vm1, %v2112_v5  ;;  %v2095_v0 = vmul.f32 %v5484_v63, %v6409_v6  ;;  %v5486_v26 = vpop.eup %5485  ;;  %v4710_v6 = vunpack.c.h.bf16 %v4708_v41 }
 0x3bd   : > { %5495 = vrcp.f32 %v2075_v52  ;;  %v1494_v1 = vpop.permute.xlu1 %1493  ;;  %v2097_v60 = vmul.f32 %v5486_v26, %v6411_v44 }
 0x3be   : > { %v2113_v55 = vpack.c.bf16 %v2095_v0, %v2093_v45  ;;  %v1571_v36 = vmul.f32 %v4709_v38, %v1494_v1  ;;  %v4722_v45 = vunpack.c.h.bf16 %v4762_v4  ;;  %v4764_v1 = vld [vmem:[%s7424_s7 + $0x28] sm:$0xff]  }
 0x3bf   : > { %v5488_v58 = vpop.eup %5487 }
 0x3c0   : > { %5048 = vmatprep.mubr.msk.bf16.mxu0 %vm774_vm1, %v2113_v55  ;;  %v2099_v39 = vmul.f32 %v5488_v58, %v6417_v47  ;;  %v5490_v34 = vpop.eup %5489  ;;  %v4761_v47 = vld [vmem:[%s7424_s7 + $0x10] sm:$0xff]  }
 0x3c1   : > { %v1504_v46 = vpop.permute.xlu1 %1503  ;;  %v2101_v54 = vmul.f32 %v5490_v34, %v6419_v59  ;;  %v4717_v53 = vunpack.c.l.bf16 %v4761_v47  ;;  %v4718_v27 = vunpack.c.h.bf16 %v4761_v47  ;;  %v4765_v34 = vld [vmem:[%s7424_s7 + $0x30] sm:$0xff]  }
 0x3c2   : > { %v2114_v8 = vpack.c.bf16 %v2099_v39, %v2097_v60  ;;  %v1573_v43 = vmul.f32 %v4713_v49, %v1504_v46  ;;  %v4730_v60 = vunpack.c.h.bf16 %v4764_v1 }
 0x3c3   : > { %v5492_v2 = vpop.eup %5491 }
 0x3c4   : > { %5049 = vmatmul.mubr.msk.bf16.gmra.mrb[40].mxu0 %vm774_vm1, %v2114_v8  ;;  %v1499_v3 = vpop.permute.xlu0 %1498  ;;  %v2103_v20 = vmul.f32 %v5492_v2, %v6425_v61  ;;  %v5494_v40 = vpop.eup %5493  ;;  %v4729_v8 = vunpack.c.l.bf16 %v4764_v1  ;;  %v4734_v2 = vunpack.c.h.bf16 %v4765_v34  ;;  %v7572_v1 = vld [vmem:[#allocation2_spill] sm:$0xff] }
 0x3c5   : > { %v1509_v21 = vpop.permute.xlu1 %1508  ;;  %v1572_v44 = vmul.f32 %v4710_v6, %v1499_v3  ;;  %v2105_v32 = vmul.f32 %v5494_v40, %v6427_v33  ;;  %v4721_v33 = vunpack.c.l.bf16 %v4762_v4  ;;  %v4766_v3 = vld [vmem:[%s7424_s7 + $0x38] sm:$0xff]   ;;  %v4733_v40 = vunpack.c.l.bf16 %v4765_v34 }
 0x3c6   : > { %v1574_v50 = vmul.f32 %v4714_v35, %v1509_v21  ;;  %v2115_v62 = vpack.c.bf16 %v2103_v20, %v2101_v54  ;;  %v757_v34 = vld [vmem:[%s7422_s5 + $0x7c] sm:$0xf] }
 0x3c7   : > { %v5496_v42 = vpop.eup %5495  ;;  %v1587_v7 = vpack.c.bf16 %v1572_v44, %v1571_v36  ;;  %v4738_v44 = vunpack.c.h.bf16 %v4766_v3 }
 0x3c8   : > { %v1588_v51 = vpack.c.bf16 %v1574_v50, %v1573_v43  ;;  %5052 = vmatprep.mubr.msk.bf16.mxu0 %vm774_vm1, %v2115_v62  ;;  %v2107_v59 = vmul.f32 %v5496_v42, %v6433_v37  ;;  %v4763_v37 = vld [vmem:[%s7424_s7 + $0x20] sm:$0xff]   ;;  %v1539_v52 = vpop.permute.xlu0 %1538  ;;  %v4737_v42 = vunpack.c.l.bf16 %v4766_v3 }
 0x3c9   : > { %v1514_v61 = vpop.permute.xlu1 %1513  ;;  %5006 = vmatprep.subr.bf16.mxu1 %v1587_v7  ;;  %v4726_v0 = vunpack.c.h.bf16 %v4763_v37  ;;  %v4725_v58 = vunpack.c.l.bf16 %v4763_v37  ;;  %v750_v37 = vld [vmem:[%s7422_s5 + $0x44] sm:$0xf] }
 0x3ca   : > { %v2116_v9 = vpack.c.bf16 %v2107_v59, %v2105_v32  ;;  %5007 = vmatpush3.bf16.msra.mxu1 %v1587_v7  ;;  %v1575_v57 = vmul.f32 %v4717_v53, %v1514_v61  ;;  %v744_v61 = vld [vmem:[%s7422_s5 + $0x14] sm:$0xf] }
 0x3cb   : > { %5008 = vmatprep.subr.bf16.mxu1 %v1588_v51  ;;  %v1580_v49 = vmul.f32 %v4726_v0, %v1539_v52  ;;  %v751_v52 = vld [vmem:[%s7422_s5 + $0x4c] sm:$0xf]  ;;  %v752_v0 = vld [vmem:[%s7422_s5 + $0x54] sm:$0xf] }
 0x3cc   : > { %5053 = vmatmul.mubr.msk.bf16.gmra.mrb[44].mxu0 %vm774_vm1, %v2116_v9  ;;  %v1549_v38 = vpop.permute.xlu0 %1548  ;;  %v745_v9 = vld [vmem:[%s7422_s5 + $0x1c] sm:$0xf] }
 0x3cd   : > { %v1519_v48 = vpop.permute.xlu1 %1518  ;;  %v1582_v35 = vmul.f32 %v4730_v60, %v1549_v38  ;;  %v4473_v4 = vcombine.low %v744_v61, %v745_v9  ;;  %v7573_v38 = vld [vmem:[#allocation5_spill] sm:$0xff]  ;;  %v7575_v60 = vld [vmem:[#allocation7_spill] sm:$0xff] }
 0x3ce   : > { %v1576_v5 = vmul.f32 %v4718_v27, %v1519_v48  ;;  %5009 = vmatpush3.bf16.msra.mxu1 %v1588_v51  ;;  %v747_v48 = vld [vmem:[%s7422_s5 + $0x2c] sm:$0xf]  ;;  %v5630_v9 = vld [vmem:[%s7422_s5 + $0x38] sm:$0xf] }
 0x3d0   : > { %v1589_v63 = vpack.c.bf16 %v1576_v5, %v1575_v57  ;;  %v1559_v43 = vpop.permute.xlu0 %1558  ;;  %v746_v57 = vld [vmem:[%s7422_s5 + $0x24] sm:$0xf] }
 0x3d1   : > { %v1524_v41 = vpop.permute.xlu1 %1523  ;;  %v1584_v21 = vmul.f32 %v4734_v2, %v1559_v43  ;;  %v4474_v5 = vcombine.low %v746_v57, %v747_v48  ;;  %v5404_v57 = vld [vmem:[%s7426_s9 + $0x8] sm:$0xff]  }
 0x3d2   : > { %5010 = vmatprep.subr.bf16.mxu1 %v1589_v63  ;;  %v1577_v26 = vmul.f32 %v4721_v33, %v1524_v41  ;;  %v749_v33 = vld [vmem:[%s7422_s5 + $0x3c] sm:$0xf]  ;;  %v4476_v41 = vcombine.low %v750_v37, %v751_v52 }
 0x3d3   : > { %5011 = vmatpush3.bf16.msra.mxu1 %v1589_v63  ;;  %v748_v63 = vld [vmem:[%s7422_s5 + $0x34] sm:$0xf] }
 0x3d4   : > { %v1569_v7 = vpop.permute.xlu0 %1568 }
 0x3d5   : > { %v1529_v56 = vpop.permute.xlu1 %1528  ;;  %v1586_v51 = vmul.f32 %v4738_v44, %v1569_v7 }
 0x3d6   : > { %v1578_v55 = vmul.f32 %v4722_v45, %v1529_v56  ;;  %v7571_v45 = vld [vmem:[#allocation3_spill] sm:$0xff] }
 0x3d7   : > { %v755_v56 = vld [vmem:[%s7422_s5 + $0x6c] sm:$0xf] }
 0x3d8   : > { %v1590_v39 = vpack.c.bf16 %v1578_v55, %v1577_v26  ;;  %v753_v26 = vld [vmem:[%s7422_s5 + $0x5c] sm:$0xf] }
 0x3d9   : > { %v1534_v46 = vpop.permute.xlu1 %1533  ;;  %v4477_v55 = vcombine.low %v752_v0, %v753_v26  ;;  %v5405_v0 = vld [vmem:[%s7426_s9 + $0x10] sm:$0xff]  }
 0x3da   : > { %v1579_v6 = vmul.f32 %v4725_v58, %v1534_v46  ;;  %5012 = vmatprep.subr.bf16.mxu1 %v1590_v39 }
 0x3db   : > { %5013 = vmatpush3.bf16.msra.mxu1 %v1590_v39  ;;  %v756_v39 = vld [vmem:[%s7422_s5 + $0x74] sm:$0xf] }
 0x3dc   : > { %v1591_v36 = vpack.c.bf16 %v1580_v49, %v1579_v6  ;;  %v7574_v49 = vld [vmem:[#allocation4_spill] sm:$0xff]  ;;  %v4479_v46 = vcombine.low %v756_v39, %v757_v34  ;;  %v7576_v6 = vld [vmem:[#allocation6_spill] sm:$0xff] }
 0x3dd   : > { %v1544_v54 = vpop.permute.xlu1 %1543  ;;  %v5635_v34 = vld [vmem:[%s7422_s5 + $0x40] sm:$0xf] }
 0x3de   : > { %v1581_v20 = vmul.f32 %v4729_v8, %v1544_v54  ;;  %5014 = vmatprep.subr.bf16.mxu1 %v1591_v36  ;;  %v5403_v8 = vld [vmem:[%s7426_s9] sm:$0xff]  }
 0x3df   : > { %5015 = vmatpush3.bf16.msra.mxu1 %v1591_v36  ;;  %v5626_v36 = vld [vmem:[%s7422_s5 + $0x18] sm:$0xf]  ;;  %v5627_v54 = vld [vmem:[%s7422_s5] sm:$0xf] }
 0x3e0   : > { %v1592_v47 = vpack.c.bf16 %v1582_v35, %v1581_v20  ;;  %v5625_v35 = vld [vmem:[%s7422_s5 + $0x10] sm:$0xf]  ;;  %v2245_v43 = vunpack.c.l.bf16 %v5626_v36  ;;  %v2242_v20 = vunpack.c.l.bf16 %v5627_v54 }
 0x3e1   : > { %v1554_v50 = vpop.permute.xlu1 %1553  ;;  %v2244_v2 = vunpack.c.l.bf16 %v5625_v35 }
 0x3e2   : > { %v1583_v62 = vmul.f32 %v4733_v40, %v1554_v50  ;;  %5016 = vmatprep.subr.bf16.mxu1 %v1592_v47  ;;  %v5628_v40 = vld [vmem:[%s7422_s5 + $0x8] sm:$0xf] }
 0x3e3   : > { %5017 = vmatpush3.bf16.msra.mxu1 %v1592_v47 }
 0x3e4   : > { %v1593_v53 = vpack.c.bf16 %v1584_v21, %v1583_v62  ;;  %v2243_v21 = vunpack.c.l.bf16 %v5628_v40 }
 0x3e5   : > { %v1564_v32 = vpop.permute.xlu1 %1563 }
 0x3e6   : > { %v1585_v59 = vmul.f32 %v4737_v42, %v1564_v32  ;;  %5018 = vmatprep.subr.bf16.mxu1 %v1593_v53 }
 0x3e7   : > { %5019 = vmatpush3.bf16.msra.mxu1 %v1593_v53 }
 0x3e8   : > { %v1594_v27 = vpack.c.bf16 %v1586_v51, %v1585_v59  ;;  %v5629_v59 = vld [vmem:[%s7422_s5 + $0x30] sm:$0xf] }
 0x3e9   : > { %v2248_v61 = vunpack.c.l.bf16 %v5629_v59 }
 0x3ea   : > { %5020 = vmatprep.subr.bf16.mxu1 %v1594_v27 }
 0x3eb   : > { %5021 = vmatpush3.bf16.msra.mxu1 %v1594_v27  ;;  %v2249_v27 = vunpack.c.l.bf16 %v5630_v9 }
 0x3ec   : > { %5056 = vmatprep.subr.bf16.mxu1 %v5802_v15 }
 0x3ee   : > { %5023 = vmatmul.mubr.bf16.vlgmr.msra.gmra.mrb[16].mxu1 %v4473_v4  ;;  %v5631_v4 = vld [vmem:[%s7422_s5 + $0x20] sm:$0xf] }
 0x3ef   : > { %5057 = vmatpush3.bf16.msra.mxu1 %v5802_v15  ;;  %5026 = vmatprep.mubr.bf16.mxu1 %v4474_v5  ;;  %v4475_v15 = vcombine.low %v748_v63, %v749_v33  ;;  %v2246_v5 = vunpack.c.l.bf16 %v5631_v4  ;;  %v5632_v63 = vld [vmem:[%s7422_s5 + $0x28] sm:$0xf] }
 0x3f0   : > { %5058 = vmatprep.subr.bf16.mxu1 %v5798_v14  ;;  %v2247_v33 = vunpack.c.l.bf16 %v5632_v63 }
 0x3f3   : > { %5059 = vmatpush3.bf16.msra.mxu1 %v5798_v14  ;;  %v754_v14 = vld [vmem:[%s7422_s5 + $0x64] sm:$0xf] }
 0x3f4   : > { %5060 = vmatprep.subr.bf16.mxu1 %v7571_v45  ;;  %v4478_v58 = vcombine.low %v754_v14, %v755_v56 }
 0x3f6   : > { %5027 = vmatmul.mubr.bf16.gmra.mrb[20].mxu1 %v4475_v15 }
 0x3f7   : > { %5061 = vmatpush3.bf16.msra.mxu1 %v7571_v45  ;;  %5030 = vmatprep.mubr.bf16.mxu1 %v4476_v41 }
 0x3f8   : > { %5062 = vmatprep.subr.bf16.mxu1 %v7572_v1 }
 0x3fb   : > { %5063 = vmatpush3.bf16.msra.mxu1 %v7572_v1 }
 0x3fc   : > { %5064 = vmatprep.subr.bf16.mxu1 %v7573_v38 }
 0x3fe   : > { %5031 = vmatmul.mubr.bf16.gmra.mrb[24].mxu1 %v4477_v55  ;;  %v5633_v55 = vld [vmem:[%s7422_s5 + $0x50] sm:$0xf] }
 0x3ff   : > { %5065 = vmatpush3.bf16.msra.mxu1 %v7573_v38  ;;  %5034 = vmatprep.mubr.bf16.mxu1 %v4478_v58  ;;  %v2252_v58 = vunpack.c.l.bf16 %v5633_v55  ;;  %v5634_v38 = vld [vmem:[%s7422_s5 + $0x58] sm:$0xf] }
 0x400   : > { %5066 = vmatprep.subr.bf16.mxu1 %v7574_v49 }
 0x403   : > { %5067 = vmatpush3.bf16.msra.mxu1 %v7574_v49  ;;  %v2253_v49 = vunpack.c.l.bf16 %v5634_v38 }
 0x404   : > { %5068 = vmatprep.subr.bf16.mxu1 %v7575_v60 }
 0x406   : > { %5035 = vmatmul.mubr.bf16.gmra.mrb[28].mxu1 %v4479_v46  ;;  %v2250_v46 = vunpack.c.l.bf16 %v5635_v34 }
 0x407   : > { %5069 = vmatpush3.bf16.msra.mxu1 %v7575_v60  ;;  %v5406_v60 = vld [vmem:[%s7426_s9 + $0x18] sm:$0xff]  }
 0x408   : > { %5070 = vmatprep.subr.bf16.mxu1 %v7576_v6 }
 0x40b   : > { %5071 = vmatpush3.bf16.msra.mxu1 %v7576_v6  ;;  %v5636_v6 = vld [vmem:[%s7422_s5 + $0x48] sm:$0xf] }
 0x40c   : > { %5088 = vmatprep.subr.bf16.mxu1 %v5403_v8 }
 0x487   : > { %v5042_v3 = vpop.f32.mrb[32].mxu0 }
 0x488   : > { %v2179_v44 = vpop.f32.mrb[33].mxu0  ;;  %v2260_v50 = vmul.f32 %v5042_v3, %v2244_v2 }
 0x489   : > { %v5043_v47 = vpop.f32.mrb[34].mxu0  ;;  %v2258_v7 = vmul.f32 %v2242_v20, %v2179_v44  ;;  %v5637_v44 = vld [vmem:[%s7422_s5 + $0x70] sm:$0xf] }
 0x48a   : > { %v2261_v62 = vmul.f32 %v5043_v47, %v2245_v43  ;;  %v2182_v42 = vpop.f32.mrb[35].mxu0  ;;  %v2256_v47 = vunpack.c.l.bf16 %v5637_v44 }
 0x48b   : > { %v2259_v51 = vmul.f32 %v2243_v21, %v2182_v42 }
 0x48c   : > { %v2275_v53 = vpack.c.bf16 %v2261_v62, %v2260_v50  ;;  %v5638_v50 = vld [vmem:[%s7422_s5 + $0x78] sm:$0xf] }
 0x48d   : > { %v2274_v32 = vpack.c.bf16 %v2259_v51, %v2258_v7  ;;  %v2257_v62 = vunpack.c.l.bf16 %v5638_v50  ;;  %v5639_v7 = vld [vmem:[%s7422_s5 + $0x60] sm:$0xf] }
 0x48e   : > { %v2254_v51 = vunpack.c.l.bf16 %v5639_v7 }
 0x48f   : > { %v5046_v48 = vpop.f32.mrb[36].mxu0  ;;  %5072 = vmatprep.mubr.bf16.mxu1 %v2274_v32 }
 0x490   : > { %v2195_v37 = vpop.f32.mrb[37].mxu0  ;;  %5073 = vmatmul.mubr.bf16.vlgmr.msra.gmra.mrb[32].mxu1 %v2275_v53  ;;  %v2264_v15 = vmul.f32 %v5046_v48, %v2248_v61  ;;  %v5640_v53 = vld [vmem:[%s7422_s5 + $0x68] sm:$0xf]  ;;  %v6648_v48 = vld [vmem:[%s6645_s27] sm:$0xff]  }
 0x491   : > { %v5047_v52 = vpop.f32.mrb[38].mxu0  ;;  %5089 = vmatpush3.bf16.msra.mxu1 %v5403_v8  ;;  %v2262_v26 = vmul.f32 %v2246_v5, %v2195_v37  ;;  %v2251_v8 = vunpack.c.l.bf16 %v5636_v6  ;;  %v2255_v32 = vunpack.c.l.bf16 %v5640_v53  ;;  %v6653_v37 = vld [vmem:[%s6645_s27 + $0x8] sm:$0xff]  }
 0x492   : > { %v2265_v41 = vmul.f32 %v5047_v52, %v2249_v27  ;;  %v2198_v45 = vpop.f32.mrb[39].mxu0  ;;  %5090 = vmatprep.subr.bf16.mxu1 %v5404_v57  ;;  %v6656_v52 = vld [vmem:[%s6645_s27 + $0x10] sm:$0xff]  }
 0x493   : > { %v2263_v1 = vmul.f32 %v2247_v33, %v2198_v45  ;;  %v6670_v45 = vld [vmem:[%s6645_s27 + $0x28] sm:$0xff]  }
 0x494   : > { %v2277_v14 = vpack.c.bf16 %v2265_v41, %v2264_v15  ;;  %v6663_v15 = vld [vmem:[%s6645_s27 + $0x18] sm:$0xff]   ;;  %v654_v41 = vld [vmem:[%s6645_s27 + $0x20] sm:$0xff]  }
 0x495   : > { %v2276_v56 = vpack.c.bf16 %v2263_v1, %v2262_v26  ;;  %5091 = vmatpush3.bf16.msra.mxu1 %v5404_v57  ;;  %v660_v26 = vld [vmem:[%s6645_s27 + $0x38] sm:$0xff]  }
 0x496   : > { %5092 = vmatprep.subr.bf16.mxu1 %v5405_v0 }
 0x497   : > { %v5050_v39 = vpop.f32.mrb[40].mxu0  ;;  %5076 = vmatprep.mubr.bf16.mxu1 %v2276_v56 }
 0x498   : > { %v2211_v35 = vpop.f32.mrb[41].mxu0  ;;  %5077 = vmatmul.mubr.bf16.gmra.mrb[36].mxu1 %v2277_v14  ;;  %v2268_v36 = vmul.f32 %v5050_v39, %v2252_v58  ;;  %v2583_v39 = vpop.permute.xlu1 %2582 }
 0x499   : > { %v5051_v2 = vpop.f32.mrb[42].mxu0  ;;  %5093 = vmatpush3.bf16.msra.mxu1 %v5405_v0  ;;  %v2266_v54 = vmul.f32 %v2250_v46, %v2211_v35  ;;  %v658_v0 = vld [vmem:[%s6645_s27 + $0x30] sm:$0xff]  }
 0x49a   : > { %v2269_v43 = vmul.f32 %v5051_v2, %v2253_v49  ;;  %v2214_v3 = vpop.f32.mrb[43].mxu0  ;;  %5094 = vmatprep.subr.bf16.mxu1 %v5406_v60 }
 0x49b   : > { %v2267_v20 = vmul.f32 %v2251_v8, %v2214_v3  ;;  %v7588_v8 = vld [vmem:[#allocation9_spill] sm:$0xff] }
 0x49c   : > { %v2279_v40 = vpack.c.bf16 %v2269_v43, %v2268_v36  ;;  %v2591_v35 = vpop.permute.xlu1 %2590  ;;  %v7589_v53 = vunpack.c.l.bf16 %v7588_v8 }
 0x49d   : > { %v2278_v21 = vpack.c.bf16 %v2267_v20, %v2266_v54  ;;  %5095 = vmatpush3.bf16.msra.mxu1 %v5406_v60  ;;  %v2587_v20 = vpop.permute.xlu0 %2586 }
 0x49f   : > { %v5054_v42 = vpop.f32.mrb[44].mxu0  ;;  %5080 = vmatprep.mubr.bf16.mxu1 %v2278_v21 }
 0x4a0   : > { %v2227_v59 = vpop.f32.mrb[45].mxu0  ;;  %5081 = vmatmul.mubr.bf16.gmra.mrb[40].mxu1 %v2279_v40  ;;  %v2272_v9 = vmul.f32 %v5054_v42, %v2256_v47  ;;  %v2595_v21 = vpop.permute.xlu1 %2594 }
 0x4a1   : > { %v5055_v61 = vpop.f32.mrb[46].mxu0  ;;  %v2270_v4 = vmul.f32 %v2254_v51, %v2227_v59  ;;  %v2599_v50 = vpop.permute.xlu0 %2598 }
 0x4a2   : > { %v2273_v27 = vmul.f32 %v5055_v61, %v2257_v62  ;;  %v2230_v57 = vpop.f32.mrb[47].mxu0 }
 0x4a3   : > { %v2271_v5 = vmul.f32 %v2255_v32, %v2230_v57 }
 0x4a4   : > { %v2281_v63 = vpack.c.bf16 %v2273_v27, %v2272_v9  ;;  %v2603_v51 = vpop.permute.xlu1 %2602 }
 0x4a5   : > { %v2280_v33 = vpack.c.bf16 %v2271_v5, %v2270_v4  ;;  %v2607_v32 = vpop.permute.xlu0 %2606 }
 0x4a7   : > { %5084 = vmatprep.mubr.bf16.mxu1 %v2280_v33 }
 0x4a8   : > { %5085 = vmatmul.mubr.bf16.gmra.mrb[44].mxu1 %v2281_v63  ;;  %v2611_v27 = vpop.permute.xlu1 %2610 }
 0x4a9   : > { %5096 = vmatprep.mubr.msk.bf16.mxu1 %vm2459_vm0, %v6648_v48 }
 0x4b0   : > { %5097 = vmatmul.mubr.msk.bf16.vlgmr.msra.gmra.mrb[16].mxu1 %vm2459_vm0, %v6653_v37 }
 0x4b1   : > { %5100 = vmatprep.mubr.msk.bf16.mxu1 %vm2459_vm0, %v6656_v52 }
 0x4b8   : > { %5101 = vmatmul.mubr.msk.bf16.gmra.mrb[20].mxu1 %vm2459_vm0, %v6663_v15 }
 0x4b9   : > { %5104 = vmatprep.mubr.msk.bf16.mxu1 %vm2459_vm0, %v654_v41 }
 0x4c0   : > { %5105 = vmatmul.mubr.msk.bf16.gmra.mrb[24].mxu1 %vm2459_vm0, %v6670_v45 }
 0x4c1   : > { %5108 = vmatprep.mubr.msk.bf16.mxu1 %vm2459_vm0, %v658_v0 }
 0x4c8   : > { %5109 = vmatmul.mubr.msk.bf16.gmra.mrb[28].mxu1 %vm2459_vm0, %v660_v26  ;;  %v7585_v26 = vld [vmem:[#allocation8_spill] sm:$0xff] }
 0x4c9   : > { %v7586_v42 = vunpack.c.l.bf16 %v7585_v26 }
 0x4cb   : > { %v2709_v40 = vsel %vm7518_vm2, 1.0, %v7586_v42 }
 0x4cc   : > { %vm2725_vm11 = vcmp.gt.f32.partialorder %v2709_v40, 0.0 }
 0x563   : > { %v6678_v1 = vpop.f32.mrb[32].mxu1 }
 0x564   : > { %v6680_v14 = vpop.f32.mrb[33].mxu1 }
 0x565   : > { %v6682_v56 = vpop.f32.mrb[34].mxu1 }
 0x566   : > { %v6686_v58 = vpop.f32.mrb[35].mxu1 }
 0x56b   : > { %v6690_v49 = vpop.f32.mrb[36].mxu1 }
 0x56c   : > { %v6692_v60 = vpop.f32.mrb[37].mxu1 }
 0x56d   : > { %v6694_v34 = vpop.f32.mrb[38].mxu1 }
 0x56e   : > { %v6698_v6 = vpop.f32.mrb[39].mxu1 }
 0x573   : > { %v6702_v2 = vpop.f32.mrb[40].mxu1 }
 0x574   : > { %7577 = vst [vmem:[#allocation3_spill] sm:$0xff] %v6702_v2  ;;  %v6704_v36 = vpop.f32.mrb[41].mxu1 }
 0x575   : > { %7578 = vst [vmem:[#allocation2_spill] sm:$0xff] %v6704_v36  ;;  %v6706_v43 = vpop.f32.mrb[42].mxu1 }
 0x576   : > { %7579 = vst [vmem:[#allocation5_spill] sm:$0xff] %v6706_v43  ;;  %v6710_v54 = vpop.f32.mrb[43].mxu1 }
 0x577   : > { %7580 = vst [vmem:[#allocation4_spill] sm:$0xff] %v6710_v54  ;;  %v7616_v54 = vld [vmem:[#allocation28_spill] sm:$0xff] }
 0x57b   : > { %v6714_v44 = vpop.f32.mrb[44].mxu1 }
 0x57c   : > { %7581 = vst [vmem:[#allocation7_spill] sm:$0xff] %v6714_v44  ;;  %v6716_v47 = vpop.f32.mrb[45].mxu1 }
 0x57d   : > { %7582 = vst [vmem:[#allocation6_spill] sm:$0xff] %v6716_v47  ;;  %v6718_v62 = vpop.f32.mrb[46].mxu1 }
 0x57e   : > { %7583 = vst [vmem:[#allocation40_spill] sm:$0xff] %v6718_v62  ;;  %v6722_v7 = vpop.f32.mrb[47].mxu1  ;;  %v7593_v62 = vunpack.c.h.bf16 %v7588_v8 }
 0x57f   : > { %7584 = vst [vmem:[#allocation41_spill] sm:$0xff] %v6722_v7 }
 0x583   : > { %v5098_v59 = vpop.f32.mrb[16].mxu1 }
 0x584   : > { %v5282_v61 = vadd.f32 %v5098_v59, %v2591_v35  ;;  %v2518_v9 = vpop.f32.mrb[17].mxu1  ;;  %v2711_v35 = vsel %vm7520_vm3, 1.0, %v7589_v53  ;;  %v2615_v59 = vpop.permute.xlu0 %2614  ;;  %v2712_v53 = vsel %vm826_vm5, 1.0, %v7593_v62 }
 0x585   : > { %v5283_v57 = vadd.f32 %v2583_v39, %v2518_v9  ;;  %v5099_v4 = vpop.f32.mrb[18].mxu1  ;;  %vm2727_vm2 = vcmp.gt.f32.partialorder %v2711_v35, 0.0 }
 0x586   : > { %v2679_v5 = vmul.f32 0.01, %v5282_v61  ;;  %v5284_v63 = vadd.f32 %v5099_v4, %v2595_v21  ;;  %v2521_v33 = vpop.f32.mrb[19].mxu1  ;;  %v7591_v21 = vunpack.c.h.bf16 %v7585_v26 }
 0x587   : > { %v2677_v41 = vmul.f32 0.01, %v5283_v57  ;;  %v5285_v0 = vadd.f32 %v2587_v20, %v2521_v33  ;;  %v2619_v33 = vpop.permute.xlu1 %2618 }
 0x588   : > { %v2680_v46 = vmul.f32 0.01, %v5284_v63  ;;  %v2695_v38 = vmax.f32 %v5282_v61, %v2679_v5  ;;  %v2710_v20 = vsel %vm824_vm4, 1.0, %v7591_v21 }
 0x589   : > { %v2693_v39 = vmax.f32 %v5283_v57, %v2677_v41  ;;  %v2678_v9 = vmul.f32 0.01, %v5285_v0  ;;  %vm2726_vm3 = vcmp.gt.f32.partialorder %v2710_v20, 0.0 }
 0x58a   : > { %v2696_v61 = vmax.f32 %v5284_v63, %v2680_v46  ;;  %v2623_v46 = vpop.permute.xlu0 %2622  ;;  %v7595_v63 = vld [vmem:[#allocation10_spill] sm:$0xff] }
 0x58b   : > { %v2694_v44 = vmax.f32 %v5285_v0, %v2678_v9  ;;  %v5102_v3 = vpop.f32.mrb[20].mxu1  ;;  %v6738_v42 = vsel %vm2725_vm11, %v2693_v39, -inf  ;;  %v6748_v39 = vsel %vm2727_vm2, %v2695_v38, -inf  ;;  %vm2728_vm11 = vcmp.gt.f32.partialorder %v2712_v53, 0.0 }
 0x58c   : > { %v5286_v57 = vadd.f32 %v5102_v3, %v2607_v32  ;;  %v2534_v5 = vpop.f32.mrb[21].mxu1  ;;  %v2757_v41 = vsel %vm774_vm1, %v6738_v42, -inf  ;;  %v7596_v21 = vunpack.c.l.bf16 %v7595_v63  ;;  %v2763_v38 = vsel %vm774_vm1, %v6748_v39, -inf }
 0x58d   : > { %v5287_v26 = vadd.f32 %v2599_v50, %v2534_v5  ;;  %2758 = vmax.xlane.f32.xlu0 %v2757_v41  ;;  %v5103_v40 = vpop.f32.mrb[22].mxu1  ;;  %v6746_v0 = vsel %vm2726_vm3, %v2694_v44, -inf  ;;  %v6758_v44 = vsel %vm2728_vm11, %v2696_v61, -inf  ;;  %v7601_v4 = vunpack.c.h.bf16 %v7595_v63 }
 0x58e   : > { %v2683_v35 = vmul.f32 0.01, %v5286_v57  ;;  %v5288_v9 = vadd.f32 %v5103_v40, %v2611_v27  ;;  %v2537_v8 = vpop.f32.mrb[23].mxu1  ;;  %v2760_v62 = vsel %vm774_vm1, %v6746_v0, -inf  ;;  %v2713_v20 = vsel %vm827_vm8, 1.0, %v7596_v21  ;;  %v7598_v27 = vld [vmem:[#allocation11_spill] sm:$0xff] }
 0x58f   : > { %v2681_v3 = vmul.f32 0.01, %v5287_v26  ;;  %v5289_v32 = vadd.f32 %v2603_v51, %v2537_v8  ;;  %2761 = vmax.xlane.f32.xlu1 %v2760_v62  ;;  %v7599_v5 = vunpack.c.l.bf16 %v7598_v27  ;;  %v2714_v53 = vsel %vm7525_vm7, 1.0, %v7601_v4  ;;  %v2627_v8 = vpop.permute.xlu1 %2626 }
 0x590   : > { %v2699_v62 = vmax.f32 %v5286_v57, %v2683_v35  ;;  %v2684_v50 = vmul.f32 0.01, %v5288_v9  ;;  %vm2729_vm2 = vcmp.gt.f32.partialorder %v2713_v20, 0.0  ;;  %vm2730_vm11 = vcmp.gt.f32.partialorder %v2714_v53, 0.0 }
 0x591   : > { %v2715_v40 = vsel %vm829_vm13, 1.0, %v7599_v5  ;;  %v2697_v55 = vmax.f32 %v5287_v26, %v2681_v3  ;;  %v2682_v21 = vmul.f32 0.01, %v5289_v32  ;;  %2764 = vmax.xlane.f32.xlu0 %v2763_v38  ;;  %v2766_v63 = vsel %vm774_vm1, %v6758_v44, -inf  ;;  %v2631_v3 = vpop.permute.xlu0 %2630 }
 0x592   : > { %vm2731_vm3 = vcmp.gt.f32.partialorder %v2715_v40, 0.0  ;;  %v7603_v57 = vunpack.c.h.bf16 %v7598_v27 }
 0x593   : > { %v2698_v47 = vmax.f32 %v5289_v32, %v2682_v21  ;;  %v5106_v61 = vpop.f32.mrb[24].mxu1  ;;  %v6768_v7 = vsel %vm2729_vm2, %v2697_v55, -inf  ;;  %v2700_v32 = vmax.f32 %v5288_v9, %v2684_v50  ;;  %v6778_v38 = vsel %vm2731_vm3, %v2699_v62, -inf  ;;  %v2635_v26 = vpop.permute.xlu1 %2634  ;;  %v7609_v9 = vld [vmem:[#allocation20_spill] sm:$0xff] }
 0x594   : > { %v5290_v41 = vadd.f32 %v5106_v61, %v2623_v46  ;;  %v2550_v5 = vpop.f32.mrb[25].mxu1  ;;  %v2769_v4 = vsel %vm774_vm1, %v6768_v7, -inf  ;;  %v2716_v35 = vsel %vm7529_vm15, 1.0, %v7603_v57  ;;  %v7605_v61 = vld [vmem:[#allocation12_spill] sm:$0xff]  ;;  %vm7610_vm7 = vcmp.eq.f32.partialorder %v7609_v9, 0.0 }
 0x595   : > { %v5291_v20 = vadd.f32 %v2615_v59, %v2550_v5  ;;  %2767 = vmax.xlane.f32.xlu0 %v2766_v63  ;;  %2770 = vmax.xlane.f32.xlu1 %v2769_v4  ;;  %v5107_v55 = vpop.f32.mrb[26].mxu1  ;;  %v6780_v46 = vsel %vm2730_vm11, %v2698_v47, -inf  ;;  %v7606_v51 = vunpack.c.h.bf16 %v7605_v61  ;;  %vm2732_vm2 = vcmp.gt.f32.partialorder %v2716_v35, 0.0  ;;  %v7611_v5 = vld [vmem:[#allocation13_spill] sm:$0xff] }
 0x596   : > { %v2687_v40 = vmul.f32 0.01, %v5290_v41  ;;  %v5292_v53 = vadd.f32 %v5107_v55, %v2627_v8  ;;  %v2553_v21 = vpop.f32.mrb[27].mxu1  ;;  %v7608_v59 = vunpack.c.l.bf16 %v7605_v61  ;;  %v2775_v47 = vsel %vm774_vm1, %v6778_v38, -inf  ;;  %v7613_v4 = vld [vmem:[#allocation21_spill] sm:$0xff]  ;;  %v2639_v61 = vpop.permute.xlu0 %2638 }
 0x597   : > { %v2718_v27 = vsel %vm7526_vm9, 1.0, %v7606_v51  ;;  %v2685_v57 = vmul.f32 0.01, %v5291_v20  ;;  %v5293_v43 = vadd.f32 %v2619_v33, %v2553_v21  ;;  %v2772_v8 = vsel %vm774_vm1, %v6780_v46, -inf }
 0x598   : > { %v2717_v50 = vsel %vm7610_vm7, 1.0, %v7608_v59  ;;  %v2688_v62 = vmul.f32 0.01, %v5292_v53  ;;  %v7612_v63 = vunpack.c.l.bf16 %v7611_v5  ;;  %vm7614_vm3 = vcmp.eq.f32.partialorder %v7613_v4, 0.0 }
 0x599   : > { %v2703_v55 = vmax.f32 %v5290_v41, %v2687_v40  ;;  %v2701_v33 = vmax.f32 %v5291_v20, %v2685_v57  ;;  %v2686_v35 = vmul.f32 0.01, %v5293_v43  ;;  %2776 = vmax.xlane.f32.xlu1 %v2775_v47  ;;  %2773 = vmax.xlane.f32.xlu0 %v2772_v8  ;;  %v6798_v21 = vsel %vm2732_vm2, %v2700_v32, -inf }
 0x59a   : > { %v2719_v51 = vsel %vm7614_vm3, 1.0, %v7612_v63  ;;  %vm2733_vm7 = vcmp.gt.f32.partialorder %v2717_v50, 0.0  ;;  %vm2734_vm11 = vcmp.gt.f32.partialorder %v2718_v27, 0.0  ;;  %v7615_v36 = vunpack.c.h.bf16 %v7611_v5  ;;  %v2643_v50 = vpop.permute.xlu1 %2642 }
 0x59b   : > { %v2702_v59 = vmax.f32 %v5293_v43, %v2686_v35  ;;  %v5110_v2 = vpop.f32.mrb[28].mxu1  ;;  %v6800_v9 = vsel %vm2733_vm7, %v2701_v33, -inf  ;;  %vm2735_vm9 = vcmp.gt.f32.partialorder %v2719_v51, 0.0  ;;  %vm7617_vm15 = vcmp.eq.f32.partialorder %v7616_v54, 0.0  ;;  %v7618_v33 = vld [vmem:[#allocation14_spill] sm:$0xff] }
 0x59c   : > { %v2720_v63 = vsel %vm7617_vm15, 1.0, %v7615_v36  ;;  %v2704_v41 = vmax.f32 %v5292_v53, %v2688_v62  ;;  %v5294_v20 = vadd.f32 %v5110_v2, %v2639_v61  ;;  %v2566_v40 = vpop.f32.mrb[29].mxu1  ;;  %v2778_v32 = vsel %vm774_vm1, %v6798_v21, -inf }
 0x59d   : > { %v2781_v57 = vsel %vm774_vm1, %v6800_v9, -inf  ;;  %v5295_v43 = vadd.f32 %v2631_v3, %v2566_v40  ;;  %2779 = vmax.xlane.f32.xlu0 %v2778_v32  ;;  %v5111_v47 = vpop.f32.mrb[30].mxu1  ;;  %v6810_v8 = vsel %vm2735_vm9, %v2703_v55, -inf  ;;  %v6813_v5 = vsel %vm2734_vm11, %v2702_v59, -inf  ;;  %v7623_v32 = vld [vmem:[#allocation15_spill] sm:$0xff]  ;;  %v7625_v59 = vld [vmem:[#allocation30_spill] sm:$0xff] }
 0x59e   : > { %2782 = vmax.xlane.f32.xlu1 %v2781_v57  ;;  %v2691_v36 = vmul.f32 0.01, %v5294_v20  ;;  %v5296_v53 = vadd.f32 %v5111_v47, %v2643_v50  ;;  %v2569_v2 = vpop.f32.mrb[31].mxu1  ;;  %vm2736_vm15 = vcmp.gt.f32.partialorder %v2720_v63, 0.0  ;;  %v7619_v35 = vunpack.c.l.bf16 %v7618_v33 }
 0x59f   : > { %v2689_v62 = vmul.f32 0.01, %v5295_v43  ;;  %v5297_v51 = vadd.f32 %v2635_v26, %v2569_v2  ;;  %v7621_v3 = vunpack.c.h.bf16 %v7618_v33  ;;  %v7624_v27 = vunpack.c.l.bf16 %v7623_v32 }
 0x5a0   : > { %v2721_v54 = vsel %vm835_vm6, 1.0, %v7619_v35  ;;  %vm7626_vm9 = vcmp.eq.f32.partialorder %v7625_v59, 0.0  ;;  %v2787_v63 = vsel %vm774_vm1, %v6810_v8, -inf  ;;  %v2784_v26 = vsel %vm774_vm1, %v6813_v5, -inf }
 0x5a1   : > { %v2722_v55 = vsel %vm836_vm10, 1.0, %v7621_v3  ;;  %v2723_v57 = vsel %vm7626_vm9, 1.0, %v7624_v27  ;;  %v6831_v50 = vsel %vm2736_vm15, %v2704_v41, -inf  ;;  %v2707_v47 = vmax.f32 %v5294_v20, %v2691_v36  ;;  %2785 = vmax.xlane.f32.xlu0 %v2784_v26 }
 0x5a2   : > { %v2705_v2 = vmax.f32 %v5295_v43, %v2689_v62  ;;  %v2692_v35 = vmul.f32 0.01, %v5296_v53  ;;  %v2690_v33 = vmul.f32 0.01, %v5297_v51  ;;  %2788 = vmax.xlane.f32.xlu1 %v2787_v63  ;;  %vm2737_vm2 = vcmp.gt.f32.partialorder %v2721_v54, 0.0 }
 0x5a3   : > { %vm2739_vm3 = vcmp.gt.f32.partialorder %v2723_v57, 0.0  ;;  %v2790_v27 = vsel %vm774_vm1, %v6831_v50, -inf  ;;  %vm2738_vm7 = vcmp.gt.f32.partialorder %v2722_v55, 0.0  ;;  %v7627_v41 = vunpack.c.h.bf16 %v7623_v32 }
 0x5a4   : > { %v2706_v3 = vmax.f32 %v5297_v51, %v2690_v33  ;;  %v6833_v40 = vsel %vm2737_vm2, %v2705_v2, -inf  ;;  %v2708_v36 = vmax.f32 %v5296_v53, %v2692_v35  ;;  %v6843_v54 = vsel %vm2739_vm3, %v2707_v47, -inf }
 0x5a5   : > { %v2793_v61 = vsel %vm774_vm1, %v6833_v40, -inf  ;;  %v2724_v43 = vsel %vm838_vm12, 1.0, %v7627_v41  ;;  %2791 = vmax.xlane.f32.xlu0 %v2790_v27  ;;  %v2799_v51 = vsel %vm774_vm1, %v6843_v54, -inf }
 0x5a6   : > { %2794 = vmax.xlane.f32.xlu1 %v2793_v61  ;;  %v6845_v62 = vsel %vm2738_vm7, %v2706_v3, -inf  ;;  %vm2740_vm11 = vcmp.gt.f32.partialorder %v2724_v43, 0.0  ;;  %v2933_v61 = vld [vmem:[%s7430_s13] sm:$0xf] }
 0x5a7   : > { %v2796_v57 = vsel %vm774_vm1, %v6845_v62, -inf  ;;  %v6851_v55 = vsel %vm2740_vm11, %v2708_v36, -inf  ;;  %5347 = vmatprep.subr.msk.bf16.mxu0 %vm2141_vm14, %v2933_v61  ;;  %v2967_v32 = vsel %vm2141_vm14, %v2933_v61, 0  ;;  %5348 = vmatprep.subr.msk.bf16.mxu1 %vm2141_vm14, %v2933_v61 }
 0x5a8   : > { %v2802_v53 = vsel %vm774_vm1, %v6851_v55, -inf  ;;  %5113 = vmatpush3.bf16.msra.mxu0 %v2967_v32  ;;  %5281 = vmatpush3.bf16.msra.mxu1 %v2967_v32 }
 0x5a9   : > { %2797 = vmax.xlane.f32.xlu0 %v2796_v57 }
 0x5aa   : > { %2800 = vmax.xlane.f32.xlu1 %v2799_v51 }
 0x5ad   : > { %2803 = vmax.xlane.f32.xlu0 %v2802_v53 }
 0x61a   : > { %v2759_v63 = vpop.xlane.xlu0 %2758 }
 0x61b   : > { %v2805_v26 = vsub.f32 %v6738_v42, %v2759_v63 }
 0x61c   : > { %v2762_v47 = vpop.xlane.xlu1 %2761 }
 0x61d   : > { %v2821_v2 = vmul.f32 1.442695, %v2805_v26  ;;  %v2806_v35 = vsub.f32 %v6746_v0, %v2762_v47 }
 0x61e   : > { %v2765_v33 = vpop.xlane.xlu0 %2764 }
 0x61f   : > { %5497 = vpow2.f32 %v2821_v2  ;;  %v2823_v3 = vmul.f32 1.442695, %v2806_v35  ;;  %v2807_v27 = vsub.f32 %v6748_v39, %v2765_v33 }
 0x621   : > { %5499 = vpow2.f32 %v2823_v3  ;;  %v2825_v41 = vmul.f32 1.442695, %v2807_v27 }
 0x622   : > { %v2768_v43 = vpop.xlane.xlu0 %2767  ;;  %v2771_v36 = vpop.xlane.xlu1 %2770 }
 0x623   : > { %5501 = vpow2.f32 %v2825_v41  ;;  %v2808_v51 = vsub.f32 %v6758_v44, %v2768_v43  ;;  %v2809_v57 = vsub.f32 %v6768_v7, %v2771_v36 }
 0x625   : > { %v2827_v53 = vmul.f32 1.442695, %v2808_v51  ;;  %v2829_v42 = vmul.f32 1.442695, %v2809_v57 }
 0x626   : > { %v2777_v61 = vpop.xlane.xlu1 %2776  ;;  %v2774_v32 = vpop.xlane.xlu0 %2773 }
 0x627   : > { %5503 = vpow2.f32 %v2827_v53  ;;  %v2811_v0 = vsub.f32 %v6778_v38, %v2777_v61  ;;  %v2810_v63 = vsub.f32 %v6780_v46, %v2774_v32 }
 0x628   : > { %5505 = vpow2.f32 %v2829_v42 }
 0x629   : > { %v6868_v39 = vpop.eup %5497  ;;  %v2833_v26 = vmul.f32 1.442695, %v2811_v0  ;;  %v2831_v47 = vmul.f32 1.442695, %v2810_v63 }
 0x62a   : > { %v2780_v2 = vpop.xlane.xlu0 %2779  ;;  %v2853_v44 = vsel %vm774_vm1, %v6868_v39, 0.0 }
 0x62b   : > { %v2783_v35 = vpop.xlane.xlu1 %2782  ;;  %v6872_v7 = vpop.eup %5499  ;;  %5507 = vpow2.f32 %v2833_v26  ;;  %v2812_v33 = vsub.f32 %v6798_v21, %v2780_v2  ;;  %2854 = vadd.xlane.f32.xlu1 %v2853_v44 }
 0x62c   : > { %v2813_v3 = vsub.f32 %v6800_v9, %v2783_v35  ;;  %5509 = vpow2.f32 %v2831_v47  ;;  %v2856_v38 = vsel %vm774_vm1, %v6872_v7, 0.0 }
 0x62d   : > { %v6878_v46 = vpop.eup %5501  ;;  %v2835_v27 = vmul.f32 1.442695, %v2812_v33  ;;  %2857 = vadd.xlane.f32.xlu0 %v2856_v38 }
 0x62e   : > { %v2837_v41 = vmul.f32 1.442695, %v2813_v3  ;;  %v2786_v36 = vpop.xlane.xlu0 %2785  ;;  %v2859_v51 = vsel %vm774_vm1, %v6878_v46, 0.0 }
 0x62f   : > { %v2789_v43 = vpop.xlane.xlu1 %2788  ;;  %5511 = vpow2.f32 %v2835_v27  ;;  %v2814_v9 = vsub.f32 %v6813_v5, %v2786_v36  ;;  %2860 = vadd.xlane.f32.xlu1 %v2859_v51 }
 0x630   : > { %v2815_v21 = vsub.f32 %v6810_v8, %v2789_v43  ;;  %5513 = vpow2.f32 %v2837_v41 }
 0x631   : > { %v6884_v57 = vpop.eup %5503  ;;  %v2839_v42 = vmul.f32 1.442695, %v2814_v9 }
 0x632   : > { %v2841_v53 = vmul.f32 1.442695, %v2815_v21  ;;  %v6886_v61 = vpop.eup %5505  ;;  %v2792_v32 = vpop.xlane.xlu0 %2791  ;;  %v2862_v63 = vsel %vm774_vm1, %v6884_v57, 0.0 }
 0x633   : > { %v2795_v0 = vpop.xlane.xlu1 %2794  ;;  %v2816_v26 = vsub.f32 %v6831_v50, %v2792_v32  ;;  %v2865_v5 = vsel %vm774_vm1, %v6886_v61, 0.0  ;;  %2863 = vadd.xlane.f32.xlu0 %v2862_v63 }
 0x634   : > { %5515 = vpow2.f32 %v2841_v53  ;;  %v2817_v8 = vsub.f32 %v6833_v40, %v2795_v0  ;;  %2866 = vadd.xlane.f32.xlu1 %v2865_v5 }
 0x635   : > { %5517 = vpow2.f32 %v2839_v42  ;;  %v6894_v47 = vpop.eup %5507  ;;  %v2843_v2 = vmul.f32 1.442695, %v2816_v26 }
 0x636   : > { %v2845_v35 = vmul.f32 1.442695, %v2817_v8  ;;  %v6896_v44 = vpop.eup %5509  ;;  %v2798_v3 = vpop.xlane.xlu0 %2797  ;;  %v2871_v38 = vsel %vm774_vm1, %v6894_v47, 0.0 }
 0x637   : > { %v2801_v33 = vpop.xlane.xlu1 %2800  ;;  %5519 = vpow2.f32 %v2843_v2  ;;  %v2818_v50 = vsub.f32 %v6845_v62, %v2798_v3  ;;  %v2868_v27 = vsel %vm774_vm1, %v6896_v44, 0.0 }
 0x638   : > { %v2819_v40 = vsub.f32 %v6843_v54, %v2801_v33  ;;  %5521 = vpow2.f32 %v2845_v35  ;;  %2872 = vadd.xlane.f32.xlu1 %v2871_v38  ;;  %2869 = vadd.xlane.f32.xlu0 %v2868_v27  ;;  %v6948_v27 = vld [vmem:[%s7428_s11] sm:$0xff]  }
 0x639   : > { %v6904_v41 = vpop.eup %5511  ;;  %v2847_v36 = vmul.f32 1.442695, %v2818_v50  ;;  %v3098_v50 = vld [vmem:[%s7427_s10] sm:$0xf]  ;;  %5148 = vmatprep.subr.bf16.mxu1 %v6948_v27 }
 0x63a   : > { %v2849_v43 = vmul.f32 1.442695, %v2819_v40  ;;  %v6906_v51 = vpop.eup %5513  ;;  %v2804_v21 = vpop.xlane.xlu0 %2803  ;;  %v2874_v9 = vsel %vm774_vm1, %v6904_v41, 0.0  ;;  %5349 = vmatprep.subr.msk.bf16.mxu0 %vm2141_vm14, %v3098_v50 }
 0x63b   : > { %v2820_v54 = vsub.f32 %v6851_v55, %v2804_v21  ;;  %v2877_v62 = vsel %vm774_vm1, %v6906_v51, 0.0 }
 0x63c   : > { %5523 = vpow2.f32 %v2849_v43  ;;  %2878 = vadd.xlane.f32.xlu1 %v2877_v62  ;;  %2875 = vadd.xlane.f32.xlu0 %v2874_v9 }
 0x63d   : > { %5525 = vpow2.f32 %v2847_v36  ;;  %v2851_v42 = vmul.f32 1.442695, %v2820_v54 }
 0x63e   : > { %v6913_v53 = vpop.eup %5515 }
 0x63f   : > { %v6915_v32 = vpop.eup %5517  ;;  %v2883_v0 = vsel %vm774_vm1, %v6913_v53, 0.0  ;;  %5527 = vpow2.f32 %v2851_v42 }
 0x640   : > { %v2880_v63 = vsel %vm774_vm1, %v6915_v32, 0.0  ;;  %2884 = vadd.xlane.f32.xlu1 %v2883_v0 }
 0x641   : > { %2881 = vadd.xlane.f32.xlu0 %v2880_v63  ;;  %v6921_v55 = vpop.eup %5519 }
 0x642   : > { %v6923_v26 = vpop.eup %5521  ;;  %v2886_v8 = vsel %vm774_vm1, %v6921_v55, 0.0 }
 0x643   : > { %v2889_v5 = vsel %vm774_vm1, %v6923_v26, 0.0 }
 0x644   : > { %2890 = vadd.xlane.f32.xlu1 %v2889_v5 }
 0x645   : > { %2887 = vadd.xlane.f32.xlu0 %v2886_v8 }
 0x646   : > { %v6929_v2 = vpop.eup %5523 }
 0x647   : > { %v6931_v35 = vpop.eup %5525  ;;  %v2895_v33 = vsel %vm774_vm1, %v6929_v2, 0.0 }
 0x648   : > { %v2892_v3 = vsel %vm774_vm1, %v6931_v35, 0.0  ;;  %2896 = vadd.xlane.f32.xlu1 %v2895_v33 }
 0x649   : > { %2893 = vadd.xlane.f32.xlu0 %v2892_v3  ;;  %v6937_v38 = vpop.eup %5527 }
 0x64a   : > { %v2898_v40 = vsel %vm774_vm1, %v6937_v38, 0.0 }
 0x64d   : > { %2899 = vadd.xlane.f32.xlu0 %v2898_v40 }
 0x6b8   : > { %v2855_v43 = vpop.xlane.xlu1 %2854 }
 0x6b9   : > { %5529 = vrcp.f32 %v2855_v43 }
 0x6ba   : > { %v2858_v36 = vpop.xlane.xlu0 %2857 }
 0x6bb   : > { %5531 = vrcp.f32 %v2858_v36 }
 0x6bc   : > { %v2861_v21 = vpop.xlane.xlu1 %2860 }
 0x6bd   : > { %5533 = vrcp.f32 %v2861_v21 }
 0x6c0   : > { %v2864_v9 = vpop.xlane.xlu0 %2863 }
 0x6c1   : > { %v2867_v54 = vpop.xlane.xlu1 %2866  ;;  %5535 = vrcp.f32 %v2864_v9 }
 0x6c2   : > { %5537 = vrcp.f32 %v2867_v54 }
 0x6c3   : > { %v5530_v62 = vpop.eup %5529 }
 0x6c4   : > { %v2902_v8 = vmul.f32 %v5530_v62, %v6868_v39 }
 0x6c5   : > { %v5532_v42 = vpop.eup %5531  ;;  %v2873_v0 = vpop.xlane.xlu1 %2872 }
 0x6c6   : > { %v2870_v63 = vpop.xlane.xlu0 %2869  ;;  %v2904_v5 = vmul.f32 %v5532_v42, %v6872_v7  ;;  %v3100_v7 = vsel %vm2141_vm14, %v3098_v50, 0 }
 0x6c7   : > { %5539 = vrcp.f32 %v2870_v63  ;;  %v5534_v3 = vpop.eup %5533 }
 0x6c8   : > { %v2934_v33 = vpack.c.bf16 %v2904_v5, %v2902_v8  ;;  %5541 = vrcp.f32 %v2873_v0  ;;  %v2906_v21 = vmul.f32 %v5534_v3, %v6878_v46 }
 0x6c9   : > { %v2879_v40 = vpop.xlane.xlu1 %2878 }
 0x6ca   : > { %v2876_v43 = vpop.xlane.xlu0 %2875  ;;  %5114 = vmatprep.mubr.msk.bf16.mxu0 %vm774_vm1, %v2934_v33 }
 0x6cb   : > { %v5536_v36 = vpop.eup %5535  ;;  %5543 = vrcp.f32 %v2876_v43 }
 0x6cc   : > { %v2908_v9 = vmul.f32 %v5536_v36, %v6884_v57  ;;  %5545 = vrcp.f32 %v2879_v40  ;;  %v5538_v62 = vpop.eup %5537 }
 0x6cd   : > { %v2885_v54 = vpop.xlane.xlu1 %2884  ;;  %v2910_v8 = vmul.f32 %v5538_v62, %v6886_v61 }
 0x6ce   : > { %v2882_v20 = vpop.xlane.xlu0 %2881  ;;  %v2935_v39 = vpack.c.bf16 %v2908_v9, %v2906_v21 }
 0x6cf   : > { %5547 = vrcp.f32 %v2882_v20 }
 0x6d0   : > { %5115 = vmatmul.mubr.msk.bf16.vlgmr.msra.gmra.mrb[48].mxu0 %vm774_vm1, %v2935_v39  ;;  %5549 = vrcp.f32 %v2885_v54 }
 0x6d1   : > { %v5540_v42 = vpop.eup %5539  ;;  %v2891_v0 = vpop.xlane.xlu1 %2890  ;;  %5131 = vmatpush3.bf16.msra.mxu0 %v3100_v7 }
 0x6d2   : > { %v2888_v63 = vpop.xlane.xlu0 %2887  ;;  %v2912_v46 = vmul.f32 %v5540_v42, %v6896_v44  ;;  %v5542_v57 = vpop.eup %5541 }
 0x6d3   : > { %5551 = vrcp.f32 %v2888_v63  ;;  %v2914_v20 = vmul.f32 %v5542_v57, %v6894_v47  ;;  %v5417_v57 = vld [vmem:[%s7428_s11 + $0x10] sm:$0xff]  }
 0x6d4   : > { %v2936_v5 = vpack.c.bf16 %v2912_v46, %v2910_v8  ;;  %5553 = vrcp.f32 %v2891_v0  ;;  %v5416_v8 = vld [vmem:[%s7428_s11 + $0x8] sm:$0xff]  }
 0x6d5   : > { %v5544_v3 = vpop.eup %5543  ;;  %v2897_v40 = vpop.xlane.xlu1 %2896 }
 0x6d6   : > { %v2894_v50 = vpop.xlane.xlu0 %2893  ;;  %5118 = vmatprep.mubr.msk.bf16.mxu0 %vm774_vm1, %v2936_v5  ;;  %v2916_v43 = vmul.f32 %v5544_v3, %v6904_v41  ;;  %v5546_v36 = vpop.eup %5545 }
 0x6d7   : > { %5555 = vrcp.f32 %v2894_v50  ;;  %v2918_v44 = vmul.f32 %v5546_v36, %v6906_v51 }
 0x6d8   : > { %5557 = vrcp.f32 %v2897_v40  ;;  %v2937_v21 = vpack.c.bf16 %v2916_v43, %v2914_v20  ;;  %v5643_v43 = vld [vmem:[%s7422_s5 + $0x4] sm:$0xf] }
 0x6d9   : > { %v5548_v61 = vpop.eup %5547  ;;  %v3066_v36 = vunpack.c.l.bf16 %v5643_v43 }
 0x6da   : > { %v2900_v9 = vpop.xlane.xlu0 %2899  ;;  %5119 = vmatmul.mubr.msk.bf16.gmra.mrb[52].mxu0 %vm774_vm1, %v2937_v21  ;;  %v2920_v54 = vmul.f32 %v5548_v61, %v6915_v32  ;;  %v5550_v7 = vpop.eup %5549 }
 0x6db   : > { %5559 = vrcp.f32 %v2900_v9  ;;  %5132 = vmatprep.mubr.msk.bf16.mxu0 %vm774_vm1, %v2934_v33  ;;  %v2922_v41 = vmul.f32 %v5550_v7, %v6913_v53 }
 0x6dc   : > { %v2938_v62 = vpack.c.bf16 %v2920_v54, %v2918_v44 }
 0x6dd   : > { %v5552_v47 = vpop.eup %5551 }
 0x6de   : > { %v2924_v42 = vmul.f32 %v5552_v47, %v6921_v55  ;;  %5122 = vmatprep.mubr.msk.bf16.mxu1 %vm774_vm1, %v2938_v62  ;;  %v5554_v0 = vpop.eup %5553 }
 0x6df   : > { %v2926_v32 = vmul.f32 %v5554_v0, %v6923_v26 }
 0x6e0   : > { %v2939_v63 = vpack.c.bf16 %v2924_v42, %v2922_v41 }
 0x6e1   : > { %v5556_v51 = vpop.eup %5555 }
 0x6e2   : > { %v5558_v46 = vpop.eup %5557  ;;  %5123 = vmatmul.mubr.msk.bf16.vlgmr.msra.gmra.mrb[48].mxu1 %vm774_vm1, %v2939_v63  ;;  %5133 = vmatmul.mubr.msk.bf16.vlgmr.msra.gmra.mrb[56].mxu0 %vm774_vm1, %v2935_v39  ;;  %v2928_v53 = vmul.f32 %v5556_v51, %v6931_v35  ;;  %v5418_v35 = vld [vmem:[%s7428_s11 + $0x18] sm:$0xff]  }
 0x6e3   : > { %5149 = vmatpush3.bf16.msra.mxu1 %v6948_v27  ;;  %5136 = vmatprep.mubr.msk.bf16.mxu0 %vm774_vm1, %v2936_v5  ;;  %v2930_v3 = vmul.f32 %v5558_v46, %v6929_v2  ;;  %v7629_v2 = vld [vmem:[#allocation33_spill] sm:$0xff]  ;;  %v5641_v27 = vld [vmem:[%s7422_s5 + $0x14] sm:$0xf] }
 0x6e4   : > { %5150 = vmatprep.subr.bf16.mxu1 %v5416_v8  ;;  %v2940_v33 = vpack.c.bf16 %v2928_v53, %v2926_v32  ;;  %v3068_v39 = vunpack.c.l.bf16 %v5641_v27  ;;  %v5642_v5 = vld [vmem:[%s7422_s5 + $0x1c] sm:$0xf]  ;;  %v5647_v53 = vld [vmem:[%s7422_s5 + $0x24] sm:$0xf] }
 0x6e5   : > { %v5560_v55 = vpop.eup %5559  ;;  %v3069_v50 = vunpack.c.l.bf16 %v5642_v5  ;;  %v5646_v51 = vld [vmem:[%s7422_s5 + $0x3c] sm:$0xf] }
 0x6e6   : > { %v2932_v40 = vmul.f32 %v5560_v55, %v6937_v38  ;;  %5126 = vmatprep.mubr.msk.bf16.mxu1 %vm774_vm1, %v2940_v33  ;;  %v5419_v38 = vld [vmem:[%s7431_s14 + $0x8] sm:$0xff]   ;;  %v3073_v46 = vunpack.c.l.bf16 %v5646_v51  ;;  %v3070_v55 = vunpack.c.l.bf16 %v5647_v53  ;;  %v3199_v51 = vunpack.c.l.bf16 %v6648_v48 }
 0x6e7   : > { %5151 = vmatpush3.bf16.msra.mxu1 %v5416_v8  ;;  %5204 = vmatprep.subr.bf16.mxu0 %v5419_v38  ;;  %v3200_v53 = vunpack.c.h.bf16 %v6648_v48 }
 0x6e8   : > { %v2941_v26 = vpack.c.bf16 %v2932_v40, %v2930_v3  ;;  %5152 = vmatprep.subr.bf16.mxu1 %v5417_v57  ;;  %5205 = vmatpush3.bf16.msra.mxu0 %v5419_v38 }
 0x6ea   : > { %5127 = vmatmul.mubr.msk.bf16.gmra.mrb[52].mxu1 %vm774_vm1, %v2941_v26  ;;  %5137 = vmatmul.mubr.msk.bf16.gmra.mrb[60].mxu0 %vm774_vm1, %v2937_v21  ;;  %v5644_v21 = vld [vmem:[%s7422_s5 + $0xc] sm:$0xf] }
 0x6eb   : > { %5153 = vmatpush3.bf16.msra.mxu1 %v5417_v57  ;;  %5140 = vmatprep.mubr.msk.bf16.mxu0 %vm774_vm1, %v2938_v62  ;;  %v3067_v61 = vunpack.c.l.bf16 %v5644_v21  ;;  %v5650_v21 = vld [vmem:[%s7422_s5 + $0x5c] sm:$0xf] }
 0x6ec   : > { %5154 = vmatprep.subr.bf16.mxu1 %v5418_v35 }
 0x6ef   : > { %5155 = vmatpush3.bf16.msra.mxu1 %v5418_v35 }
 0x6f0   : > { %5172 = vmatprep.subr.bf16.mxu1 %v7629_v2 }
 0x6f2   : > { %5141 = vmatmul.mubr.msk.bf16.gmra.mrb[64].mxu0 %vm774_vm1, %v2939_v63  ;;  %v5645_v63 = vld [vmem:[%s7422_s5 + $0x34] sm:$0xf] }
 0x6f3   : > { %5144 = vmatprep.mubr.msk.bf16.mxu0 %vm774_vm1, %v2940_v33  ;;  %v3072_v8 = vunpack.c.l.bf16 %v5645_v63  ;;  %v5648_v33 = vld [vmem:[%s7422_s5 + $0x2c] sm:$0xf]  ;;  %v5651_v63 = vld [vmem:[%s7422_s5 + $0x44] sm:$0xf] }
 0x6f4   : > { %v3071_v57 = vunpack.c.l.bf16 %v5648_v33 }
 0x6fa   : > { %5145 = vmatmul.mubr.msk.bf16.gmra.mrb[68].mxu0 %vm774_vm1, %v2941_v26  ;;  %vm7643_vm1 = vcmask 130048  }
 0x6fb   : > { %vm7644_vm14 = vmmov %vm7643_vm1 }
 0x7a3   : > { %v5116_v20 = vpop.f32.mrb[48].mxu0 }
 0x7a4   : > { %v3003_v9 = vpop.f32.mrb[49].mxu0  ;;  %v7010_v54 = vmul.f32 %v5116_v20, %v3068_v39  ;;  %v5649_v20 = vld [vmem:[%s7422_s5 + $0x54] sm:$0xf] }
 0x7a5   : > { %v5117_v44 = vpop.f32.mrb[50].mxu0  ;;  %v7014_v47 = vmul.f32 %v3066_v36, %v3003_v9  ;;  %v3076_v43 = vunpack.c.l.bf16 %v5649_v20  ;;  %v3201_v36 = vunpack.c.l.bf16 %v6653_v37  ;;  %v3202_v9 = vunpack.c.h.bf16 %v6653_v37 }
 0x7a6   : > { %v7012_v7 = vmul.f32 %v5117_v44, %v3069_v50  ;;  %v3006_v62 = vpop.f32.mrb[51].mxu0 }
 0x7a7   : > { %v7016_v41 = vmul.f32 %v3067_v61, %v3006_v62  ;;  %v3077_v61 = vunpack.c.l.bf16 %v5650_v21 }
 0x7ad   : > { %v5120_v32 = vpop.f32.mrb[52].mxu0 }
 0x7ae   : > { %v3019_v3 = vpop.f32.mrb[53].mxu0  ;;  %v7034_v26 = vmul.f32 %v5120_v32, %v3072_v8  ;;  %v3074_v8 = vunpack.c.l.bf16 %v5651_v63 }
 0x7af   : > { %v5121_v40 = vpop.f32.mrb[54].mxu0  ;;  %v7038_v27 = vmul.f32 %v3070_v55, %v3019_v3 }
 0x7b0   : > { %v7036_v35 = vmul.f32 %v5121_v40, %v3073_v46  ;;  %v3022_v38 = vpop.f32.mrb[55].mxu0  ;;  %v5652_v46 = vld [vmem:[%s7422_s5 + $0x4c] sm:$0xf] }
 0x7b1   : > { %v7040_v39 = vmul.f32 %v3071_v57, %v3022_v38  ;;  %v3075_v32 = vunpack.c.l.bf16 %v5652_v46 }
 0x7b5   : > { %v5124_v44 = vpop.f32.mrb[48].mxu1  ;;  %v5134_v62 = vpop.f32.mrb[56].mxu0 }
 0x7b6   : > { %v3035_v55 = vpop.f32.mrb[49].mxu1  ;;  %v3136_v33 = vpop.f32.mrb[57].mxu0  ;;  %v7062_v3 = vmul.f32 %v5124_v44, %v3076_v43  ;;  %v3217_v40 = vmul.f32 %v5134_v62, %v3201_v36  ;;  %v5653_v36 = vld [vmem:[%s7422_s5 + $0x74] sm:$0xf]  ;;  %v5654_v62 = vld [vmem:[%s7422_s5 + $0x7c] sm:$0xf] }
 0x7b7   : > { %v5125_v57 = vpop.f32.mrb[50].mxu1  ;;  %v5135_v37 = vpop.f32.mrb[58].mxu0  ;;  %v7066_v5 = vmul.f32 %v3074_v8, %v3035_v55  ;;  %v3215_v50 = vmul.f32 %v3199_v51, %v3136_v33  ;;  %v3081_v8 = vunpack.c.l.bf16 %v5654_v62  ;;  %v3206_v51 = vunpack.c.h.bf16 %v6663_v15 }
 0x7b8   : > { %v7064_v38 = vmul.f32 %v5125_v57, %v3077_v61  ;;  %v3218_v20 = vmul.f32 %v5135_v37, %v3202_v9  ;;  %v3038_v21 = vpop.f32.mrb[51].mxu1  ;;  %v3139_v63 = vpop.f32.mrb[59].mxu0  ;;  %v3080_v61 = vunpack.c.l.bf16 %v5653_v36  ;;  %v3205_v9 = vunpack.c.l.bf16 %v6663_v15  ;;  %v5656_v57 = vld [vmem:[%s7422_s5 + $0x6c] sm:$0xf] }
 0x7b9   : > { %v7068_v42 = vmul.f32 %v3075_v32, %v3038_v21  ;;  %v3216_v46 = vmul.f32 %v3200_v53, %v3139_v63  ;;  %v3203_v33 = vunpack.c.l.bf16 %v6656_v52  ;;  %v3079_v37 = vunpack.c.l.bf16 %v5656_v57 }
 0x7ba   : > { %v3240_v0 = vpack.c.bf16 %v3218_v20, %v3217_v40  ;;  %v3204_v40 = vunpack.c.h.bf16 %v6656_v52 }
 0x7bb   : > { %v3239_v44 = vpack.c.bf16 %v3216_v46, %v3215_v50  ;;  %v5655_v50 = vld [vmem:[%s7422_s5 + $0x64] sm:$0xf] }
 0x7bc   : > { %v3078_v55 = vunpack.c.l.bf16 %v5655_v50  ;;  %v7630_v50 = vld [vmem:[#allocation32_spill] sm:$0xff] }
 0x7bd   : > { %v5128_v32 = vpop.f32.mrb[52].mxu1  ;;  %v5138_v53 = vpop.f32.mrb[60].mxu0  ;;  %5156 = vmatprep.mubr.msk.bf16.mxu1 %vm2459_vm0, %v3239_v44 }
 0x7be   : > { %v3051_v20 = vpop.f32.mrb[53].mxu1  ;;  %v3152_v15 = vpop.f32.mrb[61].mxu0  ;;  %5157 = vmatmul.mubr.msk.bf16.vlgmr.msra.gmra.mrb[56].mxu1 %vm2459_vm0, %v3240_v0  ;;  %v7093_v46 = vmul.f32 %v5128_v32, %v3080_v61  ;;  %v3221_v44 = vmul.f32 %v5138_v53, %v3205_v9  ;;  %v3210_v32 = vunpack.c.h.bf16 %v6670_v45 }
 0x7bf   : > { %5173 = vmatpush3.bf16.msra.mxu1 %v7629_v2  ;;  %v5129_v21 = vpop.f32.mrb[54].mxu1  ;;  %v5139_v63 = vpop.f32.mrb[62].mxu0  ;;  %v7098_v52 = vmul.f32 %v3078_v55, %v3051_v20  ;;  %v3219_v43 = vmul.f32 %v3203_v33, %v3152_v15  ;;  %v7632_v20 = vld [vmem:[#allocation34_spill] sm:$0xff] }
 0x7c0   : > { %v7095_v36 = vmul.f32 %v5129_v21, %v3081_v8  ;;  %v3222_v62 = vmul.f32 %v5139_v63, %v3206_v51  ;;  %5174 = vmatprep.subr.bf16.mxu1 %v7630_v50  ;;  %v3054_v48 = vpop.f32.mrb[55].mxu1  ;;  %v3155_v57 = vpop.f32.mrb[63].mxu0  ;;  %v7631_v8 = vld [vmem:[#allocation35_spill] sm:$0xff]  ;;  %v3209_v51 = vunpack.c.l.bf16 %v6670_v45 }
 0x7c1   : > { %v3095_v59 = vmul.f32 %v3079_v37, %v3054_v48  ;;  %v3220_v0 = vmul.f32 %v3204_v40, %v3155_v57  ;;  %v5657_v48 = vld [vmem:[%s6645_s27 + $0x20] sm:$0xff]   ;;  %v5659_v57 = vld [vmem:[%s6645_s27 + $0x30] sm:$0xff]  }
 0x7c2   : > { %v3399_v2 = vpack.c.bf16 %v7095_v36, %v7093_v46  ;;  %v3242_v4 = vpack.c.bf16 %v3222_v62, %v3221_v44  ;;  %v3207_v55 = vunpack.c.l.bf16 %v5657_v48  ;;  %v3208_v33 = vunpack.c.h.bf16 %v5657_v48  ;;  %v7633_v44 = vld [vmem:[#allocation37_spill] sm:$0xff] }
 0x7c3   : > { %v3398_v61 = vpack.c.bf16 %v3095_v59, %v7098_v52  ;;  %v3241_v9 = vpack.c.bf16 %v3220_v0, %v3219_v43  ;;  %5175 = vmatpush3.bf16.msra.mxu1 %v7630_v50  ;;  %v5658_v36 = vld [vmem:[%s6645_s27 + $0x38] sm:$0xff]   ;;  %v3211_v52 = vunpack.c.l.bf16 %v5659_v57  ;;  %v3212_v0 = vunpack.c.h.bf16 %v5659_v57 }
 0x7c4   : > { %5176 = vmatprep.subr.bf16.mxu1 %v7631_v8  ;;  %v3213_v62 = vunpack.c.l.bf16 %v5658_v36 }
 0x7c5   : > { %v5142_v53 = vpop.f32.mrb[64].mxu0  ;;  %5160 = vmatprep.mubr.msk.bf16.mxu1 %vm2459_vm0, %v3241_v9 }
 0x7c6   : > { %v3168_v37 = vpop.f32.mrb[65].mxu0  ;;  %5161 = vmatmul.mubr.msk.bf16.gmra.mrb[60].mxu1 %vm2459_vm0, %v3242_v4  ;;  %v3225_v43 = vmul.f32 %v5142_v53, %v3209_v51  ;;  %v3214_v4 = vunpack.c.h.bf16 %v5658_v36  ;;  %v7634_v53 = vld [vmem:[#allocation36_spill] sm:$0xff] }
 0x7c7   : > { %5177 = vmatpush3.bf16.msra.mxu1 %v7631_v8  ;;  %v5143_v59 = vpop.f32.mrb[66].mxu0  ;;  %v3223_v45 = vmul.f32 %v3207_v55, %v3168_v37 }
 0x7c8   : > { %v3226_v40 = vmul.f32 %v5143_v59, %v3210_v32  ;;  %5178 = vmatprep.subr.bf16.mxu1 %v7632_v20  ;;  %v3171_v15 = vpop.f32.mrb[67].mxu0 }
 0x7c9   : > { %v3224_v21 = vmul.f32 %v3208_v33, %v3171_v15  ;;  %v7638_v15 = vpack.c.bf16 %v7012_v7, %v7010_v54  ;;  %v5420_v54 = vld [vmem:[%s7431_s14] sm:$0xff]   ;;  %v5421_v7 = vld [vmem:[%s7431_s14 + $0x10] sm:$0xff]  }
 0x7ca   : > { %v3244_v63 = vpack.c.bf16 %v3226_v40, %v3225_v43  ;;  %v7635_v43 = vld [vmem:[#allocation39_spill] sm:$0xff]  ;;  %v7636_v40 = vpack.c.bf16 %v7016_v41, %v7014_v47  ;;  %v7641_v47 = vpack.c.bf16 %v7068_v42, %v7066_v5  ;;  %v7642_v41 = vpack.c.bf16 %v7064_v38, %v7062_v3  ;;  %5222 = vmatprep.subr.bf16.mxu0 %v5420_v54 }
 0x7cb   : > { %v3243_v46 = vpack.c.bf16 %v3224_v21, %v3223_v45  ;;  %5179 = vmatpush3.bf16.msra.mxu1 %v7632_v20  ;;  %v7637_v20 = vld [vmem:[#allocation38_spill] sm:$0xff]  ;;  %v7639_v45 = vpack.c.bf16 %v7040_v39, %v7038_v27  ;;  %v7640_v21 = vpack.c.bf16 %v7036_v35, %v7034_v26 }
 0x7cc   : > { %5180 = vmatprep.subr.bf16.mxu1 %v7633_v44 }
 0x7cd   : > { %v5146_v50 = vpop.f32.mrb[68].mxu0  ;;  %5164 = vmatprep.mubr.msk.bf16.mxu1 %vm2459_vm0, %v3243_v46 }
 0x7ce   : > { %v3184_v9 = vpop.f32.mrb[69].mxu0  ;;  %5165 = vmatmul.mubr.msk.bf16.gmra.mrb[64].mxu1 %vm2459_vm0, %v3244_v63  ;;  %v3229_v51 = vmul.f32 %v5146_v50, %v3213_v62 }
 0x7cf   : > { %5181 = vmatpush3.bf16.msra.mxu1 %v7633_v44  ;;  %v5147_v8 = vpop.f32.mrb[70].mxu0  ;;  %v3227_v55 = vmul.f32 %v3211_v52, %v3184_v9 }
 0x7d0   : > { %v3230_v32 = vmul.f32 %v5147_v8, %v3214_v4  ;;  %5182 = vmatprep.subr.bf16.mxu1 %v7634_v53  ;;  %v3187_v48 = vpop.f32.mrb[71].mxu0 }
 0x7d1   : > { %v3228_v33 = vmul.f32 %v3212_v0, %v3187_v48 }
 0x7d2   : > { %v3246_v37 = vpack.c.bf16 %v3230_v32, %v3229_v51 }
 0x7d3   : > { %v3245_v59 = vpack.c.bf16 %v3228_v33, %v3227_v55  ;;  %5183 = vmatpush3.bf16.msra.mxu1 %v7634_v53 }
 0x7d4   : > { %5184 = vmatprep.subr.bf16.mxu1 %v7635_v43 }
 0x7d5   : > { %5168 = vmatprep.mubr.msk.bf16.mxu1 %vm2459_vm0, %v3245_v59  ;;  %v7659_v59 = vld [vmem:[#allocation2_spill] sm:$0xff] }
 0x7d6   : > { %5169 = vmatmul.mubr.msk.bf16.gmra.mrb[68].mxu1 %vm2459_vm0, %v3246_v37  ;;  %vm7645_vm0 = vmmov %vm7643_vm1  ;;  %v7658_v37 = vld [vmem:[#allocation4_spill] sm:$0xff] }
 0x7d7   : > { %5185 = vmatpush3.bf16.msra.mxu1 %v7635_v43  ;;  %5188 = vmatprep.mubr.bf16.mxu1 %v7636_v40  ;;  %vm7646_vm15 = vmmov %vm7645_vm0  ;;  %v7663_v43 = vld [vmem:[#allocation3_spill] sm:$0xff]  ;;  %v7667_v40 = vld [vmem:[#allocation6_spill] sm:$0xff] }
 0x7d8   : > { %5186 = vmatprep.subr.bf16.mxu1 %v7637_v20  ;;  %vm7647_vm9 = vmmov %vm7645_vm0 }
 0x7d9   : > { %vm7648_vm2 = vmmov %vm7645_vm0 }
 0x7da   : > { %vm7649_vm3 = vmmov %vm7645_vm0 }
 0x7db   : > { %5187 = vmatpush3.bf16.msra.mxu1 %v7637_v20  ;;  %vm7650_vm7 = vmmov %vm7645_vm0  ;;  %v7671_v20 = vld [vmem:[#allocation7_spill] sm:$0xff] }
 0x7dc   : > { %5240 = vmatprep.subr.bf16.mxu1 %v5421_v7  ;;  %vm7652_vm11 = vmmov %vm7645_vm0 }
 0x7de   : > { %5189 = vmatmul.mubr.bf16.vlgmr.msra.gmra.mrb[56].mxu1 %v7638_v15  ;;  %v5423_v15 = vld [vmem:[%s7431_s14 + $0x20] sm:$0xff]  }
 0x7df   : > { %5192 = vmatprep.mubr.bf16.mxu1 %v7639_v45  ;;  %5241 = vmatpush3.bf16.msra.mxu1 %v5421_v7  ;;  %v7216_v45 = vld [vmem:[%s7432_s15] ss:$0 sm:$0xff] }
 0x7e6   : > { %5193 = vmatmul.mubr.bf16.gmra.mrb[60].mxu1 %v7640_v21 }
 0x7e7   : > { %5196 = vmatprep.mubr.bf16.mxu1 %v7641_v47 }
 0x7ee   : > { %5197 = vmatmul.mubr.bf16.gmra.mrb[64].mxu1 %v7642_v41 }
 0x7ef   : > { %5200 = vmatprep.mubr.bf16.mxu1 %v3398_v61 }
 0x7f6   : > { %5201 = vmatmul.mubr.bf16.gmra.mrb[68].mxu1 %v3399_v2 }
 0x8b1   : > { %v5190_v26 = vpop.f32.mrb[56].mxu1 }
 0x8b2   : > { %v3507_v42 = vadd.f32 %v5190_v26, %v5786_v10  ;;  %v3442_v35 = vpop.f32.mrb[57].mxu1 }
 0x8b3   : > { %v3505_v27 = vadd.f32 %v3442_v35, %v5789_v11  ;;  %v5191_v39 = vpop.f32.mrb[58].mxu1 }
 0x8b4   : > { %v3508_v5 = vadd.f32 %v5191_v39, %v5792_v12  ;;  %v3445_v3 = vpop.f32.mrb[59].mxu1 }
 0x8b5   : > { %v3506_v38 = vadd.f32 %v3445_v3, %v5794_v13 }
 0x8b6   : > { %v3537_v2 = vpack.c.bf16 %v3508_v5, %v3507_v42 }
 0x8b7   : > { %v3536_v61 = vpack.c.bf16 %v3506_v38, %v3505_v27 }
 0x8b9   : > { %v5194_v63 = vpop.f32.mrb[60].mxu1  ;;  %5206 = vmatprep.mubr.msk.bf16.mxu0 %vm7643_vm1, %v3536_v61  ;;  %vm7654_vm1 = vmmov %vm7645_vm0 }
 0x8ba   : > { %v3511_v46 = vadd.f32 %v5194_v63, %v5806_v16  ;;  %v3458_v44 = vpop.f32.mrb[61].mxu1  ;;  %5207 = vmatmul.mubr.msk.bf16.vlgmr.msra.gmra.mrb[72].mxu0 %vm7644_vm14, %v3537_v2  ;;  %vm7656_vm14 = vmmov %vm7645_vm0 }
 0x8bb   : > { %v3509_v10 = vadd.f32 %v3458_v44, %v5808_v17  ;;  %v5195_v36 = vpop.f32.mrb[62].mxu1  ;;  %5223 = vmatpush3.bf16.msra.mxu0 %v5420_v54 }
 0x8bc   : > { %v3512_v11 = vadd.f32 %v5195_v36, %v5811_v18  ;;  %v3461_v12 = vpop.f32.mrb[63].mxu1  ;;  %5260 = vmatprep.subr.bf16.mxu0 %v5423_v15 }
 0x8bd   : > { %v3510_v62 = vadd.f32 %v3461_v12, %v5813_v19 }
 0x8be   : > { %v3539_v13 = vpack.c.bf16 %v3512_v11, %v3511_v46 }
 0x8bf   : > { %v3538_v4 = vpack.c.bf16 %v3510_v62, %v3509_v10 }
 0x8c1   : > { %v5198_v50 = vpop.f32.mrb[64].mxu1  ;;  %5210 = vmatprep.mubr.msk.bf16.mxu0 %vm7645_vm0, %v3538_v4 }
 0x8c2   : > { %v3515_v57 = vadd.f32 %v5198_v50, %v5826_v22  ;;  %v3474_v16 = vpop.f32.mrb[65].mxu1  ;;  %5211 = vmatmul.mubr.msk.bf16.gmra.mrb[76].mxu0 %vm7646_vm15, %v3539_v13  ;;  %vm7661_vm15 = vmmov %vm7645_vm0 }
 0x8c3   : > { %v3513_v52 = vadd.f32 %v3474_v16, %v5828_v23  ;;  %v5199_v17 = vpop.f32.mrb[66].mxu1 }
 0x8c4   : > { %v3516_v0 = vadd.f32 %v5199_v17, %v5831_v24  ;;  %v3477_v9 = vpop.f32.mrb[67].mxu1 }
 0x8c5   : > { %v3514_v18 = vadd.f32 %v3477_v9, %v5833_v25 }
 0x8c6   : > { %v3541_v8 = vpack.c.bf16 %v3516_v0, %v3515_v57 }
 0x8c7   : > { %v3540_v19 = vpack.c.bf16 %v3514_v18, %v3513_v52 }
 0x8c9   : > { %v5202_v51 = vpop.f32.mrb[68].mxu1  ;;  %5214 = vmatprep.mubr.msk.bf16.mxu0 %vm7647_vm9, %v3540_v19  ;;  %vm7665_vm9 = vmmov %vm7645_vm0 }
 0x8ca   : > { %v3519_v32 = vadd.f32 %v5202_v51, %v5846_v28  ;;  %v3490_v53 = vpop.f32.mrb[69].mxu1  ;;  %5215 = vmatmul.mubr.msk.bf16.gmra.mrb[80].mxu0 %vm7648_vm2, %v3541_v8  ;;  %v7651_v28 = vpack.c.bf16 %v6686_v58, %v6680_v14  ;;  %v7660_v14 = vpack.c.bf16 %v7658_v37, %v7659_v59  ;;  %v7662_v58 = vld [vmem:[#allocation5_spill] sm:$0xff]  ;;  %vm7669_vm2 = vmmov %vm7645_vm0 }
 0x8cb   : > { %v3517_v22 = vadd.f32 %v3490_v53, %v5848_v29  ;;  %v5203_v48 = vpop.f32.mrb[70].mxu1  ;;  %v7653_v29 = vpack.c.bf16 %v6682_v56, %v6678_v1  ;;  %v7664_v1 = vpack.c.bf16 %v7662_v58, %v7663_v43  ;;  %v7666_v56 = vld [vmem:[#allocation41_spill] sm:$0xff] }
 0x8cc   : > { %v3520_v23 = vadd.f32 %v5203_v48, %v5851_v30  ;;  %v3493_v55 = vpop.f32.mrb[71].mxu1  ;;  %v7655_v30 = vpack.c.bf16 %v6698_v6, %v6692_v60  ;;  %v7668_v60 = vpack.c.bf16 %v7666_v56, %v7667_v40  ;;  %v7670_v6 = vld [vmem:[#allocation40_spill] sm:$0xff] }
 0x8cd   : > { %v3518_v24 = vadd.f32 %v3493_v55, %v5853_v31  ;;  %v7657_v31 = vpack.c.bf16 %v6694_v34, %v6690_v49  ;;  %v7672_v49 = vpack.c.bf16 %v7670_v6, %v7671_v20  ;;  %v5422_v34 = vld [vmem:[%s7431_s14 + $0x18] sm:$0xff]  }
 0x8ce   : > { %v3543_v33 = vpack.c.bf16 %v3520_v23, %v3519_v32  ;;  %5242 = vmatprep.subr.bf16.mxu1 %v5422_v34 }
 0x8cf   : > { %v3542_v25 = vpack.c.bf16 %v3518_v24, %v3517_v22  ;;  %5243 = vmatpush3.bf16.msra.mxu1 %v5422_v34 }
 0x8d1   : > { %5218 = vmatprep.mubr.msk.bf16.mxu0 %vm7649_vm3, %v3542_v25  ;;  %vm7673_vm3 = vmmov %vm7645_vm0 }
 0x8d2   : > { %5219 = vmatmul.mubr.msk.bf16.gmra.mrb[84].mxu0 %vm7650_vm7, %v3543_v33 }
 0x8d3   : > { %5224 = vmatprep.mubr.msk.bf16.mxu0 %vm7652_vm11, %v7651_v28  ;;  %vm3926_vm11 = vcmask 261120  }
 0x8da   : > { %5225 = vmatmul.mubr.msk.bf16.vlgmr.msra.gmra.mrb[72].mxu0 %vm7654_vm1, %v7653_v29 }
 0x8db   : > { %5228 = vmatprep.mubr.msk.bf16.mxu0 %vm7656_vm14, %v7655_v30  ;;  %5261 = vmatpush3.bf16.msra.mxu0 %v5423_v15 }
 0x8e2   : > { %5229 = vmatmul.mubr.msk.bf16.gmra.mrb[76].mxu0 %vm7645_vm0, %v7657_v31 }
 0x8e3   : > { %5232 = vmatprep.mubr.msk.bf16.mxu0 %vm7661_vm15, %v7660_v14 }
 0x8ea   : > { %5233 = vmatmul.mubr.msk.bf16.gmra.mrb[80].mxu0 %vm7665_vm9, %v7664_v1 }
 0x8eb   : > { %5236 = vmatprep.mubr.msk.bf16.mxu0 %vm7669_vm2, %v7668_v60 }
 0x8f2   : > { %5237 = vmatmul.mubr.msk.bf16.gmra.mrb[84].mxu0 %vm7673_vm3, %v7672_v49 }
 0x9ad   : > { %v5226_v21 = vpop.f32.mrb[72].mxu0 }
 0x9ae   : > { %v3804_v47 = vadd.f32 %v5226_v21, %v7216_v45  ;;  %v3735_v41 = vpop.f32.mrb[73].mxu0 }
 0x9af   : > { %v3802_v54 = vadd.f32 %v7216_v45, %v3735_v41  ;;  %v5227_v7 = vpop.f32.mrb[74].mxu0 }
 0x9b0   : > { %v3838_v26 = vmul.f32 1.442695, %v3804_v47  ;;  %v3805_v42 = vadd.f32 %v5227_v7, %v7216_v45  ;;  %v3738_v35 = vpop.f32.mrb[75].mxu0  ;;  %vm3820_vm7 = vcmp.gt.f32.partialorder %v3804_v47, 0.0 }
 0x9b1   : > { %v3834_v27 = vmul.f32 1.442695, %v3802_v54  ;;  %v3803_v39 = vadd.f32 %v7216_v45, %v3738_v35  ;;  %vm3818_vm1 = vcmp.gt.f32.partialorder %v3802_v54, 0.0 }
 0x9b2   : > { %5561 = vpow2.f32 %v3838_v26  ;;  %v3840_v5 = vmul.f32 1.442695, %v3805_v42  ;;  %vm3821_vm14 = vcmp.gt.f32.partialorder %v3805_v42, 0.0 }
 0x9b3   : > { %5563 = vpow2.f32 %v3834_v27  ;;  %v3836_v3 = vmul.f32 1.442695, %v3803_v39  ;;  %vm3819_vm0 = vcmp.gt.f32.partialorder %v3803_v39, 0.0 }
 0x9b4   : > { %5565 = vpow2.f32 %v3840_v5 }
 0x9b5   : > { %5567 = vpow2.f32 %v3836_v3  ;;  %v5230_v38 = vpop.f32.mrb[76].mxu0 }
 0x9b6   : > { %v7223_v2 = vadd.f32 %v5230_v38, %v7216_v45  ;;  %v3751_v61 = vpop.f32.mrb[77].mxu0 }
 0x9b7   : > { %v7226_v63 = vadd.f32 %v7216_v45, %v3751_v61  ;;  %v5231_v46 = vpop.f32.mrb[78].mxu0 }
 0x9b8   : > { %v3846_v44 = vmul.f32 1.442695, %v7223_v2  ;;  %v7230_v10 = vadd.f32 %v5231_v46, %v7216_v45  ;;  %v3754_v36 = vpop.f32.mrb[79].mxu0  ;;  %vm3824_vm15 = vcmp.gt.f32.partialorder %v7223_v2, 0.0 }
 0x9b9   : > { %v3842_v11 = vmul.f32 1.442695, %v7226_v63  ;;  %v7234_v12 = vadd.f32 %v7216_v45, %v3754_v36  ;;  %vm3822_vm9 = vcmp.gt.f32.partialorder %v7226_v63, 0.0 }
 0x9ba   : > { %5569 = vpow2.f32 %v3846_v44  ;;  %v3848_v62 = vmul.f32 1.442695, %v7230_v10  ;;  %vm3825_vm2 = vcmp.gt.f32.partialorder %v7230_v10, 0.0 }
 0x9bb   : > { %5571 = vpow2.f32 %v3842_v11  ;;  %v3844_v13 = vmul.f32 1.442695, %v7234_v12  ;;  %vm3823_vm3 = vcmp.gt.f32.partialorder %v7234_v12, 0.0 }
 0x9bc   : > { %v5562_v4 = vpop.eup %5561  ;;  %5573 = vpow2.f32 %v3848_v62 }
 0x9bd   : > { %v5564_v50 = vpop.eup %5563  ;;  %v4557_v57 = vadd.f32 -1.0, %v5562_v4  ;;  %5575 = vpow2.f32 %v3844_v13  ;;  %v5234_v16 = vpop.f32.mrb[80].mxu0 }
 0x9be   : > { %v5566_v52 = vpop.eup %5565  ;;  %v4555_v17 = vadd.f32 -1.0, %v5564_v50  ;;  %v7239_v0 = vadd.f32 %v5234_v16, %v7216_v45  ;;  %v3767_v9 = vpop.f32.mrb[81].mxu0 }
 0x9bf   : > { %v5568_v18 = vpop.eup %5567  ;;  %v4558_v8 = vadd.f32 -1.0, %v5566_v52  ;;  %v7242_v19 = vadd.f32 %v7216_v45, %v3767_v9  ;;  %v5235_v51 = vpop.f32.mrb[82].mxu0  ;;  %v3884_v32 = vsel %vm3820_vm7, %v3804_v47, %v4557_v57 }
 0x9c0   : > { %v4556_v53 = vadd.f32 -1.0, %v5568_v18  ;;  %v3854_v22 = vmul.f32 1.442695, %v7239_v0  ;;  %v3770_v48 = vpop.f32.mrb[83].mxu0  ;;  %v3882_v23 = vsel %vm3818_vm1, %v3802_v54, %v4555_v17  ;;  %v3813_v33 = vadd.f32 %v5235_v51, %v7216_v45 }
 0x9c1   : > { %v3885_v55 = vsel %vm3821_vm14, %v3805_v42, %v4558_v8  ;;  %v3850_v24 = vmul.f32 1.442695, %v7242_v19  ;;  %v3811_v29 = vadd.f32 %v7216_v45, %v3770_v48  ;;  %vm3828_vm7 = vcmp.gt.f32.partialorder %v7239_v0, 0.0 }
 0x9c2   : > { %v3903_v25 = vpack.c.bf16 %v3885_v55, %v3884_v32  ;;  %v3883_v28 = vsel %vm3819_vm0, %v3803_v39, %v4556_v53  ;;  %5577 = vpow2.f32 %v3854_v22  ;;  %v3856_v31 = vmul.f32 1.442695, %v3813_v33  ;;  %v7278_v55 = vld [vmem:[%s7432_s15 + $0x1] ss:$0 sm:$0xff] }
 0x9c3   : > { %v3902_v30 = vpack.c.bf16 %v3883_v28, %v3882_v23  ;;  %5579 = vpow2.f32 %v3850_v24  ;;  %v3852_v59 = vmul.f32 1.442695, %v3811_v29  ;;  %vm3829_vm1 = vcmp.gt.f32.partialorder %v3813_v33, 0.0  ;;  %v5424_v23 = vld [vmem:[%s7431_s14 + $0x28] sm:$0xff]  }
 0x9c4   : > { %v5570_v37 = vpop.eup %5569  ;;  %5581 = vpow2.f32 %v3856_v31  ;;  %vm3826_vm14 = vcmp.gt.f32.partialorder %v7242_v19, 0.0  ;;  %vm3827_vm0 = vcmp.gt.f32.partialorder %v3811_v29, 0.0  ;;  %5262 = vmatprep.subr.bf16.mxu0 %v5424_v23 }
 0x9c5   : > { %v5572_v14 = vpop.eup %5571  ;;  %v4561_v58 = vadd.f32 -1.0, %v5570_v37  ;;  %v5238_v43 = vpop.f32.mrb[84].mxu0  ;;  %5244 = vmatprep.mubr.msk.bf16.mxu1 %vm3926_vm11, %v3902_v30  ;;  %5583 = vpow2.f32 %v3852_v59  ;;  %5263 = vmatpush3.bf16.msra.mxu0 %v5424_v23 }
 0x9c6   : > { %v5574_v1 = vpop.eup %5573  ;;  %v4559_v56 = vadd.f32 -1.0, %v5572_v14  ;;  %v3816_v40 = vadd.f32 %v5238_v43, %v7216_v45  ;;  %v3783_v60 = vpop.f32.mrb[85].mxu0  ;;  %5245 = vmatmul.mubr.msk.bf16.vlgmr.msra.gmra.mrb[72].mxu1 %vm3926_vm11, %v3903_v25 }
 0x9c7   : > { %v5576_v6 = vpop.eup %5575  ;;  %v4562_v20 = vadd.f32 -1.0, %v5574_v1  ;;  %v3814_v49 = vadd.f32 %v7216_v45, %v3783_v60  ;;  %v5239_v34 = vpop.f32.mrb[86].mxu0  ;;  %v3888_v15 = vsel %vm3824_vm15, %v7223_v2, %v4561_v58 }
 0x9c8   : > { %v4560_v21 = vadd.f32 -1.0, %v5576_v6  ;;  %v3862_v47 = vmul.f32 1.442695, %v3816_v40  ;;  %v3786_v41 = vpop.f32.mrb[87].mxu0  ;;  %v3886_v54 = vsel %vm3822_vm9, %v7226_v63, %v4559_v56  ;;  %v3817_v42 = vadd.f32 %v5239_v34, %v7216_v45 }
 0x9c9   : > { %v3889_v7 = vsel %vm3825_vm2, %v7230_v10, %v4562_v20  ;;  %v3858_v26 = vmul.f32 1.442695, %v3814_v49  ;;  %v3815_v39 = vadd.f32 %v7216_v45, %v3786_v41  ;;  %vm3832_vm15 = vcmp.gt.f32.partialorder %v3816_v40, 0.0 }
 0x9ca   : > { %v3905_v35 = vpack.c.bf16 %v3889_v7, %v3888_v15  ;;  %v3887_v27 = vsel %vm3823_vm3, %v7234_v12, %v4560_v21  ;;  %5585 = vpow2.f32 %v3862_v47  ;;  %v3864_v3 = vmul.f32 1.442695, %v3817_v42 }
 0x9cb   : > { %v3904_v5 = vpack.c.bf16 %v3887_v27, %v3886_v54  ;;  %5587 = vpow2.f32 %v3858_v26  ;;  %v3860_v2 = vmul.f32 1.442695, %v3815_v39  ;;  %vm3833_vm9 = vcmp.gt.f32.partialorder %v3817_v42, 0.0 }
 0x9cc   : > { %v5578_v38 = vpop.eup %5577  ;;  %5589 = vpow2.f32 %v3864_v3  ;;  %vm3830_vm2 = vcmp.gt.f32.partialorder %v3814_v49, 0.0  ;;  %vm3831_vm3 = vcmp.gt.f32.partialorder %v3815_v39, 0.0 }
 0x9cd   : > { %v5580_v61 = vpop.eup %5579  ;;  %5248 = vmatprep.mubr.msk.bf16.mxu1 %vm3926_vm11, %v3904_v5  ;;  %v4565_v63 = vadd.f32 -1.0, %v5578_v38  ;;  %5591 = vpow2.f32 %v3860_v2 }
 0x9ce   : > { %5249 = vmatmul.mubr.msk.bf16.gmra.mrb[76].mxu1 %vm3926_vm11, %v3905_v35  ;;  %v5582_v46 = vpop.eup %5581  ;;  %v4563_v44 = vadd.f32 -1.0, %v5580_v61 }
 0x9cf   : > { %v5584_v10 = vpop.eup %5583  ;;  %v4566_v36 = vadd.f32 -1.0, %v5582_v46  ;;  %v3892_v11 = vsel %vm3828_vm7, %v7239_v0, %v4565_v63 }
 0x9d0   : > { %v4564_v45 = vadd.f32 -1.0, %v5584_v10  ;;  %v3890_v62 = vsel %vm3826_vm14, %v7242_v19, %v4563_v44 }
 0x9d1   : > { %v3893_v12 = vsel %vm3829_vm1, %v3813_v33, %v4566_v36 }
 0x9d2   : > { %v3907_v13 = vpack.c.bf16 %v3893_v12, %v3892_v11  ;;  %v3891_v4 = vsel %vm3827_vm0, %v3811_v29, %v4564_v45 }
 0x9d3   : > { %v3906_v57 = vpack.c.bf16 %v3891_v4, %v3890_v62 }
 0x9d4   : > { %v5586_v50 = vpop.eup %5585 }
 0x9d5   : > { %v5588_v16 = vpop.eup %5587  ;;  %v4569_v52 = vadd.f32 -1.0, %v5586_v50  ;;  %5252 = vmatprep.mubr.msk.bf16.mxu1 %vm3926_vm11, %v3906_v57 }
 0x9d6   : > { %v5590_v17 = vpop.eup %5589  ;;  %v4567_v9 = vadd.f32 -1.0, %v5588_v16  ;;  %5253 = vmatmul.mubr.msk.bf16.gmra.mrb[80].mxu1 %vm3926_vm11, %v3907_v13 }
 0x9d7   : > { %v5592_v18 = vpop.eup %5591  ;;  %v4570_v0 = vadd.f32 -1.0, %v5590_v17  ;;  %v3896_v51 = vsel %vm3832_vm15, %v3816_v40, %v4569_v52 }
 0x9d8   : > { %v4568_v8 = vadd.f32 -1.0, %v5592_v18  ;;  %v3894_v32 = vsel %vm3830_vm2, %v3814_v49, %v4567_v9 }
 0x9d9   : > { %v3897_v19 = vsel %vm3833_vm9, %v3817_v42, %v4570_v0 }
 0x9da   : > { %v3909_v53 = vpack.c.bf16 %v3897_v19, %v3896_v51  ;;  %v3895_v22 = vsel %vm3831_vm3, %v3815_v39, %v4568_v8 }
 0x9db   : > { %v3908_v48 = vpack.c.bf16 %v3895_v22, %v3894_v32 }
 0x9dd   : > { %5256 = vmatprep.mubr.msk.bf16.mxu1 %vm3926_vm11, %v3908_v48 }
 0x9de   : > { %5257 = vmatmul.mubr.msk.bf16.gmra.mrb[84].mxu1 %vm3926_vm11, %v3909_v53 }
 0xa99   : > { %v5246_v24 = vpop.f32.mrb[72].mxu1 }
 0xa9a   : > { %v3994_v33 = vadd.f32 %v5246_v24, %v7278_v55  ;;  %v3985_v25 = vpop.f32.mrb[73].mxu1 }
 0xa9b   : > { %v3986_v28 = vadd.f32 %v7278_v55, %v3985_v25  ;;  %v5247_v29 = vpop.f32.mrb[74].mxu1 }
 0xa9c   : > { %v4068_v30 = vmul.f32 1.442695, %v3994_v33  ;;  %v3997_v31 = vadd.f32 %v5247_v29, %v7278_v55  ;;  %v3988_v37 = vpop.f32.mrb[75].mxu1  ;;  %vm4050_vm7 = vcmp.gt.f32.partialorder %v3994_v33, 0.0 }
 0xa9d   : > { %v4064_v59 = vmul.f32 1.442695, %v3986_v28  ;;  %v3989_v14 = vadd.f32 %v7278_v55, %v3988_v37  ;;  %vm4048_vm1 = vcmp.gt.f32.partialorder %v3986_v28, 0.0 }
 0xa9e   : > { %5593 = vpow2.f32 %v4068_v30  ;;  %v4070_v58 = vmul.f32 1.442695, %v3997_v31  ;;  %vm4051_vm14 = vcmp.gt.f32.partialorder %v3997_v31, 0.0 }
 0xa9f   : > { %5595 = vpow2.f32 %v4064_v59  ;;  %v4066_v43 = vmul.f32 1.442695, %v3989_v14  ;;  %vm4049_vm0 = vcmp.gt.f32.partialorder %v3989_v14, 0.0 }
 0xaa0   : > { %5597 = vpow2.f32 %v4070_v58 }
 0xaa1   : > { %5599 = vpow2.f32 %v4066_v43  ;;  %v5250_v1 = vpop.f32.mrb[76].mxu1 }
 0xaa2   : > { %v7285_v56 = vadd.f32 %v5250_v1, %v7278_v55  ;;  %v4001_v40 = vpop.f32.mrb[77].mxu1 }
 0xaa3   : > { %v7288_v60 = vadd.f32 %v7278_v55, %v4001_v40  ;;  %v5251_v6 = vpop.f32.mrb[78].mxu1 }
 0xaa4   : > { %v4076_v20 = vmul.f32 1.442695, %v7285_v56  ;;  %v7292_v49 = vadd.f32 %v5251_v6, %v7278_v55  ;;  %v4004_v34 = vpop.f32.mrb[79].mxu1  ;;  %vm4054_vm15 = vcmp.gt.f32.partialorder %v7285_v56, 0.0 }
 0xaa5   : > { %v4072_v15 = vmul.f32 1.442695, %v7288_v60  ;;  %v7296_v21 = vadd.f32 %v7278_v55, %v4004_v34  ;;  %vm4052_vm9 = vcmp.gt.f32.partialorder %v7288_v60, 0.0 }
 0xaa6   : > { %5601 = vpow2.f32 %v4076_v20  ;;  %v4078_v47 = vmul.f32 1.442695, %v7292_v49  ;;  %vm4055_vm2 = vcmp.gt.f32.partialorder %v7292_v49, 0.0 }
 0xaa7   : > { %5603 = vpow2.f32 %v4072_v15  ;;  %v4074_v41 = vmul.f32 1.442695, %v7296_v21  ;;  %vm4053_vm3 = vcmp.gt.f32.partialorder %v7296_v21, 0.0 }
 0xaa8   : > { %v5594_v54 = vpop.eup %5593  ;;  %5605 = vpow2.f32 %v4078_v47 }
 0xaa9   : > { %v5596_v7 = vpop.eup %5595  ;;  %v4584_v26 = vadd.f32 -1.0, %v5594_v54  ;;  %5607 = vpow2.f32 %v4074_v41  ;;  %v5254_v27 = vpop.f32.mrb[80].mxu1 }
 0xaaa   : > { %v5598_v42 = vpop.eup %5597  ;;  %v4582_v35 = vadd.f32 -1.0, %v5596_v7  ;;  %v7301_v3 = vadd.f32 %v5254_v27, %v7278_v55  ;;  %v4017_v38 = vpop.f32.mrb[81].mxu1 }
 0xaab   : > { %v5600_v39 = vpop.eup %5599  ;;  %v4585_v5 = vadd.f32 -1.0, %v5598_v42  ;;  %v7304_v61 = vadd.f32 %v7278_v55, %v4017_v38  ;;  %v5255_v63 = vpop.f32.mrb[82].mxu1  ;;  %v4114_v46 = vsel %vm4050_vm7, %v3994_v33, %v4584_v26 }
 0xaac   : > { %v4583_v2 = vadd.f32 -1.0, %v5600_v39  ;;  %v4084_v10 = vmul.f32 1.442695, %v7301_v3  ;;  %v7308_v36 = vadd.f32 %v5255_v63, %v7278_v55  ;;  %v4020_v45 = vpop.f32.mrb[83].mxu1  ;;  %v4112_v11 = vsel %vm4048_vm1, %v3986_v28, %v4582_v35 }
 0xaad   : > { %v4115_v44 = vsel %vm4051_vm14, %v3997_v31, %v4585_v5  ;;  %v4080_v13 = vmul.f32 1.442695, %v7304_v61  ;;  %v4021_v16 = vadd.f32 %v7278_v55, %v4020_v45  ;;  %vm4058_vm7 = vcmp.gt.f32.partialorder %v7301_v3, 0.0 }
 0xaae   : > { %v4133_v12 = vpack.c.bf16 %v4115_v44, %v4114_v46  ;;  %v4113_v62 = vsel %vm4049_vm0, %v3989_v14, %v4583_v2  ;;  %5609 = vpow2.f32 %v4084_v10  ;;  %v4086_v50 = vmul.f32 1.442695, %v7308_v36 }
 0xaaf   : > { %v4132_v4 = vpack.c.bf16 %v4113_v62, %v4112_v11  ;;  %5611 = vpow2.f32 %v4080_v13  ;;  %v4082_v0 = vmul.f32 1.442695, %v4021_v16  ;;  %vm4059_vm1 = vcmp.gt.f32.partialorder %v7308_v36, 0.0 }
 0xab0   : > { %v5602_v57 = vpop.eup %5601  ;;  %5613 = vpow2.f32 %v4086_v50  ;;  %vm4056_vm14 = vcmp.gt.f32.partialorder %v7304_v61, 0.0  ;;  %vm4057_vm0 = vcmp.gt.f32.partialorder %v4021_v16, 0.0 }
 0xab1   : > { %v5604_v52 = vpop.eup %5603  ;;  %v4588_v17 = vadd.f32 -1.0, %v5602_v57  ;;  %5264 = vmatprep.mubr.msk.bf16.mxu0 %vm3926_vm11, %v4132_v4  ;;  %v5258_v8 = vpop.f32.mrb[84].mxu1  ;;  %5615 = vpow2.f32 %v4082_v0  ;;  %v7674_v4 = vld [vmem:[#allocation24_spill] sm:$0xff] }
 0xab2   : > { %v5606_v9 = vpop.eup %5605  ;;  %v4586_v18 = vadd.f32 -1.0, %v5604_v52  ;;  %5265 = vmatmul.mubr.msk.bf16.vlgmr.msra.gmra.mrb[88].mxu0 %vm3926_vm11, %v4133_v12  ;;  %v4042_v32 = vadd.f32 %v5258_v8, %v7278_v55  ;;  %v4033_v53 = vpop.f32.mrb[85].mxu1  ;;  %v7677_v52 = vld [vmem:[#allocation23_spill] sm:$0xff] }
 0xab3   : > { %v5608_v51 = vpop.eup %5607  ;;  %v4589_v19 = vadd.f32 -1.0, %v5606_v9  ;;  %v4034_v48 = vadd.f32 %v7278_v55, %v4033_v53  ;;  %v5259_v23 = vpop.f32.mrb[86].mxu1  ;;  %v4118_v24 = vsel %vm4054_vm15, %v7285_v56, %v4588_v17 }
 0xab4   : > { %v4587_v22 = vadd.f32 -1.0, %v5608_v51  ;;  %v4092_v25 = vmul.f32 1.442695, %v4042_v32  ;;  %v4045_v28 = vadd.f32 %v5259_v23, %v7278_v55  ;;  %v4036_v29 = vpop.f32.mrb[87].mxu1  ;;  %v4116_v30 = vsel %vm4052_vm9, %v7288_v60, %v4586_v18 }
 0xab5   : > { %v4119_v33 = vsel %vm4055_vm2, %v7292_v49, %v4589_v19  ;;  %v4088_v59 = vmul.f32 1.442695, %v4034_v48  ;;  %v4037_v43 = vadd.f32 %v7278_v55, %v4036_v29  ;;  %vm4062_vm15 = vcmp.gt.f32.partialorder %v4042_v32, 0.0 }
 0xab6   : > { %v4135_v31 = vpack.c.bf16 %v4119_v33, %v4118_v24  ;;  %v4117_v37 = vsel %vm4053_vm3, %v7296_v21, %v4587_v22  ;;  %5617 = vpow2.f32 %v4092_v25  ;;  %v4094_v58 = vmul.f32 1.442695, %v4045_v28 }
 0xab7   : > { %v4134_v14 = vpack.c.bf16 %v4117_v37, %v4116_v30  ;;  %5619 = vpow2.f32 %v4088_v59  ;;  %v4090_v6 = vmul.f32 1.442695, %v4037_v43  ;;  %vm4063_vm9 = vcmp.gt.f32.partialorder %v4045_v28, 0.0  ;;  %v7691_v59 = vld [vmem:[#allocation26_spill] sm:$0xff] }
 0xab8   : > { %v5610_v1 = vpop.eup %5609  ;;  %5621 = vpow2.f32 %v4094_v58  ;;  %vm4060_vm2 = vcmp.gt.f32.partialorder %v4034_v48, 0.0  ;;  %vm4061_vm3 = vcmp.gt.f32.partialorder %v4037_v43, 0.0 }
 0xab9   : > { %5268 = vmatprep.mubr.msk.bf16.mxu0 %vm3926_vm11, %v4134_v14  ;;  %v5612_v56 = vpop.eup %5611  ;;  %v4592_v40 = vadd.f32 -1.0, %v5610_v1  ;;  %5623 = vpow2.f32 %v4090_v6  ;;  %v7694_v6 = vld [vmem:[#allocation21_spill] sm:$0xff] }
 0xaba   : > { %5269 = vmatmul.mubr.msk.bf16.gmra.mrb[92].mxu0 %vm3926_vm11, %v4135_v31  ;;  %v5614_v60 = vpop.eup %5613  ;;  %v4590_v49 = vadd.f32 -1.0, %v5612_v56  ;;  %v7688_v31 = vld [vmem:[#allocation19_spill] sm:$0xff] }
 0xabb   : > { %v4593_v20 = vadd.f32 -1.0, %v5614_v60  ;;  %v5616_v34 = vpop.eup %5615  ;;  %v4122_v55 = vsel %vm4058_vm7, %v7301_v3, %v4592_v40  ;;  %vm7676_vm7 = vcmask 130048  }
 0xabc   : > { %v4591_v47 = vadd.f32 -1.0, %v5616_v34  ;;  %v4120_v54 = vsel %vm4056_vm14, %v7304_v61, %v4590_v49  ;;  %vm7679_vm14 = vmmov %vm7676_vm7  ;;  %v7697_v34 = vld [vmem:[#allocation20_spill] sm:$0xff] }
 0xabd   : > { %v4123_v15 = vsel %vm4059_vm1, %v7308_v36, %v4593_v20  ;;  %v4598_v36 = vld [vmem:[%s7432_s15 + $0x2] ss:$0 sm:$0xff]  ;;  %vm7678_vm1 = vcmp.eq.f32.partialorder %v7677_v52, 0.0 }
 0xabe   : > { %v4137_v21 = vpack.c.bf16 %v4123_v15, %v4122_v55  ;;  %v4121_v7 = vsel %vm4057_vm0, %v4021_v16, %v4591_v47  ;;  %vm7681_vm0 = vmmov %vm7676_vm7 }
 0xabf   : > { %v4136_v42 = vpack.c.bf16 %v4121_v7, %v4120_v54 }
 0xac0   : > { %v5618_v41 = vpop.eup %5617 }
 0xac1   : > { %v5620_v26 = vpop.eup %5619  ;;  %v4596_v35 = vadd.f32 -1.0, %v5618_v41  ;;  %5272 = vmatprep.mubr.msk.bf16.mxu0 %vm3926_vm11, %v4136_v42  ;;  %v7702_v41 = vld [vmem:[#allocation27_spill] sm:$0xff] }
 0xac2   : > { %v5622_v27 = vpop.eup %5621  ;;  %v4594_v5 = vadd.f32 -1.0, %v5620_v26  ;;  %5273 = vmatmul.mubr.msk.bf16.gmra.mrb[96].mxu0 %vm3926_vm11, %v4137_v21  ;;  %v7700_v21 = vld [vmem:[#allocation28_spill] sm:$0xff] }
 0xac3   : > { %v4597_v39 = vadd.f32 -1.0, %v5622_v27  ;;  %v5624_v3 = vpop.eup %5623  ;;  %v4126_v38 = vsel %vm4062_vm15, %v4042_v32, %v4596_v35  ;;  %vm7683_vm15 = vmmov %vm7681_vm0 }
 0xac4   : > { %v4595_v46 = vadd.f32 -1.0, %v5624_v3  ;;  %v4124_v61 = vsel %vm4060_vm2, %v4034_v48, %v4594_v5  ;;  %vm7690_vm2 = vmmov %vm7681_vm0 }
 0xac5   : > { %v4127_v2 = vsel %vm4063_vm9, %v4045_v28, %v4597_v39  ;;  %vm7689_vm9 = vcmp.eq.f32.partialorder %v7688_v31, 0.0  ;;  %v7705_v39 = vld [vmem:[#allocation30_spill] sm:$0xff] }
 0xac6   : > { %v4139_v63 = vpack.c.bf16 %v4127_v2, %v4126_v38  ;;  %v4125_v44 = vsel %vm4061_vm3, %v4037_v43, %v4595_v46  ;;  %vm7692_vm3 = vcmp.eq.f32.partialorder %v7691_v59, 0.0 }
 0xac7   : > { %v4138_v10 = vpack.c.bf16 %v4125_v44, %v4124_v61 }
 0xac9   : > { %5276 = vmatprep.mubr.msk.bf16.mxu0 %vm3926_vm11, %v4138_v10 }
 0xaca   : > { %5277 = vmatmul.mubr.msk.bf16.gmra.mrb[100].mxu0 %vm3926_vm11, %v4139_v63  ;;  %vm7675_vm11 = vcmp.eq.f32.partialorder %v7674_v4, 0.0 }
 0xb85   : > { %v5266_v45 = vpop.f32.mrb[88].mxu0 }
 0xb86   : > { %v4223_v11 = vadd.f32 %v5266_v45, %v4598_v36  ;;  %v4214_v12 = vpop.f32.mrb[89].mxu0 }
 0xb87   : > { %v4215_v62 = vadd.f32 %v4598_v36, %v4214_v12  ;;  %v5267_v13 = vpop.f32.mrb[90].mxu0 }
 0xb88   : > { %v4279_v50 = vsel %vm7675_vm11, 0.0, %v4223_v11  ;;  %v4226_v57 = vadd.f32 %v5267_v13, %v4598_v36  ;;  %v4217_v16 = vpop.f32.mrb[91].mxu0  ;;  %vm7696_vm11 = vmmov %vm7681_vm0 }
 0xb89   : > { %4295 = vst.msk [vmem:[%s7348_s29 + $0x10] sm:$0xff] %vm7676_vm7, %v4279_v50  ;;  %v4277_v17 = vsel %vm7678_vm1, 0.0, %v4215_v62  ;;  %v4218_v9 = vadd.f32 %v4598_v36, %v4217_v16  ;;  %vm7698_vm7 = vcmp.eq.f32.partialorder %v7697_v34, 0.0  ;;  %vm7699_vm1 = vmmov %vm7681_vm0 }
 0xb8a   : > { %4293 = vst.msk [vmem:[%s7348_s29] sm:$0xff] %vm7679_vm14, %v4277_v17  ;;  %v4280_v0 = vsel %vm826_vm5, 0.0, %v4226_v57  ;;  %vm7685_vm5 = vmmov %vm7681_vm0  ;;  %vm7701_vm14 = vcmp.eq.f32.partialorder %v7700_v21, 0.0 }
 0xb8b   : > { %4296 = vst.msk [vmem:[%s7348_s29 + $0x18] sm:$0xff] %vm7681_vm0, %v4280_v0  ;;  %v4278_v51 = vsel %vm824_vm4, 0.0, %v4218_v9  ;;  %vm7687_vm4 = vmmov %vm7681_vm0 }
 0xb8c   : > { %4294 = vst.msk [vmem:[%s7348_s29 + $0x8] sm:$0xff] %vm7683_vm15, %v4278_v51  ;;  %vm7703_vm15 = vcmp.eq.f32.partialorder %v7702_v41, 0.0 }
 0xb8d   : > { %v5270_v19 = vpop.f32.mrb[92].mxu0 }
 0xb8e   : > { %v4239_v32 = vadd.f32 %v5270_v19, %v4598_v36  ;;  %v4230_v53 = vpop.f32.mrb[93].mxu0 }
 0xb8f   : > { %v4231_v22 = vadd.f32 %v4598_v36, %v4230_v53  ;;  %v5271_v48 = vpop.f32.mrb[94].mxu0 }
 0xb90   : > { %v4283_v24 = vsel %vm829_vm13, 0.0, %v4239_v32  ;;  %v4242_v33 = vadd.f32 %v5271_v48, %v4598_v36  ;;  %v4233_v25 = vpop.f32.mrb[95].mxu0  ;;  %vm7693_vm13 = vmmov %vm7681_vm0 }
 0xb91   : > { %4299 = vst.msk [vmem:[%s7348_s29 + $0x30] sm:$0xff] %vm7685_vm5, %v4283_v24  ;;  %v4281_v29 = vsel %vm827_vm8, 0.0, %v4231_v22  ;;  %v4234_v30 = vadd.f32 %v4598_v36, %v4233_v25  ;;  %vm7695_vm8 = vcmp.eq.f32.partialorder %v7694_v6, 0.0  ;;  %vm7704_vm5 = vmmov %vm7681_vm0 }
 0xb92   : > { %4297 = vst.msk [vmem:[%s7348_s29 + $0x20] sm:$0xff] %vm7687_vm4, %v4281_v29  ;;  %v4284_v37 = vsel %vm7689_vm9, 0.0, %v4242_v33  ;;  %vm7706_vm4 = vcmp.eq.f32.partialorder %v7705_v39, 0.0  ;;  %vm7707_vm9 = vmmov %vm7681_vm0 }
 0xb93   : > { %4300 = vst.msk [vmem:[%s7348_s29 + $0x38] sm:$0xff] %vm7690_vm2, %v4284_v37  ;;  %v4282_v14 = vsel %vm7692_vm3, 0.0, %v4234_v30  ;;  %vm7709_vm2 = vmmov %vm7681_vm0 }
 0xb94   : > { %4298 = vst.msk [vmem:[%s7348_s29 + $0x28] sm:$0xff] %vm7693_vm13, %v4282_v14  ;;  %vm7711_vm3 = vmmov %vm7681_vm0 }
 0xb95   : > { %v5274_v58 = vpop.f32.mrb[96].mxu0  ;;  %vm7713_vm13 = vmmov %vm7681_vm0 }
 0xb96   : > { %v4255_v43 = vadd.f32 %v5274_v58, %v4598_v36  ;;  %v4246_v1 = vpop.f32.mrb[97].mxu0 }
 0xb97   : > { %v4247_v56 = vadd.f32 %v4598_v36, %v4246_v1  ;;  %v5275_v40 = vpop.f32.mrb[98].mxu0 }
 0xb98   : > { %v4287_v60 = vsel %vm7695_vm8, 0.0, %v4255_v43  ;;  %v4258_v20 = vadd.f32 %v5275_v40, %v4598_v36  ;;  %v4249_v49 = vpop.f32.mrb[99].mxu0 }
 0xb99   : > { %4303 = vst.msk [vmem:[%s7348_s29 + $0x50] sm:$0xff] %vm7696_vm11, %v4287_v60  ;;  %v4285_v55 = vsel %vm7698_vm7, 0.0, %v4247_v56  ;;  %v4250_v15 = vadd.f32 %v4598_v36, %v4249_v49 }
 0xb9a   : > { %4301 = vst.msk [vmem:[%s7348_s29 + $0x40] sm:$0xff] %vm7699_vm1, %v4285_v55  ;;  %v4288_v47 = vsel %vm7701_vm14, 0.0, %v4258_v20 }
 0xb9b   : > { %4304 = vst.msk [vmem:[%s7348_s29 + $0x58] sm:$0xff] %vm7681_vm0, %v4288_v47  ;;  %v4286_v54 = vsel %vm7703_vm15, 0.0, %v4250_v15 }
 0xb9c   : > { %4302 = vst.msk [vmem:[%s7348_s29 + $0x48] sm:$0xff] %vm7704_vm5, %v4286_v54 }
 0xb9d   : > { %v5278_v7 = vpop.f32.mrb[100].mxu0 }
 0xb9e   : > { %v4271_v26 = vadd.f32 %v5278_v7, %v4598_v36  ;;  %v4262_v42 = vpop.f32.mrb[101].mxu0 }
 0xb9f   : > { %v4263_v35 = vadd.f32 %v4598_v36, %v4262_v42  ;;  %v5279_v27 = vpop.f32.mrb[102].mxu0 }
 0xba0   : > { %v4291_v5 = vsel %vm7706_vm4, 0.0, %v4271_v26  ;;  %v4274_v3 = vadd.f32 %v5279_v27, %v4598_v36  ;;  %v4265_v38 = vpop.f32.mrb[103].mxu0 }
 0xba1   : > { %4307 = vst.msk [vmem:[%s7348_s29 + $0x70] sm:$0xff] %vm7707_vm9, %v4291_v5  ;;  %v4289_v63 = vsel %vm835_vm6, 0.0, %v4263_v35  ;;  %v4266_v46 = vadd.f32 %v4598_v36, %v4265_v38 }
 0xba2   : > { %4305 = vst.msk [vmem:[%s7348_s29 + $0x60] sm:$0xff] %vm7709_vm2, %v4289_v63  ;;  %v4292_v44 = vsel %vm838_vm12, 0.0, %v4274_v3 }
 0xba3   : > { %4308 = vst.msk [vmem:[%s7348_s29 + $0x78] sm:$0xff] %vm7711_vm3, %v4292_v44  ;;  %v4290_v45 = vsel %vm836_vm10, 0.0, %v4266_v46 }
 0xba4   : > { %4306 = vst.msk [vmem:[%s7348_s29 + $0x68] sm:$0xff] %vm7713_vm13, %v4290_v45 }
 0xba5 PF: > { %s26_s21 = sadd.s32 1, %s5666_s21  }
 0xba6   : > { %p23_p4 = scmp.ge.s32.totalorder %s26_s21, 6  }
 0xba8   :  { %25 = sbr.rel (!%p23_p4) target bundleno = 2 (0x2), region = 126 }

</bundles_post_ra>
